<compile_context>
chip_gen: v7x
topology: tpu7x:2x2x1
jax: 0.10.0
libtpu: 0.0.40
codegen_flags: <defaults>
</compile_context>

<pallas_src>
import functools

import jax
import jax.numpy as jnp
from jax import lax
from jax.experimental import pallas as pl
from jax.experimental.pallas import tpu as pltpu


def _make_kernel(*, eps, has_temb, shortcut):
    """shortcut in ("none", "nin", "conv")."""

    def kernel(*refs):
        it = iter(refs)
        x_ref = next(it)
        g1g, g1b, gm1, gm1t = next(it), next(it), next(it), next(it)
        w1, b1 = next(it), next(it)
        g2g, g2b, gm2, gm2t = next(it), next(it), next(it), next(it)
        w2, b2 = next(it), next(it)
        if has_temb:
            temb_ref, tw, tb = next(it), next(it), next(it)
        if shortcut != "none":
            sw, sb = next(it), next(it)
        o_ref = next(it)
        pad1, pad2 = next(it), next(it)

        f32 = jnp.float32
        _, H, W, Cin = x_ref.shape
        Cout = w1.shape[-1]
        HW = H * W

        # Borders of the padded scratch buffers must be zero; we only ever write
        # the interior below, so zero them once per grid step.
        pad1[...] = jnp.zeros_like(pad1)
        pad2[...] = jnp.zeros_like(pad2)

        def silu(v):
            return v * (1.0 / (1.0 + jnp.exp(-v)))

        def group_norm(h2, gamma_ref, beta_ref, gmat_ref, gmatt_ref):
            # h2: (HW, C) f32. Per-group stats via 0/1 membership matmuls.
            C = h2.shape[-1]
            G = gmat_ref.shape[-1]
            inv_n = 1.0 / float(HW * (C // G))
            gm = gmat_ref[...]                                   # (C, G)
            gmt = gmatt_ref[...]                                 # (G, C)
            s = jnp.sum(h2, axis=0, keepdims=True)               # (1, C)
            ss = jnp.sum(h2 * h2, axis=0, keepdims=True)         # (1, C)
            mean_g = jnp.dot(s, gm, preferred_element_type=f32) * inv_n   # (1, G)
            ex2_g = jnp.dot(ss, gm, preferred_element_type=f32) * inv_n   # (1, G)
            var_g = ex2_g - mean_g * mean_g
            istd_g = lax.rsqrt(var_g + eps)
            mean_c = jnp.dot(mean_g, gmt, preferred_element_type=f32)     # (1, C)
            istd_c = jnp.dot(istd_g, gmt, preferred_element_type=f32)     # (1, C)
            return (h2 - mean_c) * istd_c * gamma_ref[...] + beta_ref[...]

        def conv3x3(h2, w_ref, b_ref, pad_ref):
            # h2: (HW, Ci) -> (HW, Co).  3x3 "same" conv as 9 shifted MXU matmuls.
            Ci = h2.shape[-1]
            Co = w_ref.shape[-1]
            pad_ref[1:H + 1, 1:W + 1, :] = h2.reshape(H, W, Ci)
            acc = jnp.zeros((HW, Co), f32) + b_ref[...]
            for kh in range(3):
                for kw in range(3):
                    tap = pad_ref[kh:kh + H, kw:kw + W, :].reshape(HW, Ci)
                    acc = acc + jnp.dot(tap, w_ref[kh, kw],
                                        preferred_element_type=f32)
            return acc

        x2 = x_ref[0].astype(f32).reshape(HW, Cin)

        h = group_norm(x2, g1g, g1b, gm1, gm1t)
        h = silu(h)
        h = conv3x3(h, w1, b1, pad1)                             # (HW, Cout)

        if has_temb:
            t = silu(temb_ref[0].astype(f32))                    # (1, T)
            h = h + (jnp.dot(t, tw[...], preferred_element_type=f32) + tb[...])

        h = group_norm(h, g2g, g2b, gm2, gm2t)
        h = silu(h)
        # TODO(synk): dropout is identity here (eval-mode forward); a training-mode
        # dropout would use pltpu.prng_seed / pltpu.prng_random_bits.
        h = conv3x3(h, w2, b2, pad2)                             # (HW, Cout)

        if shortcut == "nin":
            xs = jnp.dot(x2, sw[...], preferred_element_type=f32) + sb[...]
        elif shortcut == "conv":
            xs = conv3x3(x2, sw, sb, pad1)
        else:
            xs = x2

        o_ref[0] = (xs + h).reshape(H, W, Cout).astype(o_ref.dtype)

    return kernel


def _group_membership(C, G, dtype=jnp.float32):
    cg = C // G
    c = jnp.arange(C)[:, None]
    g = jnp.arange(G)[None, :]
    return (c // cg == g).astype(dtype)                          # (C, G)


def _const_spec(a):
    # Whole parameter resident in VMEM, same block for every grid step.
    return pl.BlockSpec(a.shape, lambda b, n=a.ndim: (0,) * n)


@functools.partial(jax.jit,
                   static_argnames=("num_groups", "eps", "use_conv_shortcut"))
def resnet_block_forward(x, temb, params, *, num_groups=32, eps=1e-6,
                         use_conv_shortcut=False):
    """Pallas ResnetBlock.forward. x: (B, Cin, H, W) NCHW; temb: (B, T) or None."""
    f32 = jnp.float32
    B, Cin, H, W = x.shape
    Cout = params["conv1_weight"].shape[0]
    G = num_groups
    has_temb = temb is not None
    if Cin != Cout:
        shortcut = "conv" if use_conv_shortcut else "nin"
    else:
        shortcut = "none"

    # ---- layout plumbing: NCHW -> NHWC, OIHW -> HWIO, vectors -> (1, C) ----
    x_nhwc = jnp.transpose(x, (0, 2, 3, 1)).astype(f32)

    def conv_w(w):           # (Co, Ci, 3, 3) -> (3, 3, Ci, Co)
        return jnp.transpose(w, (2, 3, 1, 0)).astype(f32)

    def row(v):              # (C,) -> (1, C)
        return v.reshape(1, -1).astype(f32)

    gm1 = _group_membership(Cin, G)
    gm2 = _group_membership(Cout, G)

    inputs = [
        x_nhwc,
        row(params["norm1_weight"]), row(params["norm1_bias"]), gm1, gm1.T,
        conv_w(params["conv1_weight"]), row(params["conv1_bias"]),
        row(params["norm2_weight"]), row(params["norm2_bias"]), gm2, gm2.T,
        conv_w(params["conv2_weight"]), row(params["conv2_bias"]),
    ]
    in_specs = [pl.BlockSpec((1, H, W, Cin), lambda b: (b, 0, 0, 0))]
    in_specs += [_const_spec(a) for a in inputs[1:]]

    if has_temb:
        Tc = temb.shape[-1]
        temb3 = temb.reshape(B, 1, Tc).astype(f32)
        tw = jnp.transpose(params["temb_proj_weight"]).astype(f32)   # (T, Cout)
        tb = row(params["temb_proj_bias"])
        inputs += [temb3, tw, tb]
        in_specs += [pl.BlockSpec((1, 1, Tc), lambda b: (b, 0, 0)),
                     _const_spec(tw), _const_spec(tb)]

    if shortcut == "nin":
        sw = params["nin_shortcut_weight"].reshape(Cout, Cin).T.astype(f32)
        sb = row(params["nin_shortcut_bias"])
        inputs += [sw, sb]
        in_specs += [_const_spec(sw), _const_spec(sb)]
    elif shortcut == "conv":
        sw = conv_w(params["conv_shortcut_weight"])
        sb = row(params["conv_shortcut_bias"])
        inputs += [sw, sb]
        in_specs += [_const_spec(sw), _const_spec(sb)]

    kernel = _make_kernel(eps=eps, has_temb=has_temb, shortcut=shortcut)

    out_nhwc = pl.pallas_call(
        kernel,
        out_shape=jax.ShapeDtypeStruct((B, H, W, Cout), x.dtype),
        grid=(B,),
        in_specs=in_specs,
        out_specs=pl.BlockSpec((1, H, W, Cout), lambda b: (b, 0, 0, 0)),
        scratch_shapes=[pltpu.VMEM((H + 2, W + 2, Cin), f32),
                        pltpu.VMEM((H + 2, W + 2, Cout), f32)],
        compiler_params=pltpu.CompilerParams(
            dimension_semantics=("parallel",)),
    )(*inputs)

    return jnp.transpose(out_nhwc, (0, 3, 1, 2))


# ----------------------------- pure-JAX reference ---------------------------
def _reference(x, temb, params, *, num_groups=32, eps=1e-6,
               use_conv_shortcut=False):
    def gn(v, gamma, beta):
        B, C, H, W = v.shape
        vg = v.reshape(B, num_groups, C // num_groups, H, W)
        mean = vg.mean(axis=(2, 3, 4), keepdims=True)
        var = vg.var(axis=(2, 3, 4), keepdims=True)
        vn = ((vg - mean) / jnp.sqrt(var + eps)).reshape(B, C, H, W)
        return vn * gamma[None, :, None, None] + beta[None, :, None, None]

    def silu(v):
        return v * jax.nn.sigmoid(v)

    def conv3(v, w, b):
        y = lax.conv_general_dilated(v, w, (1, 1), ((1, 1), (1, 1)),
                                     dimension_numbers=("NCHW", "OIHW", "NCHW"))
        return y + b[None, :, None, None]

    cin = x.shape[1]
    cout = params["conv1_weight"].shape[0]
    h = gn(x, params["norm1_weight"], params["norm1_bias"])
    h = silu(h)
    h = conv3(h, params["conv1_weight"], params["conv1_bias"])
    if temb is not None:
        tp = silu(temb) @ params["temb_proj_weight"].T + params["temb_proj_bias"]
        h = h + tp[:, :, None, None]
    h = gn(h, params["norm2_weight"], params["norm2_bias"])
    h = silu(h)
    h = conv3(h, params["conv2_weight"], params["conv2_bias"])
    xs = x
    if cin != cout:
        if use_conv_shortcut:
            xs = conv3(x, params["conv_shortcut_weight"],
                       params["conv_shortcut_bias"])
        else:
            w = params["nin_shortcut_weight"].reshape(cout, cin)
            xs = (jnp.einsum("bchw,oc->bohw", x, w)
                  + params["nin_shortcut_bias"][None, :, None, None])
    return xs + h


if __name__ == "__main__":
    key = jax.random.PRNGKey(0)
    B, Cin, H, W = 2, 32, 16, 16
    Tc = 64
    G = 32

    def make_params(k, cin, cout, tc):
        ks = jax.random.split(k, 12)
        p = {
            "norm1_weight": 1.0 + 0.05 * jax.random.normal(ks[0], (cin,), jnp.float32),
            "norm1_bias": 0.05 * jax.random.normal(ks[1], (cin,), jnp.float32),
            "conv1_weight": 0.1 * jax.random.normal(ks[2], (cout, cin, 3, 3), jnp.float32),
            "conv1_bias": 0.1 * jax.random.normal(ks[3], (cout,), jnp.float32),
            "temb_proj_weight": 0.1 * jax.random.normal(ks[4], (cout, tc), jnp.float32),
            "temb_proj_bias": 0.1 * jax.random.normal(ks[5], (cout,), jnp.float32),
            "norm2_weight": 1.0 + 0.05 * jax.random.normal(ks[6], (cout,), jnp.float32),
            "norm2_bias": 0.05 * jax.random.normal(ks[7], (cout,), jnp.float32),
            "conv2_weight": 0.1 * jax.random.normal(ks[8], (cout, cout, 3, 3), jnp.float32),
            "conv2_bias": 0.1 * jax.random.normal(ks[9], (cout,), jnp.float32),
        }
        if cin != cout:
            p["nin_shortcut_weight"] = 0.1 * jax.random.normal(
                ks[10], (cout, cin, 1, 1), jnp.float32)
            p["nin_shortcut_bias"] = 0.1 * jax.random.normal(
                ks[11], (cout,), jnp.float32)
        return p

    kx, kt, kp1, kp2 = jax.random.split(key, 4)
    x = jax.random.normal(kx, (B, Cin, H, W), jnp.float32)
    temb = jax.random.normal(kt, (B, Tc), jnp.float32)

    # Case 1: in_channels == out_channels (identity shortcut), with temb.
    p1 = make_params(kp1, Cin, Cin, Tc)
    out1 = jax.block_until_ready(resnet_block_forward(x, temb, p1, num_groups=G))
    ref1 = _reference(x, temb, p1, num_groups=G)
    assert out1.shape == (B, Cin, H, W)
    assert jnp.allclose(out1, ref1, atol=1e-3, rtol=1e-3), \
        float(jnp.max(jnp.abs(out1 - ref1)))

    # Case 2: in_channels != out_channels -> 1x1 nin_shortcut, with temb.
    Cout = 64
    p2 = make_params(kp2, Cin, Cout, Tc)
    out2 = jax.block_until_ready(resnet_block_forward(x, temb, p2, num_groups=G))
    ref2 = _reference(x, temb, p2, num_groups=G)
    assert out2.shape == (B, Cout, H, W)
    assert jnp.allclose(out2, ref2, atol=1e-3, rtol=1e-3), \
        float(jnp.max(jnp.abs(out2 - ref2)))

    print("KERNEL_OK")
</pallas_src>

<mosaic_0001>
module attributes {stable_mosaic.version = 11 : i64} {
  func.func @kernel(%arg0: i32, %arg1: memref<1x16x16x32xf32, #tpu.memory_space<vmem>>, %arg2: memref<1x32xf32, #tpu.memory_space<vmem>>, %arg3: memref<1x32xf32, #tpu.memory_space<vmem>>, %arg4: memref<32x32xf32, #tpu.memory_space<vmem>>, %arg5: memref<32x32xf32, #tpu.memory_space<vmem>>, %arg6: memref<3x3x32x32xf32, #tpu.memory_space<vmem>>, %arg7: memref<1x32xf32, #tpu.memory_space<vmem>>, %arg8: memref<1x32xf32, #tpu.memory_space<vmem>>, %arg9: memref<1x32xf32, #tpu.memory_space<vmem>>, %arg10: memref<32x32xf32, #tpu.memory_space<vmem>>, %arg11: memref<32x32xf32, #tpu.memory_space<vmem>>, %arg12: memref<3x3x32x32xf32, #tpu.memory_space<vmem>>, %arg13: memref<1x32xf32, #tpu.memory_space<vmem>>, %arg14: memref<1x1x64xf32, #tpu.memory_space<vmem>>, %arg15: memref<64x32xf32, #tpu.memory_space<vmem>>, %arg16: memref<1x32xf32, #tpu.memory_space<vmem>>, %arg17: memref<1x16x16x32xf32, #tpu.memory_space<vmem>>, %arg18: memref<18x18x32xf32, #tpu.memory_space<vmem>>, %arg19: memref<18x18x32xf32, #tpu.memory_space<vmem>>) attributes {dimension_semantics = [#tpu.dimension_semantics<parallel>], iteration_bounds = array<i64: 2>, scalar_prefetch = 0 : i64, scratch_operands = 2 : i64, tpu.core_type = #tpu.core_type<tc>, window_params = [{transform_indices = @transform_0, window_bounds = array<i64: 1, 16, 16, 32>}, {pipeline_mode = #tpu.pipeline_mode<synchronous>, transform_indices = @transform_1, window_bounds = array<i64: 1, 32>}, {pipeline_mode = #tpu.pipeline_mode<synchronous>, transform_indices = @transform_2, window_bounds = array<i64: 1, 32>}, {pipeline_mode = #tpu.pipeline_mode<synchronous>, transform_indices = @transform_3, window_bounds = array<i64: 32, 32>}, {pipeline_mode = #tpu.pipeline_mode<synchronous>, transform_indices = @transform_4, window_bounds = array<i64: 32, 32>}, {pipeline_mode = #tpu.pipeline_mode<synchronous>, transform_indices = @transform_5, window_bounds = array<i64: 3, 3, 32, 32>}, {pipeline_mode = #tpu.pipeline_mode<synchronous>, transform_indices = @transform_6, window_bounds = array<i64: 1, 32>}, {pipeline_mode = #tpu.pipeline_mode<synchronous>, transform_indices = @transform_7, window_bounds = array<i64: 1, 32>}, {pipeline_mode = #tpu.pipeline_mode<synchronous>, transform_indices = @transform_8, window_bounds = array<i64: 1, 32>}, {pipeline_mode = #tpu.pipeline_mode<synchronous>, transform_indices = @transform_9, window_bounds = array<i64: 32, 32>}, {pipeline_mode = #tpu.pipeline_mode<synchronous>, transform_indices = @transform_10, window_bounds = array<i64: 32, 32>}, {pipeline_mode = #tpu.pipeline_mode<synchronous>, transform_indices = @transform_11, window_bounds = array<i64: 3, 3, 32, 32>}, {pipeline_mode = #tpu.pipeline_mode<synchronous>, transform_indices = @transform_12, window_bounds = array<i64: 1, 32>}, {transform_indices = @transform_13, window_bounds = array<i64: 1, 1, 64>}, {pipeline_mode = #tpu.pipeline_mode<synchronous>, transform_indices = @transform_14, window_bounds = array<i64: 64, 32>}, {pipeline_mode = #tpu.pipeline_mode<synchronous>, transform_indices = @transform_15, window_bounds = array<i64: 1, 32>}, {transform_indices = @transform_16, window_bounds = array<i64: 1, 16, 16, 32>}]} {
    %cst = arith.constant 0.000000e+00 : f32
    %0 = vector.broadcast %cst : f32 to vector<18x18x32xf32>
    %c0 = arith.constant 0 : index
    %c0_0 = arith.constant 0 : index
    %c0_1 = arith.constant 0 : index
    %1 = vector.load %arg18[%c0, %c0_0, %c0_1] : memref<18x18x32xf32, #tpu.memory_space<vmem>>, vector<18x18x32xf32>
    tpu.vector_store %arg18[%c0, %c0_0, %c0_1], %0 {strides = array<i32>} : memref<18x18x32xf32, #tpu.memory_space<vmem>>, vector<18x18x32xf32>,
    %cst_2 = arith.constant 0.000000e+00 : f32
    %2 = vector.broadcast %cst_2 : f32 to vector<18x18x32xf32>
    %c0_3 = arith.constant 0 : index
    %c0_4 = arith.constant 0 : index
    %c0_5 = arith.constant 0 : index
    %3 = vector.load %arg19[%c0_3, %c0_4, %c0_5] : memref<18x18x32xf32, #tpu.memory_space<vmem>>, vector<18x18x32xf32>
    tpu.vector_store %arg19[%c0_3, %c0_4, %c0_5], %2 {strides = array<i32>} : memref<18x18x32xf32, #tpu.memory_space<vmem>>, vector<18x18x32xf32>,
    %c0_6 = arith.constant 0 : index
    %c0_7 = arith.constant 0 : index
    %c0_8 = arith.constant 0 : index
    %c0_9 = arith.constant 0 : index
    %4 = vector.load %arg1[%c0_6, %c0_7, %c0_8, %c0_9] : memref<1x16x16x32xf32, #tpu.memory_space<vmem>>, vector<1x16x16x32xf32>
    %5 = vector.shape_cast %4 : vector<1x16x16x32xf32> to vector<16x16x32xf32>
    %6 = vector.shape_cast %5 : vector<16x16x32xf32> to vector<256x32xf32>
    %c0_10 = arith.constant 0 : index
    %c0_11 = arith.constant 0 : index
    %7 = vector.load %arg4[%c0_10, %c0_11] : memref<32x32xf32, #tpu.memory_space<vmem>>, vector<32x32xf32>
    %c0_12 = arith.constant 0 : index
    %c0_13 = arith.constant 0 : index
    %8 = vector.load %arg5[%c0_12, %c0_13] : memref<32x32xf32, #tpu.memory_space<vmem>>, vector<32x32xf32>
    %cst_14 = arith.constant dense<0.000000e+00> : vector<32xf32>
    %9 = vector.multi_reduction <add>, %6, %cst_14 [0] : vector<256x32xf32> to vector<32xf32>
    %10 = vector.shape_cast %9 : vector<32xf32> to vector<1x32xf32>
    %11 = arith.mulf %6, %6 : vector<256x32xf32>
    %cst_15 = arith.constant dense<0.000000e+00> : vector<32xf32>
    %12 = vector.multi_reduction <add>, %11, %cst_15 [0] : vector<256x32xf32> to vector<32xf32>
    %13 = vector.shape_cast %12 : vector<32xf32> to vector<1x32xf32>
    %cst_16 = arith.constant dense<0.000000e+00> : vector<1x32xf32>
    %14 = tpu.matmul %10, %7, %cst_16 {dimension_numbers = #tpu.dot_dimension_numbers<[1], [0], [0], [1], [0, 0, 1, 1], [], []>} : vector<1x32xf32>, vector<32x32xf32>, vector<1x32xf32> -> vector<1x32xf32>
    %cst_17 = arith.constant 3.906250e-03 : f32
    %15 = vector.broadcast %cst_17 : f32 to vector<1x32xf32>
    %16 = arith.mulf %14, %15 : vector<1x32xf32>
    %cst_18 = arith.constant dense<0.000000e+00> : vector<1x32xf32>
    %17 = tpu.matmul %13, %7, %cst_18 {dimension_numbers = #tpu.dot_dimension_numbers<[1], [0], [0], [1], [0, 0, 1, 1], [], []>} : vector<1x32xf32>, vector<32x32xf32>, vector<1x32xf32> -> vector<1x32xf32>
    %cst_19 = arith.constant 3.906250e-03 : f32
    %18 = vector.broadcast %cst_19 : f32 to vector<1x32xf32>
    %19 = arith.mulf %17, %18 : vector<1x32xf32>
    %20 = arith.mulf %16, %16 : vector<1x32xf32>
    %21 = arith.subf %19, %20 : vector<1x32xf32>
    %cst_20 = arith.constant 9.99999997E-7 : f32
    %22 = vector.broadcast %cst_20 : f32 to vector<1x32xf32>
    %23 = arith.addf %21, %22 : vector<1x32xf32>
    %24 = math.rsqrt %23 : vector<1x32xf32>
    %cst_21 = arith.constant dense<0.000000e+00> : vector<1x32xf32>
    %25 = tpu.matmul %16, %8, %cst_21 {dimension_numbers = #tpu.dot_dimension_numbers<[1], [0], [0], [1], [0, 0, 1, 1], [], []>} : vector<1x32xf32>, vector<32x32xf32>, vector<1x32xf32> -> vector<1x32xf32>
    %cst_22 = arith.constant dense<0.000000e+00> : vector<1x32xf32>
    %26 = tpu.matmul %24, %8, %cst_22 {dimension_numbers = #tpu.dot_dimension_numbers<[1], [0], [0], [1], [0, 0, 1, 1], [], []>} : vector<1x32xf32>, vector<32x32xf32>, vector<1x32xf32> -> vector<1x32xf32>
    %27 = vector.broadcast %25 : vector<1x32xf32> to vector<256x32xf32>
    %28 = arith.subf %6, %27 : vector<256x32xf32>
    %29 = vector.broadcast %26 : vector<1x32xf32> to vector<256x32xf32>
    %30 = arith.mulf %28, %29 : vector<256x32xf32>
    %c0_23 = arith.constant 0 : index
    %c0_24 = arith.constant 0 : index
    %31 = vector.load %arg2[%c0_23, %c0_24] : memref<1x32xf32, #tpu.memory_space<vmem>>, vector<1x32xf32>
    %32 = vector.broadcast %31 : vector<1x32xf32> to vector<256x32xf32>
    %33 = arith.mulf %30, %32 : vector<256x32xf32>
    %c0_25 = arith.constant 0 : index
    %c0_26 = arith.constant 0 : index
    %34 = vector.load %arg3[%c0_25, %c0_26] : memref<1x32xf32, #tpu.memory_space<vmem>>, vector<1x32xf32>
    %35 = vector.broadcast %34 : vector<1x32xf32> to vector<256x32xf32>
    %36 = arith.addf %33, %35 : vector<256x32xf32>
    %cst_27 = arith.constant 0.000000e+00 : f32
    %37 = vector.broadcast %cst_27 : f32 to vector<256x32xf32>
    %38 = arith.subf %37, %36 : vector<256x32xf32>
    %39 = math.exp %38 : vector<256x32xf32>
    %cst_28 = arith.constant 1.000000e+00 : f32
    %40 = vector.broadcast %cst_28 : f32 to vector<256x32xf32>
    %41 = arith.addf %40, %39 : vector<256x32xf32>
    %cst_29 = arith.constant 1.000000e+00 : f32
    %42 = vector.broadcast %cst_29 : f32 to vector<256x32xf32>
    %43 = arith.divf %42, %41 : vector<256x32xf32>
    %44 = arith.mulf %36, %43 : vector<256x32xf32>
    %45 = vector.shape_cast %44 : vector<256x32xf32> to vector<16x16x32xf32>
    %c1 = arith.constant 1 : index
    %c1_30 = arith.constant 1 : index
    %c0_31 = arith.constant 0 : index
    %46 = vector.load %arg18[%c1, %c1_30, %c0_31] : memref<18x18x32xf32, #tpu.memory_space<vmem>>, vector<16x16x32xf32>
    tpu.vector_store %arg18[%c1, %c1_30, %c0_31], %45 {strides = array<i32>} : memref<18x18x32xf32, #tpu.memory_space<vmem>>, vector<16x16x32xf32>,
    %cst_32 = arith.constant 0.000000e+00 : f32
    %47 = vector.broadcast %cst_32 : f32 to vector<256x32xf32>
    %c0_33 = arith.constant 0 : index
    %c0_34 = arith.constant 0 : index
    %48 = vector.load %arg7[%c0_33, %c0_34] : memref<1x32xf32, #tpu.memory_space<vmem>>, vector<1x32xf32>
    %49 = vector.broadcast %48 : vector<1x32xf32> to vector<256x32xf32>
    %50 = arith.addf %47, %49 : vector<256x32xf32>
    %c0_35 = arith.constant 0 : index
    %c0_36 = arith.constant 0 : index
    %c0_37 = arith.constant 0 : index
    %51 = vector.load %arg18[%c0_35, %c0_36, %c0_37] : memref<18x18x32xf32, #tpu.memory_space<vmem>>, vector<16x16x32xf32>
    %52 = vector.shape_cast %51 : vector<16x16x32xf32> to vector<256x32xf32>
    %c0_38 = arith.constant 0 : index
    %c0_39 = arith.constant 0 : index
    %c0_40 = arith.constant 0 : index
    %c0_41 = arith.constant 0 : index
    %53 = vector.load %arg6[%c0_38, %c0_39, %c0_40, %c0_41] : memref<3x3x32x32xf32, #tpu.memory_space<vmem>>, vector<1x1x32x32xf32>
    %54 = vector.shape_cast %53 : vector<1x1x32x32xf32> to vector<32x32xf32>
    %cst_42 = arith.constant dense<0.000000e+00> : vector<256x32xf32>
    %55 = tpu.matmul %52, %54, %cst_42 {dimension_numbers = #tpu.dot_dimension_numbers<[1], [0], [0], [1], [0, 0, 1, 1], [], []>} : vector<256x32xf32>, vector<32x32xf32>, vector<256x32xf32> -> vector<256x32xf32>
    %56 = arith.addf %50, %55 : vector<256x32xf32>
    %c0_43 = arith.constant 0 : index
    %c1_44 = arith.constant 1 : index
    %c0_45 = arith.constant 0 : index
    %57 = vector.load %arg18[%c0_43, %c1_44, %c0_45] : memref<18x18x32xf32, #tpu.memory_space<vmem>>, vector<16x16x32xf32>
    %58 = vector.shape_cast %57 : vector<16x16x32xf32> to vector<256x32xf32>
    %c0_46 = arith.constant 0 : index
    %c1_47 = arith.constant 1 : index
    %c0_48 = arith.constant 0 : index
    %c0_49 = arith.constant 0 : index
    %59 = vector.load %arg6[%c0_46, %c1_47, %c0_48, %c0_49] : memref<3x3x32x32xf32, #tpu.memory_space<vmem>>, vector<1x1x32x32xf32>
    %60 = vector.shape_cast %59 : vector<1x1x32x32xf32> to vector<32x32xf32>
    %cst_50 = arith.constant dense<0.000000e+00> : vector<256x32xf32>
    %61 = tpu.matmul %58, %60, %cst_50 {dimension_numbers = #tpu.dot_dimension_numbers<[1], [0], [0], [1], [0, 0, 1, 1], [], []>} : vector<256x32xf32>, vector<32x32xf32>, vector<256x32xf32> -> vector<256x32xf32>
    %62 = arith.addf %56, %61 : vector<256x32xf32>
    %c0_51 = arith.constant 0 : index
    %c2 = arith.constant 2 : index
    %c0_52 = arith.constant 0 : index
    %63 = vector.load %arg18[%c0_51, %c2, %c0_52] : memref<18x18x32xf32, #tpu.memory_space<vmem>>, vector<16x16x32xf32>
    %64 = vector.shape_cast %63 : vector<16x16x32xf32> to vector<256x32xf32>
    %c0_53 = arith.constant 0 : index
    %c2_54 = arith.constant 2 : index
    %c0_55 = arith.constant 0 : index
    %c0_56 = arith.constant 0 : index
    %65 = vector.load %arg6[%c0_53, %c2_54, %c0_55, %c0_56] : memref<3x3x32x32xf32, #tpu.memory_space<vmem>>, vector<1x1x32x32xf32>
    %66 = vector.shape_cast %65 : vector<1x1x32x32xf32> to vector<32x32xf32>
    %cst_57 = arith.constant dense<0.000000e+00> : vector<256x32xf32>
    %67 = tpu.matmul %64, %66, %cst_57 {dimension_numbers = #tpu.dot_dimension_numbers<[1], [0], [0], [1], [0, 0, 1, 1], [], []>} : vector<256x32xf32>, vector<32x32xf32>, vector<256x32xf32> -> vector<256x32xf32>
    %68 = arith.addf %62, %67 : vector<256x32xf32>
    %c1_58 = arith.constant 1 : index
    %c0_59 = arith.constant 0 : index
    %c0_60 = arith.constant 0 : index
    %69 = vector.load %arg18[%c1_58, %c0_59, %c0_60] : memref<18x18x32xf32, #tpu.memory_space<vmem>>, vector<16x16x32xf32>
    %70 = vector.shape_cast %69 : vector<16x16x32xf32> to vector<256x32xf32>
    %c1_61 = arith.constant 1 : index
    %c0_62 = arith.constant 0 : index
    %c0_63 = arith.constant 0 : index
    %c0_64 = arith.constant 0 : index
    %71 = vector.load %arg6[%c1_61, %c0_62, %c0_63, %c0_64] : memref<3x3x32x32xf32, #tpu.memory_space<vmem>>, vector<1x1x32x32xf32>
    %72 = vector.shape_cast %71 : vector<1x1x32x32xf32> to vector<32x32xf32>
    %cst_65 = arith.constant dense<0.000000e+00> : vector<256x32xf32>
    %73 = tpu.matmul %70, %72, %cst_65 {dimension_numbers = #tpu.dot_dimension_numbers<[1], [0], [0], [1], [0, 0, 1, 1], [], []>} : vector<256x32xf32>, vector<32x32xf32>, vector<256x32xf32> -> vector<256x32xf32>
    %74 = arith.addf %68, %73 : vector<256x32xf32>
    %c1_66 = arith.constant 1 : index
    %c1_67 = arith.constant 1 : index
    %c0_68 = arith.constant 0 : index
    %75 = vector.load %arg18[%c1_66, %c1_67, %c0_68] : memref<18x18x32xf32, #tpu.memory_space<vmem>>, vector<16x16x32xf32>
    %76 = vector.shape_cast %75 : vector<16x16x32xf32> to vector<256x32xf32>
    %c1_69 = arith.constant 1 : index
    %c1_70 = arith.constant 1 : index
    %c0_71 = arith.constant 0 : index
    %c0_72 = arith.constant 0 : index
    %77 = vector.load %arg6[%c1_69, %c1_70, %c0_71, %c0_72] : memref<3x3x32x32xf32, #tpu.memory_space<vmem>>, vector<1x1x32x32xf32>
    %78 = vector.shape_cast %77 : vector<1x1x32x32xf32> to vector<32x32xf32>
    %cst_73 = arith.constant dense<0.000000e+00> : vector<256x32xf32>
    %79 = tpu.matmul %76, %78, %cst_73 {dimension_numbers = #tpu.dot_dimension_numbers<[1], [0], [0], [1], [0, 0, 1, 1], [], []>} : vector<256x32xf32>, vector<32x32xf32>, vector<256x32xf32> -> vector<256x32xf32>
    %80 = arith.addf %74, %79 : vector<256x32xf32>
    %c1_74 = arith.constant 1 : index
    %c2_75 = arith.constant 2 : index
    %c0_76 = arith.constant 0 : index
    %81 = vector.load %arg18[%c1_74, %c2_75, %c0_76] : memref<18x18x32xf32, #tpu.memory_space<vmem>>, vector<16x16x32xf32>
    %82 = vector.shape_cast %81 : vector<16x16x32xf32> to vector<256x32xf32>
    %c1_77 = arith.constant 1 : index
    %c2_78 = arith.constant 2 : index
    %c0_79 = arith.constant 0 : index
    %c0_80 = arith.constant 0 : index
    %83 = vector.load %arg6[%c1_77, %c2_78, %c0_79, %c0_80] : memref<3x3x32x32xf32, #tpu.memory_space<vmem>>, vector<1x1x32x32xf32>
    %84 = vector.shape_cast %83 : vector<1x1x32x32xf32> to vector<32x32xf32>
    %cst_81 = arith.constant dense<0.000000e+00> : vector<256x32xf32>
    %85 = tpu.matmul %82, %84, %cst_81 {dimension_numbers = #tpu.dot_dimension_numbers<[1], [0], [0], [1], [0, 0, 1, 1], [], []>} : vector<256x32xf32>, vector<32x32xf32>, vector<256x32xf32> -> vector<256x32xf32>
    %86 = arith.addf %80, %85 : vector<256x32xf32>
    %c2_82 = arith.constant 2 : index
    %c0_83 = arith.constant 0 : index
    %c0_84 = arith.constant 0 : index
    %87 = vector.load %arg18[%c2_82, %c0_83, %c0_84] : memref<18x18x32xf32, #tpu.memory_space<vmem>>, vector<16x16x32xf32>
    %88 = vector.shape_cast %87 : vector<16x16x32xf32> to vector<256x32xf32>
    %c2_85 = arith.constant 2 : index
    %c0_86 = arith.constant 0 : index
    %c0_87 = arith.constant 0 : index
    %c0_88 = arith.constant 0 : index
    %89 = vector.load %arg6[%c2_85, %c0_86, %c0_87, %c0_88] : memref<3x3x32x32xf32, #tpu.memory_space<vmem>>, vector<1x1x32x32xf32>
    %90 = vector.shape_cast %89 : vector<1x1x32x32xf32> to vector<32x32xf32>
    %cst_89 = arith.constant dense<0.000000e+00> : vector<256x32xf32>
    %91 = tpu.matmul %88, %90, %cst_89 {dimension_numbers = #tpu.dot_dimension_numbers<[1], [0], [0], [1], [0, 0, 1, 1], [], []>} : vector<256x32xf32>, vector<32x32xf32>, vector<256x32xf32> -> vector<256x32xf32>
    %92 = arith.addf %86, %91 : vector<256x32xf32>
    %c2_90 = arith.constant 2 : index
    %c1_91 = arith.constant 1 : index
    %c0_92 = arith.constant 0 : index
    %93 = vector.load %arg18[%c2_90, %c1_91, %c0_92] : memref<18x18x32xf32, #tpu.memory_space<vmem>>, vector<16x16x32xf32>
    %94 = vector.shape_cast %93 : vector<16x16x32xf32> to vector<256x32xf32>
    %c2_93 = arith.constant 2 : index
    %c1_94 = arith.constant 1 : index
    %c0_95 = arith.constant 0 : index
    %c0_96 = arith.constant 0 : index
    %95 = vector.load %arg6[%c2_93, %c1_94, %c0_95, %c0_96] : memref<3x3x32x32xf32, #tpu.memory_space<vmem>>, vector<1x1x32x32xf32>
    %96 = vector.shape_cast %95 : vector<1x1x32x32xf32> to vector<32x32xf32>
    %cst_97 = arith.constant dense<0.000000e+00> : vector<256x32xf32>
    %97 = tpu.matmul %94, %96, %cst_97 {dimension_numbers = #tpu.dot_dimension_numbers<[1], [0], [0], [1], [0, 0, 1, 1], [], []>} : vector<256x32xf32>, vector<32x32xf32>, vector<256x32xf32> -> vector<256x32xf32>
    %98 = arith.addf %92, %97 : vector<256x32xf32>
    %c2_98 = arith.constant 2 : index
    %c2_99 = arith.constant 2 : index
    %c0_100 = arith.constant 0 : index
    %99 = vector.load %arg18[%c2_98, %c2_99, %c0_100] : memref<18x18x32xf32, #tpu.memory_space<vmem>>, vector<16x16x32xf32>
    %100 = vector.shape_cast %99 : vector<16x16x32xf32> to vector<256x32xf32>
    %c2_101 = arith.constant 2 : index
    %c2_102 = arith.constant 2 : index
    %c0_103 = arith.constant 0 : index
    %c0_104 = arith.constant 0 : index
    %101 = vector.load %arg6[%c2_101, %c2_102, %c0_103, %c0_104] : memref<3x3x32x32xf32, #tpu.memory_space<vmem>>, vector<1x1x32x32xf32>
    %102 = vector.shape_cast %101 : vector<1x1x32x32xf32> to vector<32x32xf32>
    %cst_105 = arith.constant dense<0.000000e+00> : vector<256x32xf32>
    %103 = tpu.matmul %100, %102, %cst_105 {dimension_numbers = #tpu.dot_dimension_numbers<[1], [0], [0], [1], [0, 0, 1, 1], [], []>} : vector<256x32xf32>, vector<32x32xf32>, vector<256x32xf32> -> vector<256x32xf32>
    %104 = arith.addf %98, %103 : vector<256x32xf32>
    %c0_106 = arith.constant 0 : index
    %c0_107 = arith.constant 0 : index
    %c0_108 = arith.constant 0 : index
    %105 = vector.load %arg14[%c0_106, %c0_107, %c0_108] : memref<1x1x64xf32, #tpu.memory_space<vmem>>, vector<1x1x64xf32>
    %106 = vector.shape_cast %105 : vector<1x1x64xf32> to vector<1x64xf32>
    %cst_109 = arith.constant 0.000000e+00 : f32
    %107 = vector.broadcast %cst_109 : f32 to vector<1x64xf32>
    %108 = arith.subf %107, %106 : vector<1x64xf32>
    %109 = math.exp %108 : vector<1x64xf32>
    %cst_110 = arith.constant 1.000000e+00 : f32
    %110 = vector.broadcast %cst_110 : f32 to vector<1x64xf32>
    %111 = arith.addf %110, %109 : vector<1x64xf32>
    %cst_111 = arith.constant 1.000000e+00 : f32
    %112 = vector.broadcast %cst_111 : f32 to vector<1x64xf32>
    %113 = arith.divf %112, %111 : vector<1x64xf32>
    %114 = arith.mulf %106, %113 : vector<1x64xf32>
    %c0_112 = arith.constant 0 : index
    %c0_113 = arith.constant 0 : index
    %115 = vector.load %arg15[%c0_112, %c0_113] : memref<64x32xf32, #tpu.memory_space<vmem>>, vector<64x32xf32>
    %cst_114 = arith.constant dense<0.000000e+00> : vector<1x32xf32>
    %116 = tpu.matmul %114, %115, %cst_114 {dimension_numbers = #tpu.dot_dimension_numbers<[1], [0], [0], [1], [0, 0, 1, 1], [], []>} : vector<1x64xf32>, vector<64x32xf32>, vector<1x32xf32> -> vector<1x32xf32>
    %c0_115 = arith.constant 0 : index
    %c0_116 = arith.constant 0 : index
    %117 = vector.load %arg16[%c0_115, %c0_116] : memref<1x32xf32, #tpu.memory_space<vmem>>, vector<1x32xf32>
    %118 = arith.addf %116, %117 : vector<1x32xf32>
    %119 = vector.broadcast %118 : vector<1x32xf32> to vector<256x32xf32>
    %120 = arith.addf %104, %119 : vector<256x32xf32>
    %c0_117 = arith.constant 0 : index
    %c0_118 = arith.constant 0 : index
    %121 = vector.load %arg10[%c0_117, %c0_118] : memref<32x32xf32, #tpu.memory_space<vmem>>, vector<32x32xf32>
    %c0_119 = arith.constant 0 : index
    %c0_120 = arith.constant 0 : index
    %122 = vector.load %arg11[%c0_119, %c0_120] : memref<32x32xf32, #tpu.memory_space<vmem>>, vector<32x32xf32>
    %cst_121 = arith.constant dense<0.000000e+00> : vector<32xf32>
    %123 = vector.multi_reduction <add>, %120, %cst_121 [0] : vector<256x32xf32> to vector<32xf32>
    %124 = vector.shape_cast %123 : vector<32xf32> to vector<1x32xf32>
    %125 = arith.mulf %120, %120 : vector<256x32xf32>
    %cst_122 = arith.constant dense<0.000000e+00> : vector<32xf32>
    %126 = vector.multi_reduction <add>, %125, %cst_122 [0] : vector<256x32xf32> to vector<32xf32>
    %127 = vector.shape_cast %126 : vector<32xf32> to vector<1x32xf32>
    %cst_123 = arith.constant dense<0.000000e+00> : vector<1x32xf32>
    %128 = tpu.matmul %124, %121, %cst_123 {dimension_numbers = #tpu.dot_dimension_numbers<[1], [0], [0], [1], [0, 0, 1, 1], [], []>} : vector<1x32xf32>, vector<32x32xf32>, vector<1x32xf32> -> vector<1x32xf32>
    %cst_124 = arith.constant 3.906250e-03 : f32
    %129 = vector.broadcast %cst_124 : f32 to vector<1x32xf32>
    %130 = arith.mulf %128, %129 : vector<1x32xf32>
    %cst_125 = arith.constant dense<0.000000e+00> : vector<1x32xf32>
    %131 = tpu.matmul %127, %121, %cst_125 {dimension_numbers = #tpu.dot_dimension_numbers<[1], [0], [0], [1], [0, 0, 1, 1], [], []>} : vector<1x32xf32>, vector<32x32xf32>, vector<1x32xf32> -> vector<1x32xf32>
    %cst_126 = arith.constant 3.906250e-03 : f32
    %132 = vector.broadcast %cst_126 : f32 to vector<1x32xf32>
    %133 = arith.mulf %131, %132 : vector<1x32xf32>
    %134 = arith.mulf %130, %130 : vector<1x32xf32>
    %135 = arith.subf %133, %134 : vector<1x32xf32>
    %cst_127 = arith.constant 9.99999997E-7 : f32
    %136 = vector.broadcast %cst_127 : f32 to vector<1x32xf32>
    %137 = arith.addf %135, %136 : vector<1x32xf32>
    %138 = math.rsqrt %137 : vector<1x32xf32>
    %cst_128 = arith.constant dense<0.000000e+00> : vector<1x32xf32>
    %139 = tpu.matmul %130, %122, %cst_128 {dimension_numbers = #tpu.dot_dimension_numbers<[1], [0], [0], [1], [0, 0, 1, 1], [], []>} : vector<1x32xf32>, vector<32x32xf32>, vector<1x32xf32> -> vector<1x32xf32>
    %cst_129 = arith.constant dense<0.000000e+00> : vector<1x32xf32>
    %140 = tpu.matmul %138, %122, %cst_129 {dimension_numbers = #tpu.dot_dimension_numbers<[1], [0], [0], [1], [0, 0, 1, 1], [], []>} : vector<1x32xf32>, vector<32x32xf32>, vector<1x32xf32> -> vector<1x32xf32>
    %141 = vector.broadcast %139 : vector<1x32xf32> to vector<256x32xf32>
    %142 = arith.subf %120, %141 : vector<256x32xf32>
    %143 = vector.broadcast %140 : vector<1x32xf32> to vector<256x32xf32>
    %144 = arith.mulf %142, %143 : vector<256x32xf32>
    %c0_130 = arith.constant 0 : index
    %c0_131 = arith.constant 0 : index
    %145 = vector.load %arg8[%c0_130, %c0_131] : memref<1x32xf32, #tpu.memory_space<vmem>>, vector<1x32xf32>
    %146 = vector.broadcast %145 : vector<1x32xf32> to vector<256x32xf32>
    %147 = arith.mulf %144, %146 : vector<256x32xf32>
    %c0_132 = arith.constant 0 : index
    %c0_133 = arith.constant 0 : index
    %148 = vector.load %arg9[%c0_132, %c0_133] : memref<1x32xf32, #tpu.memory_space<vmem>>, vector<1x32xf32>
    %149 = vector.broadcast %148 : vector<1x32xf32> to vector<256x32xf32>
    %150 = arith.addf %147, %149 : vector<256x32xf32>
    %cst_134 = arith.constant 0.000000e+00 : f32
    %151 = vector.broadcast %cst_134 : f32 to vector<256x32xf32>
    %152 = arith.subf %151, %150 : vector<256x32xf32>
    %153 = math.exp %152 : vector<256x32xf32>
    %cst_135 = arith.constant 1.000000e+00 : f32
    %154 = vector.broadcast %cst_135 : f32 to vector<256x32xf32>
    %155 = arith.addf %154, %153 : vector<256x32xf32>
    %cst_136 = arith.constant 1.000000e+00 : f32
    %156 = vector.broadcast %cst_136 : f32 to vector<256x32xf32>
    %157 = arith.divf %156, %155 : vector<256x32xf32>
    %158 = arith.mulf %150, %157 : vector<256x32xf32>
    %159 = vector.shape_cast %158 : vector<256x32xf32> to vector<16x16x32xf32>
    %c1_137 = arith.constant 1 : index
    %c1_138 = arith.constant 1 : index
    %c0_139 = arith.constant 0 : index
    %160 = vector.load %arg19[%c1_137, %c1_138, %c0_139] : memref<18x18x32xf32, #tpu.memory_space<vmem>>, vector<16x16x32xf32>
    tpu.vector_store %arg19[%c1_137, %c1_138, %c0_139], %159 {strides = array<i32>} : memref<18x18x32xf32, #tpu.memory_space<vmem>>, vector<16x16x32xf32>,
    %cst_140 = arith.constant 0.000000e+00 : f32
    %161 = vector.broadcast %cst_140 : f32 to vector<256x32xf32>
    %c0_141 = arith.constant 0 : index
    %c0_142 = arith.constant 0 : index
    %162 = vector.load %arg13[%c0_141, %c0_142] : memref<1x32xf32, #tpu.memory_space<vmem>>, vector<1x32xf32>
    %163 = vector.broadcast %162 : vector<1x32xf32> to vector<256x32xf32>
    %164 = arith.addf %161, %163 : vector<256x32xf32>
    %c0_143 = arith.constant 0 : index
    %c0_144 = arith.constant 0 : index
    %c0_145 = arith.constant 0 : index
    %165 = vector.load %arg19[%c0_143, %c0_144, %c0_145] : memref<18x18x32xf32, #tpu.memory_space<vmem>>, vector<16x16x32xf32>
    %166 = vector.shape_cast %165 : vector<16x16x32xf32> to vector<256x32xf32>
    %c0_146 = arith.constant 0 : index
    %c0_147 = arith.constant 0 : index
    %c0_148 = arith.constant 0 : index
    %c0_149 = arith.constant 0 : index
    %167 = vector.load %arg12[%c0_146, %c0_147, %c0_148, %c0_149] : memref<3x3x32x32xf32, #tpu.memory_space<vmem>>, vector<1x1x32x32xf32>
    %168 = vector.shape_cast %167 : vector<1x1x32x32xf32> to vector<32x32xf32>
    %cst_150 = arith.constant dense<0.000000e+00> : vector<256x32xf32>
    %169 = tpu.matmul %166, %168, %cst_150 {dimension_numbers = #tpu.dot_dimension_numbers<[1], [0], [0], [1], [0, 0, 1, 1], [], []>} : vector<256x32xf32>, vector<32x32xf32>, vector<256x32xf32> -> vector<256x32xf32>
    %170 = arith.addf %164, %169 : vector<256x32xf32>
    %c0_151 = arith.constant 0 : index
    %c1_152 = arith.constant 1 : index
    %c0_153 = arith.constant 0 : index
    %171 = vector.load %arg19[%c0_151, %c1_152, %c0_153] : memref<18x18x32xf32, #tpu.memory_space<vmem>>, vector<16x16x32xf32>
    %172 = vector.shape_cast %171 : vector<16x16x32xf32> to vector<256x32xf32>
    %c0_154 = arith.constant 0 : index
    %c1_155 = arith.constant 1 : index
    %c0_156 = arith.constant 0 : index
    %c0_157 = arith.constant 0 : index
    %173 = vector.load %arg12[%c0_154, %c1_155, %c0_156, %c0_157] : memref<3x3x32x32xf32, #tpu.memory_space<vmem>>, vector<1x1x32x32xf32>
    %174 = vector.shape_cast %173 : vector<1x1x32x32xf32> to vector<32x32xf32>
    %cst_158 = arith.constant dense<0.000000e+00> : vector<256x32xf32>
    %175 = tpu.matmul %172, %174, %cst_158 {dimension_numbers = #tpu.dot_dimension_numbers<[1], [0], [0], [1], [0, 0, 1, 1], [], []>} : vector<256x32xf32>, vector<32x32xf32>, vector<256x32xf32> -> vector<256x32xf32>
    %176 = arith.addf %170, %175 : vector<256x32xf32>
    %c0_159 = arith.constant 0 : index
    %c2_160 = arith.constant 2 : index
    %c0_161 = arith.constant 0 : index
    %177 = vector.load %arg19[%c0_159, %c2_160, %c0_161] : memref<18x18x32xf32, #tpu.memory_space<vmem>>, vector<16x16x32xf32>
    %178 = vector.shape_cast %177 : vector<16x16x32xf32> to vector<256x32xf32>
    %c0_162 = arith.constant 0 : index
    %c2_163 = arith.constant 2 : index
    %c0_164 = arith.constant 0 : index
    %c0_165 = arith.constant 0 : index
    %179 = vector.load %arg12[%c0_162, %c2_163, %c0_164, %c0_165] : memref<3x3x32x32xf32, #tpu.memory_space<vmem>>, vector<1x1x32x32xf32>
    %180 = vector.shape_cast %179 : vector<1x1x32x32xf32> to vector<32x32xf32>
    %cst_166 = arith.constant dense<0.000000e+00> : vector<256x32xf32>
    %181 = tpu.matmul %178, %180, %cst_166 {dimension_numbers = #tpu.dot_dimension_numbers<[1], [0], [0], [1], [0, 0, 1, 1], [], []>} : vector<256x32xf32>, vector<32x32xf32>, vector<256x32xf32> -> vector<256x32xf32>
    %182 = arith.addf %176, %181 : vector<256x32xf32>
    %c1_167 = arith.constant 1 : index
    %c0_168 = arith.constant 0 : index
    %c0_169 = arith.constant 0 : index
    %183 = vector.load %arg19[%c1_167, %c0_168, %c0_169] : memref<18x18x32xf32, #tpu.memory_space<vmem>>, vector<16x16x32xf32>
    %184 = vector.shape_cast %183 : vector<16x16x32xf32> to vector<256x32xf32>
    %c1_170 = arith.constant 1 : index
    %c0_171 = arith.constant 0 : index
    %c0_172 = arith.constant 0 : index
    %c0_173 = arith.constant 0 : index
    %185 = vector.load %arg12[%c1_170, %c0_171, %c0_172, %c0_173] : memref<3x3x32x32xf32, #tpu.memory_space<vmem>>, vector<1x1x32x32xf32>
    %186 = vector.shape_cast %185 : vector<1x1x32x32xf32> to vector<32x32xf32>
    %cst_174 = arith.constant dense<0.000000e+00> : vector<256x32xf32>
    %187 = tpu.matmul %184, %186, %cst_174 {dimension_numbers = #tpu.dot_dimension_numbers<[1], [0], [0], [1], [0, 0, 1, 1], [], []>} : vector<256x32xf32>, vector<32x32xf32>, vector<256x32xf32> -> vector<256x32xf32>
    %188 = arith.addf %182, %187 : vector<256x32xf32>
    %c1_175 = arith.constant 1 : index
    %c1_176 = arith.constant 1 : index
    %c0_177 = arith.constant 0 : index
    %189 = vector.load %arg19[%c1_175, %c1_176, %c0_177] : memref<18x18x32xf32, #tpu.memory_space<vmem>>, vector<16x16x32xf32>
    %190 = vector.shape_cast %189 : vector<16x16x32xf32> to vector<256x32xf32>
    %c1_178 = arith.constant 1 : index
    %c1_179 = arith.constant 1 : index
    %c0_180 = arith.constant 0 : index
    %c0_181 = arith.constant 0 : index
    %191 = vector.load %arg12[%c1_178, %c1_179, %c0_180, %c0_181] : memref<3x3x32x32xf32, #tpu.memory_space<vmem>>, vector<1x1x32x32xf32>
    %192 = vector.shape_cast %191 : vector<1x1x32x32xf32> to vector<32x32xf32>
    %cst_182 = arith.constant dense<0.000000e+00> : vector<256x32xf32>
    %193 = tpu.matmul %190, %192, %cst_182 {dimension_numbers = #tpu.dot_dimension_numbers<[1], [0], [0], [1], [0, 0, 1, 1], [], []>} : vector<256x32xf32>, vector<32x32xf32>, vector<256x32xf32> -> vector<256x32xf32>
    %194 = arith.addf %188, %193 : vector<256x32xf32>
    %c1_183 = arith.constant 1 : index
    %c2_184 = arith.constant 2 : index
    %c0_185 = arith.constant 0 : index
    %195 = vector.load %arg19[%c1_183, %c2_184, %c0_185] : memref<18x18x32xf32, #tpu.memory_space<vmem>>, vector<16x16x32xf32>
    %196 = vector.shape_cast %195 : vector<16x16x32xf32> to vector<256x32xf32>
    %c1_186 = arith.constant 1 : index
    %c2_187 = arith.constant 2 : index
    %c0_188 = arith.constant 0 : index
    %c0_189 = arith.constant 0 : index
    %197 = vector.load %arg12[%c1_186, %c2_187, %c0_188, %c0_189] : memref<3x3x32x32xf32, #tpu.memory_space<vmem>>, vector<1x1x32x32xf32>
    %198 = vector.shape_cast %197 : vector<1x1x32x32xf32> to vector<32x32xf32>
    %cst_190 = arith.constant dense<0.000000e+00> : vector<256x32xf32>
    %199 = tpu.matmul %196, %198, %cst_190 {dimension_numbers = #tpu.dot_dimension_numbers<[1], [0], [0], [1], [0, 0, 1, 1], [], []>} : vector<256x32xf32>, vector<32x32xf32>, vector<256x32xf32> -> vector<256x32xf32>
    %200 = arith.addf %194, %199 : vector<256x32xf32>
    %c2_191 = arith.constant 2 : index
    %c0_192 = arith.constant 0 : index
    %c0_193 = arith.constant 0 : index
    %201 = vector.load %arg19[%c2_191, %c0_192, %c0_193] : memref<18x18x32xf32, #tpu.memory_space<vmem>>, vector<16x16x32xf32>
    %202 = vector.shape_cast %201 : vector<16x16x32xf32> to vector<256x32xf32>
    %c2_194 = arith.constant 2 : index
    %c0_195 = arith.constant 0 : index
    %c0_196 = arith.constant 0 : index
    %c0_197 = arith.constant 0 : index
    %203 = vector.load %arg12[%c2_194, %c0_195, %c0_196, %c0_197] : memref<3x3x32x32xf32, #tpu.memory_space<vmem>>, vector<1x1x32x32xf32>
    %204 = vector.shape_cast %203 : vector<1x1x32x32xf32> to vector<32x32xf32>
    %cst_198 = arith.constant dense<0.000000e+00> : vector<256x32xf32>
    %205 = tpu.matmul %202, %204, %cst_198 {dimension_numbers = #tpu.dot_dimension_numbers<[1], [0], [0], [1], [0, 0, 1, 1], [], []>} : vector<256x32xf32>, vector<32x32xf32>, vector<256x32xf32> -> vector<256x32xf32>
    %206 = arith.addf %200, %205 : vector<256x32xf32>
    %c2_199 = arith.constant 2 : index
    %c1_200 = arith.constant 1 : index
    %c0_201 = arith.constant 0 : index
    %207 = vector.load %arg19[%c2_199, %c1_200, %c0_201] : memref<18x18x32xf32, #tpu.memory_space<vmem>>, vector<16x16x32xf32>
    %208 = vector.shape_cast %207 : vector<16x16x32xf32> to vector<256x32xf32>
    %c2_202 = arith.constant 2 : index
    %c1_203 = arith.constant 1 : index
    %c0_204 = arith.constant 0 : index
    %c0_205 = arith.constant 0 : index
    %209 = vector.load %arg12[%c2_202, %c1_203, %c0_204, %c0_205] : memref<3x3x32x32xf32, #tpu.memory_space<vmem>>, vector<1x1x32x32xf32>
    %210 = vector.shape_cast %209 : vector<1x1x32x32xf32> to vector<32x32xf32>
    %cst_206 = arith.constant dense<0.000000e+00> : vector<256x32xf32>
    %211 = tpu.matmul %208, %210, %cst_206 {dimension_numbers = #tpu.dot_dimension_numbers<[1], [0], [0], [1], [0, 0, 1, 1], [], []>} : vector<256x32xf32>, vector<32x32xf32>, vector<256x32xf32> -> vector<256x32xf32>
    %212 = arith.addf %206, %211 : vector<256x32xf32>
    %c2_207 = arith.constant 2 : index
    %c2_208 = arith.constant 2 : index
    %c0_209 = arith.constant 0 : index
    %213 = vector.load %arg19[%c2_207, %c2_208, %c0_209] : memref<18x18x32xf32, #tpu.memory_space<vmem>>, vector<16x16x32xf32>
    %214 = vector.shape_cast %213 : vector<16x16x32xf32> to vector<256x32xf32>
    %c2_210 = arith.constant 2 : index
    %c2_211 = arith.constant 2 : index
    %c0_212 = arith.constant 0 : index
    %c0_213 = arith.constant 0 : index
    %215 = vector.load %arg12[%c2_210, %c2_211, %c0_212, %c0_213] : memref<3x3x32x32xf32, #tpu.memory_space<vmem>>, vector<1x1x32x32xf32>
    %216 = vector.shape_cast %215 : vector<1x1x32x32xf32> to vector<32x32xf32>
    %cst_214 = arith.constant dense<0.000000e+00> : vector<256x32xf32>
    %217 = tpu.matmul %214, %216, %cst_214 {dimension_numbers = #tpu.dot_dimension_numbers<[1], [0], [0], [1], [0, 0, 1, 1], [], []>} : vector<256x32xf32>, vector<32x32xf32>, vector<256x32xf32> -> vector<256x32xf32>
    %218 = arith.addf %212, %217 : vector<256x32xf32>
    %219 = arith.addf %6, %218 : vector<256x32xf32>
    %220 = vector.shape_cast %219 : vector<256x32xf32> to vector<16x16x32xf32>
    %c0_215 = arith.constant 0 : index
    %c0_216 = arith.constant 0 : index
    %c0_217 = arith.constant 0 : index
    %c0_218 = arith.constant 0 : index
    %221 = vector.load %arg17[%c0_215, %c0_216, %c0_217, %c0_218] : memref<1x16x16x32xf32, #tpu.memory_space<vmem>>, vector<1x16x16x32xf32>
    %222 = vector.shape_cast %221 : vector<1x16x16x32xf32> to vector<16x16x32xf32>
    %223 = vector.shape_cast %220 : vector<16x16x32xf32> to vector<1x16x16x32xf32>
    tpu.vector_store %arg17[%c0_215, %c0_216, %c0_217, %c0_218], %223 {strides = array<i32>} : memref<1x16x16x32xf32, #tpu.memory_space<vmem>>, vector<1x16x16x32xf32>,
    return
  }
  func.func @transform_0(%arg0: i32) -> (i32, i32, i32, i32) {
    %c0_i32 = arith.constant 0 : i32
    %c0_i32_0 = arith.constant 0 : i32
    %c0_i32_1 = arith.constant 0 : i32
    %c0_i32_2 = arith.constant 0 : i32
    return %arg0, %c0_i32, %c0_i32_0, %c0_i32_1 : i32, i32, i32, i32
  }
  func.func @transform_1(%arg0: i32) -> (i32, i32) {
    %c0_i32 = arith.constant 0 : i32
    %c0_i32_0 = arith.constant 0 : i32
    %c0_i32_1 = arith.constant 0 : i32
    return %c0_i32, %c0_i32_0 : i32, i32
  }
  func.func @transform_2(%arg0: i32) -> (i32, i32) {
    %c0_i32 = arith.constant 0 : i32
    %c0_i32_0 = arith.constant 0 : i32
    %c0_i32_1 = arith.constant 0 : i32
    return %c0_i32, %c0_i32_0 : i32, i32
  }
  func.func @transform_3(%arg0: i32) -> (i32, i32) {
    %c0_i32 = arith.constant 0 : i32
    %c0_i32_0 = arith.constant 0 : i32
    %c0_i32_1 = arith.constant 0 : i32
    return %c0_i32, %c0_i32_0 : i32, i32
  }
  func.func @transform_4(%arg0: i32) -> (i32, i32) {
    %c0_i32 = arith.constant 0 : i32
    %c0_i32_0 = arith.constant 0 : i32
    %c0_i32_1 = arith.constant 0 : i32
    return %c0_i32, %c0_i32_0 : i32, i32
  }
  func.func @transform_5(%arg0: i32) -> (i32, i32, i32, i32) {
    %c0_i32 = arith.constant 0 : i32
    %c0_i32_0 = arith.constant 0 : i32
    %c0_i32_1 = arith.constant 0 : i32
    %c0_i32_2 = arith.constant 0 : i32
    %c0_i32_3 = arith.constant 0 : i32
    return %c0_i32, %c0_i32_0, %c0_i32_1, %c0_i32_2 : i32, i32, i32, i32
  }
  func.func @transform_6(%arg0: i32) -> (i32, i32) {
    %c0_i32 = arith.constant 0 : i32
    %c0_i32_0 = arith.constant 0 : i32
    %c0_i32_1 = arith.constant 0 : i32
    return %c0_i32, %c0_i32_0 : i32, i32
  }
  func.func @transform_7(%arg0: i32) -> (i32, i32) {
    %c0_i32 = arith.constant 0 : i32
    %c0_i32_0 = arith.constant 0 : i32
    %c0_i32_1 = arith.constant 0 : i32
    return %c0_i32, %c0_i32_0 : i32, i32
  }
  func.func @transform_8(%arg0: i32) -> (i32, i32) {
    %c0_i32 = arith.constant 0 : i32
    %c0_i32_0 = arith.constant 0 : i32
    %c0_i32_1 = arith.constant 0 : i32
    return %c0_i32, %c0_i32_0 : i32, i32
  }
  func.func @transform_9(%arg0: i32) -> (i32, i32) {
    %c0_i32 = arith.constant 0 : i32
    %c0_i32_0 = arith.constant 0 : i32
    %c0_i32_1 = arith.constant 0 : i32
    return %c0_i32, %c0_i32_0 : i32, i32
  }
  func.func @transform_10(%arg0: i32) -> (i32, i32) {
    %c0_i32 = arith.constant 0 : i32
    %c0_i32_0 = arith.constant 0 : i32
    %c0_i32_1 = arith.constant 0 : i32
    return %c0_i32, %c0_i32_0 : i32, i32
  }
  func.func @transform_11(%arg0: i32) -> (i32, i32, i32, i32) {
    %c0_i32 = arith.constant 0 : i32
    %c0_i32_0 = arith.constant 0 : i32
    %c0_i32_1 = arith.constant 0 : i32
    %c0_i32_2 = arith.constant 0 : i32
    %c0_i32_3 = arith.constant 0 : i32
    return %c0_i32, %c0_i32_0, %c0_i32_1, %c0_i32_2 : i32, i32, i32, i32
  }
  func.func @transform_12(%arg0: i32) -> (i32, i32) {
    %c0_i32 = arith.constant 0 : i32
    %c0_i32_0 = arith.constant 0 : i32
    %c0_i32_1 = arith.constant 0 : i32
    return %c0_i32, %c0_i32_0 : i32, i32
  }
  func.func @transform_13(%arg0: i32) -> (i32, i32, i32) {
    %c0_i32 = arith.constant 0 : i32
    %c0_i32_0 = arith.constant 0 : i32
    %c0_i32_1 = arith.constant 0 : i32
    return %arg0, %c0_i32, %c0_i32_0 : i32, i32, i32
  }
  func.func @transform_14(%arg0: i32) -> (i32, i32) {
    %c0_i32 = arith.constant 0 : i32
    %c0_i32_0 = arith.constant 0 : i32
    %c0_i32_1 = arith.constant 0 : i32
    return %c0_i32, %c0_i32_0 : i32, i32
  }
  func.func @transform_15(%arg0: i32) -> (i32, i32) {
    %c0_i32 = arith.constant 0 : i32
    %c0_i32_0 = arith.constant 0 : i32
    %c0_i32_1 = arith.constant 0 : i32
    return %c0_i32, %c0_i32_0 : i32, i32
  }
  func.func @transform_16(%arg0: i32) -> (i32, i32, i32, i32) {
    %c0_i32 = arith.constant 0 : i32
    %c0_i32_0 = arith.constant 0 : i32
    %c0_i32_1 = arith.constant 0 : i32
    %c0_i32_2 = arith.constant 0 : i32
    return %arg0, %c0_i32, %c0_i32_0, %c0_i32_1 : i32, i32, i32, i32
  }
}

</mosaic_0001>

<bundles_post_ra>
// kernel: resnet_block_forward.1
= control target key start
LH: loop header
LB: loop body
LE: loop exit
PB: predicated region body
PF: predicated region fallthrough
CT: control target
= control target key end

     0   :  { %s17241_s0 = inlined_call_operand.vmem [shape: f32[2,16,16,32], index: 0, kind: input, shape index: {}]   ;;  %s17242_s1 = inlined_call_operand.vmem [shape: f32[1,32], index: 1, kind: input, shape index: {}]   ;;  %s17243_s2 = inlined_call_operand.vmem [shape: f32[1,32], index: 2, kind: input, shape index: {}]   ;;  %s17244_s3 = inlined_call_operand.vmem [shape: f32[32,32], index: 3, kind: input, shape index: {}, may-alias: {3,9}]   ;;  %s17245_s4 = inlined_call_operand.vmem [shape: f32[32,32], index: 4, kind: input, shape index: {}, may-alias: {4,10}]   ;;  %s17246_s5 = inlined_call_operand.vmem [shape: f32[3,3,32,32], index: 5, kind: input, shape index: {}]   ;;  %s17247_s6 = inlined_call_operand.vmem [shape: f32[1,32], index: 6, kind: input, shape index: {}]   ;;  %s17248_s7 = inlined_call_operand.vmem [shape: f32[1,32], index: 7, kind: input, shape index: {}]   ;;  %s17249_s8 = inlined_call_operand.vmem [shape: f32[1,32], index: 8, kind: input, shape index: {}]   ;;  %s17250_s9 = inlined_call_operand.vmem [shape: f32[32,32], index: 9, kind: input, shape index: {}, may-alias: {3,9}]   ;;  %s17251_s10 = inlined_call_operand.vmem [shape: f32[32,32], index: 10, kind: input, shape index: {}, may-alias: {4,10}]   ;;  %s17252_s11 = inlined_call_operand.vmem [shape: f32[3,3,32,32], index: 11, kind: input, shape index: {}]   ;;  %s17253_s12 = inlined_call_operand.vmem [shape: f32[1,32], index: 12, kind: input, shape index: {}]   ;;  %s17254_s13 = inlined_call_operand.vmem [shape: f32[2,1,64], index: 13, kind: input, shape index: {}]   ;;  %s17255_s14 = inlined_call_operand.vmem [shape: f32[64,32], index: 14, kind: input, shape index: {}]   ;;  %s17256_s15 = inlined_call_operand.vmem [shape: f32[1,32], index: 15, kind: input, shape index: {}]   ;;  %s17257_s16 = inlined_call_operand.hbm [shape: f32[2,16,16,32], index: 16, kind: output, shape index: {}]  }
   0x1   :  { %17410 = sst [smem:[#allocation56_spill]] %s17241_s0 }
   0x2   :  { %17411 = sst [smem:[#allocation57_spill]] %s17244_s3 }
   0x3   :  { %17412 = sst [smem:[#allocation58_spill]] %s17245_s4 }
   0x4   :  { %21 = vsyncpa [#allocation5], 0 }
   0x5   :  { %23 = vsyncpa [#allocation5 + $0x1], 0  ;;  %s13514_s21 = smov 0   ;;  %s13516_s22 = smov 0  }
   0x6   :  { %s13518_s23 = smov 0   ;;  %s13520_s24 = smov 0  }
   0x7 LB: > { %17413 = sst [smem:[#allocation7_spill]] %s13417_s23  ;;  %s13535_s25 = sadd.s32 4294967295, %s13421_s24   ;;  %s13421_s24 = sphi %s13520_s24, %s17668_s24   ;;  %s13417_s23 = sphi %s13518_s23, %s17670_s23   ;;  %s13413_s22 = sphi %s13516_s22, %s17672_s22   ;;  %s13409_s21 = sphi %s13514_s21, %s17671_s21  }
   0x8   : > { %s9754_s26 = sadd.s32 4294967294, %s13421_s24   ;;  %s13539_s27 = sadd.s32 1, %s13421_s24  }
   0x9   : > { %17414 = sst [smem:[#allocation8_spill]] %s13539_s27  ;;  %s382_s28 = sadd.s32 1, %s13417_s23 }
   0xa   : > { %s379_s29 = ssub.s32 %s13421_s24, %s13539_s27  ;;  %p392_p0 = scmp.ne.s32.totalorder %s13417_s23, %s13413_s22 }
   0xb   : > { %p380_p1 = scmp.eq.s32.totalorder %s379_s29, 0  ;;  %p393_p2 = scmp.eq.s32.totalorder %s13535_s25, 1 }
   0xc   : > { %p398_p3 = scmp.ne.s32.totalorder %s13413_s22, %s13409_s21  ;;  %p399_p4 = scmp.eq.s32.totalorder %s9754_s26, 1 }
   0xd   : > { %s13550_s30 = scalar_select %p380_p1, %s13417_s23, %s382_s28  }
   0xe   : > { %p13552_p5 = por %p393_p2, %p392_p0  ;;  %p13556_p6 = por %p399_p4, %p398_p3 }
   0xf   : > { %17415 = sst [smem:[#allocation9_spill]] %s13550_s30  ;;  %p9757_p7 = scmp.ge.s32.totalorder %s13421_s24, 1 }
  0x10   : > { %p473_p8 = scmp.lt.s32.totalorder %s13421_s24, 3 }
  0x12   : > { %p474_p9 = pnand %p9757_p7, %p473_p8 }
  0x14   : > { %477 = sbr.rel (%p474_p9) target bundleno = 2750 (0xabe), region = 84 }
  0x1b   : > { %s17418_s3 = sld [smem:[#allocation57_spill]]  ;;  %v17263_v3 = vmov 0.0|0.0   ;;  %p526_p10 = scmp.lt.s32.totalorder %s13535_s25, 1  ;;  %vm534_vm0 = vcmask 261120   ;;  %vm13424_vm1 = vmmov 0   ;;  %v17261_v6 = vmov 0.0  }
  0x1c   : > { %12235 = vmatprep.subr.bf16.mxu0 %v17263_v3  ;;  %12241 = vmatprep.subr.bf16.mxu1 %v17263_v3  ;;  %535 = vst.msk [vmem:[#allocation2] sm:$0xff] %vm534_vm0, %v17261_v6  ;;  %536 = vst.msk [vmem:[#allocation2 + $0x8] sm:$0xff] %vm534_vm0, %v17261_v6  ;;  %s17419_s28 = sld [smem:[#allocation56_spill]]  ;;  %s17420_s4 = sld [smem:[#allocation58_spill]]  ;;  %vm537_vm2 = vcmask 254976   ;;  %vm5094_vm3 = vcmask 523264  }
  0x1d   : > { %11128 = vmatprep.mubr.msk.f32.mxu0 %vm13424_vm1, %v17261_v6  ;;  %539 = vst.msk [vmem:[#allocation2 + $0x18] sm:$0xff] %vm534_vm0, %v17261_v6  ;;  %540 = vst.msk [vmem:[#allocation2 + $0x20] sm:$0xff] %vm534_vm0, %v17261_v6  ;;  %11139 = vmatprep.mubr.msk.f32.mxu1 %vm13424_vm1, %v17261_v6  ;;  %s13738_s30 = scalar_select %p526_p10, %s13535_s25, 1 }
  0x1e   : > { %542 = vst.msk [vmem:[#allocation2 + $0x30] sm:$0xff] %vm534_vm0, %v17261_v6  ;;  %543 = vst.msk [vmem:[#allocation2 + $0x38] sm:$0xff] %vm534_vm0, %v17261_v6  ;;  %s523_s18 = sand.u32 1, %s13413_s22  }
  0x1f   : > { %545 = vst.msk [vmem:[#allocation2 + $0x48] sm:$0xff] %vm534_vm0, %v17261_v6  ;;  %546 = vst.msk [vmem:[#allocation2 + $0x50] sm:$0xff] %vm534_vm0, %v17261_v6  ;;  %s10421_s19 = sshll.u32 %s13738_s30, 8  ;;  %s533_s23 = scalar_lea.vmem %s17254_s13, %s13738_s30 }
  0x20   : > { %548 = vst.msk [vmem:[#allocation2 + $0x60] sm:$0xff] %vm534_vm0, %v17261_v6  ;;  %549 = vst.msk [vmem:[#allocation2 + $0x68] sm:$0xff] %vm534_vm0, %v17261_v6 }
  0x21   : > { %v676_v0 = vld [vmem:[%s17418_s3] sm:$0xff]  ;;  %v677_v1 = vld [vmem:[%s17418_s3 + $0x8] sm:$0xff]  ;;  %v13571_v2 = vld [vmem:[%s17418_s3 + $0x10] sm:$0xff]  ;;  %551 = vst.msk [vmem:[#allocation2 + $0x78] sm:$0xff] %vm534_vm0, %v17261_v6 }
  0x22   : > { %v13574_v4 = vpack.c.bf16 %v677_v1, %v676_v0  ;;  %v13580_v5 = vld [vmem:[%s17418_s3 + $0x18] sm:$0xff]  ;;  %552 = vst.msk [vmem:[#allocation2 + $0x80] sm:$0xff] %vm534_vm0, %v17261_v6  ;;  %554 = vst.msk [vmem:[#allocation2 + $0x90] sm:$0xff] %vm534_vm0, %v17261_v6  ;;  %s13746_s29 = scalar_lea.vmem %s17419_s28, %s10421_s19  ;;  %s9758_s3 = sshll.u32 %s523_s18, 8 }
  0x23   : > { %555 = vst.msk [vmem:[#allocation2 + $0x98] sm:$0xff] %vm534_vm0, %v17261_v6  ;;  %557 = vst.msk [vmem:[#allocation2 + $0xa8] sm:$0xff] %vm534_vm0, %v17261_v6  ;;  %v12239_v7 = vpack.c.bf16 %v13580_v5, %v13571_v2  ;;  %v13749_v8 = vld [vmem:[%s13746_s29] sm:$0xff]  ;;  %v13752_v9 = vld [vmem:[%s13746_s29 + $0x8] sm:$0xff]  ;;  %s13426_s28 = smov [#allocation4]  }
  0x24   : > { %558 = vst.msk [vmem:[#allocation2 + $0xb0] sm:$0xff] %vm534_vm0, %v17261_v6  ;;  %560 = vst.msk [vmem:[#allocation2 + $0xc0] sm:$0xff] %vm534_vm0, %v17261_v6  ;;  %12237 = vmatpush3.bf16.msra.mxu0 %v13574_v4  ;;  %12243 = vmatpush3.bf16.msra.mxu1 %v13574_v4  ;;  %v13755_v10 = vld [vmem:[%s13746_s29 + $0x10] sm:$0xff]  ;;  %v13758_v11 = vld [vmem:[%s13746_s29 + $0x18] sm:$0xff]  ;;  %v684_v12 = vsel %vm534_vm0, %v13749_v8, 0.0  ;;  %v685_v13 = vsel %vm534_vm0, %v13752_v9, 0.0  ;;  %v753_v37 = vmul.f32 %v13749_v8, %v13749_v8 }
  0x25   : > { %561 = vst.msk [vmem:[#allocation2 + $0xc8] sm:$0xff] %vm534_vm0, %v17261_v6  ;;  %563 = vst.msk [vmem:[#allocation2 + $0xd8] sm:$0xff] %vm534_vm0, %v17261_v6  ;;  %12238 = vmatprep.subr.bf16.mxu0 %v17263_v3  ;;  %12244 = vmatprep.subr.bf16.mxu1 %v17263_v3  ;;  %v687_v14 = vsel %vm534_vm0, %v13755_v10, 0.0  ;;  %v13769_v15 = vld [vmem:[%s13746_s29 + $0x20] sm:$0xff]  ;;  %v686_v16 = vadd.f32 %v685_v13, %v684_v12  ;;  %v689_v17 = vsel %vm534_vm0, %v13758_v11, 0.0  ;;  %v13774_v18 = vld [vmem:[%s13746_s29 + $0x28] sm:$0xff] }
  0x26   : > { %564 = vst.msk [vmem:[#allocation2 + $0xe0] sm:$0xff] %vm534_vm0, %v17261_v6  ;;  %566 = vst.msk [vmem:[#allocation2 + $0xf0] sm:$0xff] %vm534_vm0, %v17261_v6  ;;  %v691_v20 = vsel %vm534_vm0, %v13769_v15, 0.0  ;;  %v13779_v21 = vld [vmem:[%s13746_s29 + $0x30] sm:$0xff]  ;;  %v693_v23 = vsel %vm534_vm0, %v13774_v18, 0.0  ;;  %v13784_v24 = vld [vmem:[%s13746_s29 + $0x38] sm:$0xff]  ;;  %v754_v38 = vmul.f32 %v13752_v9, %v13752_v9  ;;  %v755_v39 = vmul.f32 %v13755_v10, %v13755_v10 }
  0x27   : > { %567 = vst.msk [vmem:[#allocation2 + $0xf8] sm:$0xff] %vm534_vm0, %v17261_v6  ;;  %569 = vst.msk [vmem:[#allocation2 + $0x108] sm:$0xff] %vm534_vm0, %v17261_v6  ;;  %v688_v19 = vadd.f32 %v687_v14, %v686_v16  ;;  %v695_v26 = vsel %vm534_vm0, %v13779_v21, 0.0  ;;  %v13789_v27 = vld [vmem:[%s13746_s29 + $0x40] sm:$0xff]  ;;  %v697_v29 = vsel %vm534_vm0, %v13784_v24, 0.0  ;;  %v13794_v30 = vld [vmem:[%s13746_s29 + $0x48] sm:$0xff]  ;;  %v756_v42 = vmul.f32 %v13758_v11, %v13758_v11 }
  0x28   : > { %570 = vst.msk [vmem:[#allocation2 + $0x110] sm:$0xff] %vm534_vm0, %v17261_v6  ;;  %572 = vst.msk [vmem:[#allocation2 + $0x120] sm:$0xff] %vm534_vm0, %v17261_v6  ;;  %12240 = vmatpush3.bf16.msra.mxu0 %v12239_v7  ;;  %12246 = vmatpush3.bf16.msra.mxu1 %v12239_v7  ;;  %v699_v32 = vsel %vm534_vm0, %v13789_v27, 0.0  ;;  %v13799_v33 = vld [vmem:[%s13746_s29 + $0x50] sm:$0xff]  ;;  %v13802_v35 = vld [vmem:[%s13746_s29 + $0x58] sm:$0xff]  ;;  %v701_v36 = vsel %vm534_vm0, %v13794_v30, 0.0  ;;  %v757_v46 = vmul.f32 %v13769_v15, %v13769_v15 }
  0x29   : > { %573 = vst.msk [vmem:[#allocation2 + $0x128] sm:$0xff] %vm534_vm0, %v17261_v6  ;;  %575 = vst.msk [vmem:[#allocation2 + $0x138] sm:$0xff] %vm534_vm0, %v17261_v6  ;;  %12247 = vmatprep.subr.bf16.mxu0 %v17263_v3  ;;  %12253 = vmatprep.subr.bf16.mxu1 %v17263_v3  ;;  %v690_v22 = vadd.f32 %v689_v17, %v688_v19  ;;  %v703_v41 = vsel %vm534_vm0, %v13799_v33, 0.0  ;;  %v13817_v43 = vld [vmem:[%s13746_s29 + $0x60] sm:$0xff]  ;;  %v705_v45 = vsel %vm534_vm0, %v13802_v35, 0.0  ;;  %v785_v47 = vsel %vm534_vm0, %v753_v37, 0.0 }
  0x2a   : > { %576 = vst.msk [vmem:[#allocation2 + $0x140] sm:$0xff] %vm534_vm0, %v17261_v6  ;;  %578 = vst.msk [vmem:[#allocation2 + $0x150] sm:$0xff] %vm534_vm0, %v17261_v6  ;;  %v786_v48 = vsel %vm534_vm0, %v754_v38, 0.0  ;;  %v788_v49 = vsel %vm534_vm0, %v755_v39, 0.0  ;;  %v13827_v50 = vld [vmem:[%s13746_s29 + $0x68] sm:$0xff]  ;;  %v707_v53 = vsel %vm534_vm0, %v13817_v43, 0.0  ;;  %v758_v54 = vmul.f32 %v13774_v18, %v13774_v18 }
  0x2b   : > { %579 = vst.msk [vmem:[#allocation2 + $0x158] sm:$0xff] %vm534_vm0, %v17261_v6  ;;  %581 = vst.msk [vmem:[#allocation2 + $0x168] sm:$0xff] %vm534_vm0, %v17261_v6  ;;  %v692_v25 = vadd.f32 %v691_v20, %v690_v22  ;;  %v787_v52 = vadd.f32 %v786_v48, %v785_v47  ;;  %v790_v55 = vsel %vm534_vm0, %v756_v42, 0.0  ;;  %v13835_v56 = vld [vmem:[%s13746_s29 + $0x70] sm:$0xff]  ;;  %v709_v59 = vsel %vm534_vm0, %v13827_v50, 0.0  ;;  %v13843_v62 = vld [vmem:[%s13746_s29 + $0x78] sm:$0xff] }
  0x2c   : > { %582 = vst.msk [vmem:[#allocation2 + $0x170] sm:$0xff] %vm534_vm0, %v17261_v6  ;;  %584 = vst.msk [vmem:[#allocation2 + $0x180] sm:$0xff] %vm534_vm0, %v17261_v6  ;;  %v759_v60 = vmul.f32 %v13779_v21, %v13779_v21  ;;  %v792_v61 = vsel %vm534_vm0, %v757_v46, 0.0  ;;  %v711_v1 = vsel %vm534_vm0, %v13835_v56, 0.0  ;;  %v760_v2 = vmul.f32 %v13784_v24, %v13784_v24  ;;  %v13851_v5 = vld [vmem:[%s13746_s29 + $0x80] sm:$0xff]  ;;  %v13859_v17 = vld [vmem:[%s13746_s29 + $0x88] sm:$0xff] }
  0x2d   : > { %585 = vst.msk [vmem:[#allocation2 + $0x188] sm:$0xff] %vm534_vm0, %v17261_v6  ;;  %587 = vst.msk [vmem:[#allocation2 + $0x198] sm:$0xff] %vm534_vm0, %v17261_v6  ;;  %v694_v28 = vadd.f32 %v693_v23, %v692_v25  ;;  %v789_v58 = vadd.f32 %v788_v49, %v787_v52  ;;  %v794_v4 = vsel %vm534_vm0, %v758_v54, 0.0  ;;  %v713_v13 = vsel %vm534_vm0, %v13843_v62, 0.0  ;;  %v13883_v42 = vld [vmem:[%s13746_s29 + $0xa0] sm:$0xff]  ;;  %v13891_v49 = vld [vmem:[%s13746_s29 + $0xa8] sm:$0xff] }
  0x2e   : > { %588 = vst.msk [vmem:[#allocation2 + $0x1a0] sm:$0xff] %vm534_vm0, %v17261_v6  ;;  %590 = vst.msk [vmem:[#allocation3] sm:$0xff] %vm534_vm0, %v17261_v6  ;;  %v761_v14 = vmul.f32 %v13789_v27, %v13789_v27  ;;  %v796_v16 = vsel %vm534_vm0, %v759_v60, 0.0  ;;  %v715_v22 = vsel %vm534_vm0, %v13851_v5, 0.0  ;;  %v762_v23 = vmul.f32 %v13794_v30, %v13794_v30 }
  0x2f   : > { %591 = vst.msk [vmem:[#allocation3 + $0x8] sm:$0xff] %vm534_vm0, %v17261_v6  ;;  %593 = vst.msk [vmem:[#allocation3 + $0x18] sm:$0xff] %vm534_vm0, %v17261_v6  ;;  %v696_v31 = vadd.f32 %v695_v26, %v694_v28  ;;  %v791_v0 = vadd.f32 %v790_v55, %v789_v58  ;;  %v798_v25 = vsel %vm534_vm0, %v760_v2, 0.0  ;;  %v13867_v26 = vld [vmem:[%s13746_s29 + $0x90] sm:$0xff]  ;;  %v765_v47 = vmul.f32 %v13817_v43, %v13817_v43 }
  0x30   : > { %594 = vst.msk [vmem:[#allocation3 + $0x20] sm:$0xff] %vm534_vm0, %v17261_v6  ;;  %596 = vst.msk [vmem:[#allocation3 + $0x30] sm:$0xff] %vm534_vm0, %v17261_v6  ;;  %v719_v39 = vsel %vm534_vm0, %v13867_v26, 0.0  ;;  %v766_v54 = vmul.f32 %v13827_v50, %v13827_v50  ;;  %v725_v60 = vsel %vm534_vm0, %v13891_v49, 0.0 }
  0x31   : > { %597 = vst.msk [vmem:[#allocation3 + $0x38] sm:$0xff] %vm534_vm0, %v17261_v6  ;;  %599 = vst.msk [vmem:[#allocation3 + $0x48] sm:$0xff] %vm534_vm0, %v17261_v6  ;;  %v698_v34 = vadd.f32 %v697_v29, %v696_v31  ;;  %v793_v12 = vadd.f32 %v792_v61, %v791_v0  ;;  %v717_v31 = vsel %vm534_vm0, %v13859_v17, 0.0  ;;  %v767_v61 = vmul.f32 %v13835_v56, %v13835_v56  ;;  %v13907_v0 = vld [vmem:[%s13746_s29 + $0xb8] sm:$0xff] }
  0x32   : > { %600 = vst.msk [vmem:[#allocation3 + $0x50] sm:$0xff] %vm534_vm0, %v17261_v6  ;;  %602 = vst.msk [vmem:[#allocation3 + $0x60] sm:$0xff] %vm534_vm0, %v17261_v6 }
  0x33   : > { %603 = vst.msk [vmem:[#allocation3 + $0x68] sm:$0xff] %vm534_vm0, %v17261_v6  ;;  %605 = vst.msk [vmem:[#allocation3 + $0x78] sm:$0xff] %vm534_vm0, %v17261_v6  ;;  %v700_v40 = vadd.f32 %v699_v32, %v698_v34  ;;  %v795_v20 = vadd.f32 %v794_v4, %v793_v12  ;;  %v763_v32 = vmul.f32 %v13799_v33, %v13799_v33  ;;  %v800_v34 = vsel %vm534_vm0, %v761_v14, 0.0 }
  0x34   : > { %606 = vst.msk [vmem:[#allocation3 + $0x80] sm:$0xff] %vm534_vm0, %v17261_v6  ;;  %608 = vst.msk [vmem:[#allocation3 + $0x90] sm:$0xff] %vm534_vm0, %v17261_v6  ;;  %v810_v12 = vsel %vm534_vm0, %v766_v54, 0.0 }
  0x35   : > { %609 = vst.msk [vmem:[#allocation3 + $0x98] sm:$0xff] %vm534_vm0, %v17261_v6  ;;  %611 = vst.msk [vmem:[#allocation3 + $0xa8] sm:$0xff] %vm534_vm0, %v17261_v6  ;;  %v702_v44 = vadd.f32 %v701_v36, %v700_v40  ;;  %v797_v29 = vadd.f32 %v796_v16, %v795_v20  ;;  %v13875_v36 = vld [vmem:[%s13746_s29 + $0x98] sm:$0xff]  ;;  %v764_v40 = vmul.f32 %v13802_v35, %v13802_v35  ;;  %v804_v48 = vsel %vm534_vm0, %v763_v32, 0.0 }
  0x36   : > { %612 = vst.msk [vmem:[#allocation3 + $0xb0] sm:$0xff] %vm534_vm0, %v17261_v6  ;;  %614 = vst.msk [vmem:[#allocation3 + $0xc0] sm:$0xff] %vm534_vm0, %v17261_v6  ;;  %v721_v46 = vsel %vm534_vm0, %v13875_v36, 0.0  ;;  %v769_v20 = vmul.f32 %v13851_v5, %v13851_v5 }
  0x37   : > { %615 = vst.msk [vmem:[#allocation3 + $0xc8] sm:$0xff] %vm534_vm0, %v17261_v6  ;;  %617 = vst.msk [vmem:[#allocation3 + $0xd8] sm:$0xff] %vm534_vm0, %v17261_v6  ;;  %v704_v51 = vadd.f32 %v703_v41, %v702_v44  ;;  %v799_v38 = vadd.f32 %v798_v25, %v797_v29  ;;  %v802_v41 = vsel %vm534_vm0, %v762_v23, 0.0  ;;  %v806_v55 = vsel %vm534_vm0, %v764_v40, 0.0  ;;  %v13923_v23 = vld [vmem:[%s13746_s29 + $0xc8] sm:$0xff] }
  0x38   : > { %618 = vst.msk [vmem:[#allocation3 + $0xe0] sm:$0xff] %vm534_vm0, %v17261_v6  ;;  %620 = vst.msk [vmem:[#allocation3 + $0xf0] sm:$0xff] %vm534_vm0, %v17261_v6  ;;  %v771_v40 = vmul.f32 %v13867_v26, %v13867_v26 }
  0x39   : > { %621 = vst.msk [vmem:[#allocation3 + $0xf8] sm:$0xff] %vm534_vm0, %v17261_v6  ;;  %623 = vst.msk [vmem:[#allocation3 + $0x108] sm:$0xff] %vm534_vm0, %v17261_v6  ;;  %v706_v57 = vadd.f32 %v705_v45, %v704_v51  ;;  %v801_v45 = vadd.f32 %v800_v34, %v799_v38  ;;  %v13931_v34 = vld [vmem:[%s13746_s29 + $0xd0] sm:$0xff] }
  0x3a   : > { %624 = vst.msk [vmem:[#allocation3 + $0x110] sm:$0xff] %vm534_vm0, %v17261_v6  ;;  %626 = vst.msk [vmem:[#allocation3 + $0x120] sm:$0xff] %vm534_vm0, %v17261_v6 }
  0x3b   : > { %627 = vst.msk [vmem:[#allocation3 + $0x128] sm:$0xff] %vm534_vm0, %v17261_v6  ;;  %629 = vst.msk [vmem:[#allocation3 + $0x138] sm:$0xff] %vm534_vm0, %v17261_v6  ;;  %v708_v63 = vadd.f32 %v707_v53, %v706_v57  ;;  %v803_v52 = vadd.f32 %v802_v41, %v801_v45  ;;  %v723_v53 = vsel %vm534_vm0, %v13883_v42, 0.0  ;;  %v13899_v57 = vld [vmem:[%s13746_s29 + $0xb0] sm:$0xff]  ;;  %v816_v41 = vsel %vm534_vm0, %v769_v20, 0.0 }
  0x3c   : > { %630 = vst.msk [vmem:[#allocation3 + $0x140] sm:$0xff] %vm534_vm0, %v17261_v6  ;;  %632 = vst.msk [vmem:[#allocation3 + $0x150] sm:$0xff] %vm534_vm0, %v17261_v6  ;;  %v727_v4 = vsel %vm534_vm0, %v13899_v57, 0.0 }
  0x3d   : > { %633 = vst.msk [vmem:[#allocation3 + $0x158] sm:$0xff] %vm534_vm0, %v17261_v6  ;;  %635 = vst.msk [vmem:[#allocation3 + $0x168] sm:$0xff] %vm534_vm0, %v17261_v6  ;;  %v710_v7 = vadd.f32 %v709_v59, %v708_v63  ;;  %v805_v59 = vadd.f32 %v804_v48, %v803_v52  ;;  %v808_v63 = vsel %vm534_vm0, %v765_v47, 0.0  ;;  %v735_v47 = vsel %vm534_vm0, %v13931_v34, 0.0  ;;  %v13947_v52 = vld [vmem:[%s13746_s29 + $0xe0] sm:$0xff] }
  0x3e   : > { %636 = vst.msk [vmem:[#allocation3 + $0x170] sm:$0xff] %vm534_vm0, %v17261_v6  ;;  %638 = vst.msk [vmem:[#allocation3 + $0x180] sm:$0xff] %vm534_vm0, %v17261_v6  ;;  %v772_v48 = vmul.f32 %v13875_v36, %v13875_v36 }
  0x3f   : > { %639 = vst.msk [vmem:[#allocation3 + $0x188] sm:$0xff] %vm534_vm0, %v17261_v6  ;;  %641 = vst.msk [vmem:[#allocation3 + $0x198] sm:$0xff] %vm534_vm0, %v17261_v6  ;;  %v712_v19 = vadd.f32 %v711_v1, %v710_v7  ;;  %v807_v2 = vadd.f32 %v806_v55, %v805_v59  ;;  %v768_v7 = vmul.f32 %v13843_v62, %v13843_v62  ;;  %v820_v59 = vsel %vm534_vm0, %v771_v40, 0.0 }
  0x40   : > { %642 = vst.msk [vmem:[#allocation3 + $0x1a0] sm:$0xff] %vm534_vm0, %v17261_v6 }
  0x41   : > { %v714_v28 = vadd.f32 %v713_v13, %v712_v19  ;;  %v13915_v13 = vld [vmem:[%s13746_s29 + $0xc0] sm:$0xff]  ;;  %v809_v16 = vadd.f32 %v808_v63, %v807_v2  ;;  %v729_v19 = vsel %vm534_vm0, %v13907_v0, 0.0  ;;  %v814_v32 = vsel %vm534_vm0, %v768_v7, 0.0  ;;  %v13963_v7 = vld [vmem:[%s13746_s29 + $0xf0] sm:$0xff]  ;;  %541 = vst.msk [vmem:[#allocation2 + $0x28] sm:$0x3] %vm537_vm2, %v17261_v6 }
  0x42   : > { %v731_v29 = vsel %vm534_vm0, %v13915_v13, 0.0  ;;  %v774_v2 = vmul.f32 %v13891_v49, %v13891_v49  ;;  %v777_v40 = vmul.f32 %v13915_v13, %v13915_v13  ;;  %538 = vst.msk [vmem:[#allocation2 + $0x10] sm:$0x3] %vm537_vm2, %v17261_v6  ;;  %544 = vst.msk [vmem:[#allocation2 + $0x40] sm:$0x3] %vm537_vm2, %v17261_v6 }
  0x43   : > { %v716_v37 = vadd.f32 %v715_v22, %v714_v28  ;;  %v812_v22 = vsel %vm534_vm0, %v767_v61, 0.0  ;;  %v811_v28 = vadd.f32 %v810_v12, %v809_v16  ;;  %547 = vst.msk [vmem:[#allocation2 + $0x58] sm:$0x3] %vm537_vm2, %v17261_v6  ;;  %550 = vst.msk [vmem:[#allocation2 + $0x70] sm:$0x3] %vm537_vm2, %v17261_v6 }
  0x44   : > { %553 = vst.msk [vmem:[#allocation2 + $0x88] sm:$0x3] %vm537_vm2, %v17261_v6  ;;  %556 = vst.msk [vmem:[#allocation2 + $0xa0] sm:$0x3] %vm537_vm2, %v17261_v6 }
  0x45   : > { %v718_v44 = vadd.f32 %v717_v31, %v716_v37  ;;  %v770_v31 = vmul.f32 %v13859_v17, %v13859_v17  ;;  %v813_v38 = vadd.f32 %v812_v22, %v811_v28  ;;  %v13971_v22 = vld [vmem:[%s13746_s29 + $0xf8] sm:$0xff]  ;;  %559 = vst.msk [vmem:[#allocation2 + $0xb8] sm:$0x3] %vm537_vm2, %v17261_v6  ;;  %562 = vst.msk [vmem:[#allocation2 + $0xd0] sm:$0x3] %vm537_vm2, %v17261_v6 }
  0x46   : > { %565 = vst.msk [vmem:[#allocation2 + $0xe8] sm:$0x3] %vm537_vm2, %v17261_v6  ;;  %568 = vst.msk [vmem:[#allocation2 + $0x100] sm:$0x3] %vm537_vm2, %v17261_v6 }
  0x47   : > { %v720_v51 = vadd.f32 %v719_v39, %v718_v44  ;;  %v733_v39 = vsel %vm534_vm0, %v13923_v23, 0.0  ;;  %v13939_v44 = vld [vmem:[%s13746_s29 + $0xd8] sm:$0xff]  ;;  %571 = vst.msk [vmem:[#allocation2 + $0x118] sm:$0x3] %vm537_vm2, %v17261_v6  ;;  %574 = vst.msk [vmem:[#allocation2 + $0x130] sm:$0x3] %vm537_vm2, %v17261_v6 }
  0x48   : > { %v737_v55 = vsel %vm534_vm0, %v13939_v44, 0.0  ;;  %577 = vst.msk [vmem:[#allocation2 + $0x148] sm:$0x3] %vm537_vm2, %v17261_v6  ;;  %580 = vst.msk [vmem:[#allocation2 + $0x160] sm:$0x3] %vm537_vm2, %v17261_v6 }
  0x49   : > { %v722_v58 = vadd.f32 %v721_v46, %v720_v51  ;;  %v815_v46 = vadd.f32 %v814_v32, %v813_v38  ;;  %v818_v51 = vsel %vm534_vm0, %v770_v31, 0.0  ;;  %v776_v31 = vmul.f32 %v13907_v0, %v13907_v0  ;;  %583 = vst.msk [vmem:[#allocation2 + $0x178] sm:$0x3] %vm537_vm2, %v17261_v6  ;;  %586 = vst.msk [vmem:[#allocation2 + $0x190] sm:$0x3] %vm537_vm2, %v17261_v6 }
  0x4a   : > { %v826_v32 = vsel %vm534_vm0, %v774_v2, 0.0  ;;  %589 = vst.msk [vmem:[#allocation2 + $0x1a8] sm:$0x3] %vm537_vm2, %v17261_v6  ;;  %592 = vst.msk [vmem:[#allocation3 + $0x10] sm:$0x3] %vm537_vm2, %v17261_v6 }
  0x4b   : > { %v724_v1 = vadd.f32 %v723_v53, %v722_v58  ;;  %v817_v54 = vadd.f32 %v816_v41, %v815_v46  ;;  %v773_v58 = vmul.f32 %v13883_v42, %v13883_v42  ;;  %595 = vst.msk [vmem:[#allocation3 + $0x28] sm:$0x3] %vm537_vm2, %v17261_v6  ;;  %598 = vst.msk [vmem:[#allocation3 + $0x40] sm:$0x3] %vm537_vm2, %v17261_v6 }
  0x4c   : > { %601 = vst.msk [vmem:[#allocation3 + $0x58] sm:$0x3] %vm537_vm2, %v17261_v6  ;;  %604 = vst.msk [vmem:[#allocation3 + $0x70] sm:$0x3] %vm537_vm2, %v17261_v6 }
  0x4d   : > { %v726_v14 = vadd.f32 %v725_v60, %v724_v1  ;;  %v13955_v60 = vld [vmem:[%s13746_s29 + $0xe8] sm:$0xff]  ;;  %v819_v63 = vadd.f32 %v818_v51, %v817_v54  ;;  %v739_v1 = vsel %vm534_vm0, %v13947_v52, 0.0  ;;  %v824_v20 = vsel %vm534_vm0, %v773_v58, 0.0  ;;  %607 = vst.msk [vmem:[#allocation3 + $0x88] sm:$0x3] %vm537_vm2, %v17261_v6 }
  0x4e   : > { %v741_v16 = vsel %vm534_vm0, %v13955_v60, 0.0  ;;  %v779_v54 = vmul.f32 %v13931_v34, %v13931_v34  ;;  %610 = vst.msk [vmem:[#allocation3 + $0xa0] sm:$0x3] %vm537_vm2, %v17261_v6  ;;  %613 = vst.msk [vmem:[#allocation3 + $0xb8] sm:$0x3] %vm537_vm2, %v17261_v6 }
  0x4f   : > { %v728_v25 = vadd.f32 %v727_v4, %v726_v14  ;;  %v822_v4 = vsel %vm534_vm0, %v772_v48, 0.0  ;;  %v821_v14 = vadd.f32 %v820_v59, %v819_v63  ;;  %v830_v48 = vsel %vm534_vm0, %v776_v31, 0.0  ;;  %v681_v31 = vld [vmem:[%s17420_s4 + $0x8] sm:$0xff]  ;;  %616 = vst.msk [vmem:[#allocation3 + $0xd0] sm:$0x3] %vm537_vm2, %v17261_v6 }
  0x50   : > { %619 = vst.msk [vmem:[#allocation3 + $0xe8] sm:$0x3] %vm537_vm2, %v17261_v6  ;;  %622 = vst.msk [vmem:[#allocation3 + $0x100] sm:$0x3] %vm537_vm2, %v17261_v6 }
  0x51   : > { %v730_v37 = vadd.f32 %v729_v19, %v728_v25  ;;  %v775_v19 = vmul.f32 %v13899_v57, %v13899_v57  ;;  %v823_v28 = vadd.f32 %v822_v4, %v821_v14  ;;  %v781_v4 = vmul.f32 %v13947_v52, %v13947_v52  ;;  %625 = vst.msk [vmem:[#allocation3 + $0x118] sm:$0x3] %vm537_vm2, %v17261_v6 }
  0x52   : > { %628 = vst.msk [vmem:[#allocation3 + $0x130] sm:$0x3] %vm537_vm2, %v17261_v6  ;;  %631 = vst.msk [vmem:[#allocation3 + $0x148] sm:$0x3] %vm537_vm2, %v17261_v6 }
  0x53   : > { %v732_v45 = vadd.f32 %v731_v29, %v730_v37  ;;  %v743_v29 = vsel %vm534_vm0, %v13963_v7, 0.0  ;;  %v825_v38 = vadd.f32 %v824_v20, %v823_v28  ;;  %v828_v41 = vsel %vm534_vm0, %v775_v19, 0.0  ;;  %634 = vst.msk [vmem:[#allocation3 + $0x160] sm:$0x3] %vm537_vm2, %v17261_v6  ;;  %637 = vst.msk [vmem:[#allocation3 + $0x178] sm:$0x3] %vm537_vm2, %v17261_v6 }
  0x54   : > { %v782_v19 = vmul.f32 %v13955_v60, %v13955_v60  ;;  %640 = vst.msk [vmem:[#allocation3 + $0x190] sm:$0x3] %vm537_vm2, %v17261_v6  ;;  %643 = vst.msk [vmem:[#allocation3 + $0x1a8] sm:$0x3] %vm537_vm2, %v17261_v6 }
  0x55   : > { %v734_v53 = vadd.f32 %v733_v39, %v732_v45  ;;  %v745_v39 = vsel %vm534_vm0, %v13971_v22, 0.0  ;;  %v827_v46 = vadd.f32 %v826_v32, %v825_v38  ;;  %v783_v32 = vmul.f32 %v13963_v7, %v13963_v7 }
  0x57   : > { %v736_v61 = vadd.f32 %v735_v47, %v734_v53  ;;  %v778_v47 = vmul.f32 %v13923_v23, %v13923_v23  ;;  %v829_v53 = vadd.f32 %v828_v41, %v827_v46  ;;  %v842_v41 = vsel %vm534_vm0, %v782_v19, 0.0 }
  0x59   : > { %v738_v12 = vadd.f32 %v737_v55, %v736_v61  ;;  %v832_v55 = vsel %vm534_vm0, %v777_v40, 0.0  ;;  %v831_v59 = vadd.f32 %v830_v48, %v829_v53  ;;  %v780_v61 = vmul.f32 %v13939_v44, %v13939_v44 }
  0x5a   : > { %v834_v63 = vsel %vm534_vm0, %v778_v47, 0.0  ;;  %v784_v40 = vmul.f32 %v13971_v22, %v13971_v22  ;;  %v844_v48 = vsel %vm534_vm0, %v783_v32, 0.0 }
  0x5b   : > { %v740_v25 = vadd.f32 %v739_v1, %v738_v12  ;;  %v833_v2 = vadd.f32 %v832_v55, %v831_v59  ;;  %v836_v12 = vsel %vm534_vm0, %v779_v54, 0.0  ;;  %v838_v20 = vsel %vm534_vm0, %v780_v61, 0.0 }
  0x5c   : > { %v846_v53 = vsel %vm534_vm0, %v784_v40, 0.0  ;;  %v1600_v40 = vld [vmem:[%s17246_s5 + $0x8] sm:$0xff] }
  0x5d   : > { %v742_v37 = vadd.f32 %v741_v16, %v740_v25  ;;  %v835_v16 = vadd.f32 %v834_v63, %v833_v2 }
  0x5f   : > { %v744_v45 = vadd.f32 %v743_v29, %v742_v37  ;;  %v837_v28 = vadd.f32 %v836_v12, %v835_v16  ;;  %v680_v29 = vld [vmem:[%s17420_s4] sm:$0xff]  ;;  %v840_v37 = vsel %vm534_vm0, %v781_v4, 0.0  ;;  %v682_v4 = vld [vmem:[%s17420_s4 + $0x10] sm:$0xff]  ;;  %v683_v12 = vld [vmem:[%s17420_s4 + $0x18] sm:$0xff]  ;;  %s17057_s4 = scalar_lea.vmem [#allocation4], %s9758_s3  ;;  %s13363_s3 = sshll.u32 %s13426_s28, 4  ;;  %s13364_s3 = int_to_ptr.vmem [resolvable:$false] %s13363_s3 }
  0x60   : > { %s9683_s27 = sshll.u32 %s17057_s4, 4  ;;  %s17191_s27 = int_to_ptr.vmem [resolvable:$true] %s9683_s27 }
  0x61   : > { %v746_v51 = vadd.f32 %v745_v39, %v744_v45  ;;  %v839_v39 = vadd.f32 %v838_v20, %v837_v28  ;;  %v12248_v45 = vpack.c.bf16 %v681_v31, %v680_v29  ;;  %s13359_s30 = scalar_lea.vmem %s17191_s27, 4096  ;;  %p13366_p0 = scmp.lt.s32.totalorder %s17191_s27, %s13364_s3 }
  0x62   : > { %p13360_p11 = scmp.ne.s32.totalorder %s17191_s27, %s13359_s30 }
  0x63   : > { %v747_v58 = vrot.slane %v746_v51, 4  ;;  %v841_v47 = vadd.f32 %v840_v37, %v839_v39  ;;  %v1599_v39 = vld [vmem:[%s17246_s5] sm:$0xff] }
  0x64   : > { %p13361_p12 = pnand %p13360_p11, %p13552_p5 }
  0x65   : > { %v748_v1 = vadd.f32 %v747_v58, %v746_v51  ;;  %v843_v51 = vadd.f32 %v842_v41, %v841_v47  ;;  %v12259_v41 = vpack.c.bf16 %v1600_v40, %v1599_v39 }
  0x66   : > { %p13362_p13 = pneg %p13361_p12 }
  0x67   : > { %v749_v14 = vrot.slane %v748_v1, 2  ;;  %v845_v54 = vadd.f32 %v844_v48, %v843_v51  ;;  %v1567_v48 = vld [vmem:[#allocation2] sm:$0xff] }
  0x68   : > { %v9800_v51 = vld [vmem:[%s17246_s5 + $0x20] sm:$0xff] }
  0x69   : > { %v750_v25 = vadd.f32 %v749_v14, %v748_v1  ;;  %v847_v55 = vadd.f32 %v846_v53, %v845_v54  ;;  %v12251_v14 = vpack.c.bf16 %v683_v12, %v682_v4  ;;  %v9801_v53 = vld [vmem:[%s17246_s5 + $0x28] sm:$0xff] }
  0x6a   : > { %v12267_v54 = vpack.c.bf16 %v9801_v53, %v9800_v51 }
  0x6b   : > { %v751_v38 = vrot.slane %v750_v25, 1  ;;  %v848_v58 = vrot.slane %v847_v55, 4 }
  0x6d   : > { %v752_v46 = vadd.f32 %v751_v38, %v750_v25  ;;  %v849_v59 = vadd.f32 %v848_v58, %v847_v55  ;;  %v1568_v55 = vld [vmem:[#allocation2 + $0x8] sm:$0xff]  ;;  %v9802_v58 = vld [vmem:[%s17246_s5 + $0x30] sm:$0xff] }
  0x6f   : > { %11129 = vmatmul.mubr.msk.f32.vlgmr.msra.gmra.mrb[0].mxu0 %vm534_vm0, %v752_v46  ;;  %v850_v61 = vrot.slane %v849_v59, 2  ;;  %v1602_v46 = vld [vmem:[%s17246_s5 + $0x18] sm:$0xff] }
  0x70   : > { %12249 = vmatpush3.bf16.msra.mxu0 %v12248_v45  ;;  %11150 = vmatprep.mubr.msk.f32.mxu0 %vm13424_vm1, %v17261_v6 }
  0x71   : > { %12250 = vmatprep.subr.bf16.mxu0 %v17263_v3  ;;  %v851_v63 = vadd.f32 %v850_v61, %v849_v59  ;;  %v9803_v59 = vld [vmem:[%s17246_s5 + $0x38] sm:$0xff] }
  0x72   : > { %v12271_v61 = vpack.c.bf16 %v9803_v59, %v9802_v58 }
  0x73   : > { %v852_v1 = vrot.slane %v851_v63, 1 }
  0x74   : > { %12252 = vmatpush3.bf16.msra.mxu0 %v12251_v14 }
  0x75   : > { %v853_v2 = vadd.f32 %v852_v1, %v851_v63  ;;  %12260 = vmatprep.subr.bf16.mxu0 %v12259_v41 }
  0x77   : > { %11140 = vmatmul.mubr.msk.f32.vlgmr.msra.gmra.mrb[0].mxu1 %vm534_vm0, %v853_v2  ;;  %v1152_v2 = vlaneseq }
  0x78   : > { %12255 = vmatpush3.bf16.msra.mxu1 %v12248_v45  ;;  %11161 = vmatprep.mubr.msk.f32.mxu1 %vm13424_vm1, %v17261_v6  ;;  %v1601_v45 = vld [vmem:[%s17246_s5 + $0x10] sm:$0xff] }
  0x79   : > { %12256 = vmatprep.subr.bf16.mxu1 %v17263_v3  ;;  %v12263_v47 = vpack.c.bf16 %v1602_v46, %v1601_v45  ;;  %v1153_v4 = vshrl.u32 %v1152_v2, 7 }
  0x7b   : > { %v14129_v12 = vsub.s32 0, %v1153_v4 }
  0x7c   : > { %12258 = vmatpush3.bf16.msra.mxu1 %v12251_v14 }
  0x7d   : > { %12331 = vmatprep.subr.bf16.mxu1 %v17263_v3  ;;  %17421 = vst [vmem:[#allocation10_spill] sm:$0xff] %v14129_v12 }
 0x142   : > { %v923_v16 = vpop.f32.mrb[0].mxu0 }
 0x143   : > { %v927_v19 = vmul.f32 0.00390625, %v923_v16  ;;  %v11130_v20 = vpop.f32.mrb[1].mxu0 }
 0x145   : > { %11151 = vmatmul.mubr.msk.f32.vlgmr.msra.gmra.mrb[2].mxu0 %vm534_vm0, %v927_v19  ;;  %v1002_v25 = vmul.f32 %v927_v19, %v927_v19 }
 0x146   : > { %12262 = vmatpush3.bf16.msra.mxu0 %v12259_v41  ;;  %11172 = vmatprep.mubr.msk.f32.mxu0 %vm534_vm0, %v1567_v48 }
 0x147   : > { %12264 = vmatprep.subr.bf16.mxu0 %v12263_v47 }
 0x14a   : > { %v997_v28 = vpop.f32.mrb[0].mxu1  ;;  %12266 = vmatpush3.bf16.msra.mxu0 %v12263_v47 }
 0x14b   : > { %v1001_v29 = vmul.f32 0.00390625, %v997_v28  ;;  %v11141_v31 = vpop.f32.mrb[1].mxu1  ;;  %12268 = vmatprep.subr.bf16.mxu0 %v12267_v54 }
 0x14d   : > { %v1003_v32 = vsub.f32 %v1001_v29, %v1002_v25  ;;  %11173 = vmatmul.mubr.msk.f32.vlgmr.msra.gmra.mrb[4].mxu0 %vm534_vm0, %v1568_v55 }
 0x14e   : > { %12270 = vmatpush3.bf16.msra.mxu0 %v12267_v54 }
 0x14f   : > { %v1004_v37 = vadd.f32 1e-06, %v1003_v32  ;;  %12272 = vmatprep.subr.bf16.mxu0 %v12271_v61 }
 0x151   : > { %13063 = vrsqrt.f32 %v1004_v37 }
 0x152   : > { %12274 = vmatpush3.bf16.msra.mxu0 %v12271_v61  ;;  %v14209_v61 = vld [vmem:[%s17242_s1] ss:$0 sm:$0xff] }
 0x15b   : > { %v13064_v38 = vpop.eup %13063 }
 0x15c   : > { %11162 = vmatmul.mubr.msk.f32.vlgmr.msra.gmra.mrb[2].mxu1 %vm534_vm0, %v13064_v38 }
 0x15d   : > { %11684 = vmatprep.mubr.msk.f32.mxu1 %vm13424_vm1, %v17261_v6 }
 0x218   : > { %v1075_v63 = vpop.f32.mrb[2].mxu0 }
 0x219   : > { %v11152_v1 = vpop.f32.mrb[3].mxu0  ;;  %v14132_v14 = vrot.slane %v1075_v63, %v14129_v12 }
 0x21b   : > { %v1175_v20 = vsub.f32 %v13875_v36, %v14132_v14  ;;  %v1176_v25 = vsub.f32 %v13883_v42, %v14132_v14  ;;  %v1177_v28 = vsub.f32 %v13891_v49, %v14132_v14  ;;  %v1178_v29 = vsub.f32 %v13899_v57, %v14132_v14 }
 0x21c   : > { %v1179_v31 = vsub.f32 %v13907_v0, %v14132_v14  ;;  %v1180_v32 = vsub.f32 %v13915_v13, %v14132_v14  ;;  %v1181_v37 = vsub.f32 %v13923_v23, %v14132_v14  ;;  %v1182_v36 = vsub.f32 %v13931_v34, %v14132_v14  ;;  %v9836_v34 = vld [vmem:[%s17246_s5 + $0x40] sm:$0xff] }
 0x21d   : > { %v1183_v42 = vsub.f32 %v13939_v44, %v14132_v14  ;;  %v1184_v49 = vsub.f32 %v13947_v52, %v14132_v14  ;;  %v1185_v57 = vsub.f32 %v13955_v60, %v14132_v14  ;;  %v1186_v0 = vsub.f32 %v13963_v7, %v14132_v14  ;;  %v9837_v44 = vld [vmem:[%s17246_s5 + $0x48] sm:$0xff] }
 0x21e   : > { %v1187_v13 = vsub.f32 %v13971_v22, %v14132_v14  ;;  %v1156_v23 = vsub.f32 %v13749_v8, %v14132_v14  ;;  %v1157_v52 = vsub.f32 %v13752_v9, %v14132_v14  ;;  %v1158_v60 = vsub.f32 %v13755_v10, %v14132_v14 }
 0x21f   : > { %v1159_v7 = vsub.f32 %v13758_v11, %v14132_v14  ;;  %v14178_v22 = vpack.c.bf16 %v9837_v44, %v9836_v34  ;;  %v1160_v39 = vsub.f32 %v13769_v15, %v14132_v14  ;;  %v1161_v40 = vsub.f32 %v13774_v18, %v14132_v14 }
 0x221   : > { %12276 = vmatprep.subr.bf16.mxu0 %v14178_v22 }
 0x22f   : > { %v1148_v38 = vpop.f32.mrb[2].mxu1 }
 0x230   : > { %v14189_v46 = vrot.slane %v1148_v38, %v14129_v12  ;;  %v11163_v47 = vpop.f32.mrb[3].mxu1  ;;  %v9875_v12 = vld [vmem:[%s17246_s5 + $0x78] sm:$0xff] }
 0x232   : > { %v14212_v63 = vmul.f32 %v14189_v46, %v1175_v20  ;;  %v14215_v1 = vmul.f32 %v14189_v46, %v1176_v25  ;;  %v14218_v2 = vmul.f32 %v14189_v46, %v1177_v28  ;;  %v14221_v4 = vmul.f32 %v14189_v46, %v1178_v29  ;;  %v14234_v29 = vld [vmem:[%s17243_s2] ss:$0 sm:$0xff] }
 0x233   : > { %v1215_v34 = vmul.f32 %v14189_v46, %v1179_v31  ;;  %v1216_v44 = vmul.f32 %v14189_v46, %v1180_v32  ;;  %v1217_v38 = vmul.f32 %v14189_v46, %v1181_v37  ;;  %v1218_v47 = vmul.f32 %v14189_v46, %v1182_v36 }
 0x234   : > { %v1219_v20 = vmul.f32 %v14189_v46, %v1183_v42  ;;  %v1220_v6 = vmul.f32 %v14189_v46, %v1184_v49  ;;  %v1221_v25 = vmul.f32 %v14189_v46, %v1185_v57  ;;  %v1222_v28 = vmul.f32 %v14189_v46, %v1186_v0 }
 0x235   : > { %v1223_v31 = vmul.f32 %v14189_v46, %v1187_v13  ;;  %v1254_v32 = vmul.f32 %v14209_v61, %v1215_v34  ;;  %v1255_v42 = vmul.f32 %v14209_v61, %v1216_v44  ;;  %v1256_v49 = vmul.f32 %v14209_v61, %v1217_v38 }
 0x236   : > { %v1257_v57 = vmul.f32 %v14209_v61, %v1218_v47  ;;  %v1258_v0 = vmul.f32 %v14209_v61, %v1219_v20  ;;  %v1259_v3 = vmul.f32 %v14209_v61, %v1220_v6  ;;  %v1260_v13 = vmul.f32 %v14209_v61, %v1221_v25 }
 0x237   : > { %v1261_v34 = vmul.f32 %v14209_v61, %v1222_v28  ;;  %v1262_v19 = vmul.f32 %v14209_v61, %v1223_v31  ;;  %v14251_v16 = vadd.f32 %v14234_v29, %v1254_v32  ;;  %v14254_v36 = vadd.f32 %v14234_v29, %v1255_v42 }
 0x238   : > { %v14257_v44 = vadd.f32 %v14234_v29, %v1256_v49  ;;  %v14260_v38 = vadd.f32 %v14234_v29, %v1257_v57  ;;  %v14263_v6 = vadd.f32 %v14234_v29, %v1258_v0  ;;  %v14266_v47 = vadd.f32 %v14234_v29, %v1259_v3 }
 0x239   : > { %v14269_v20 = vadd.f32 %v14234_v29, %v1260_v13  ;;  %v14272_v25 = vadd.f32 %v14234_v29, %v1261_v34  ;;  %v14275_v28 = vadd.f32 %v14234_v29, %v1262_v19  ;;  %v1325_v31 = vsub.f32 0.0, %v14251_v16 }
 0x23a   : > { %v1326_v32 = vsub.f32 0.0, %v14254_v36  ;;  %v1327_v42 = vsub.f32 0.0, %v14257_v44  ;;  %v1328_v49 = vsub.f32 0.0, %v14260_v38  ;;  %v1329_v3 = vsub.f32 0.0, %v14263_v6 }
 0x23b   : > { %v1330_v57 = vsub.f32 0.0, %v14266_v47  ;;  %v1331_v0 = vsub.f32 0.0, %v14269_v20  ;;  %v1332_v13 = vsub.f32 0.0, %v14272_v25  ;;  %v1333_v34 = vsub.f32 0.0, %v14275_v28 }
 0x23c   : > { %v1380_v19 = vmul.f32 1.442695, %v1325_v31  ;;  %v1382_v37 = vmul.f32 1.442695, %v1326_v32  ;;  %v1384_v59 = vmul.f32 1.442695, %v1327_v42  ;;  %v1192_v54 = vmul.f32 %v14189_v46, %v1156_v23 }
 0x23d   : > { %v1386_v58 = vmul.f32 1.442695, %v1328_v49  ;;  %v1388_v55 = vmul.f32 1.442695, %v1329_v3  ;;  %v1390_v53 = vmul.f32 1.442695, %v1330_v57  ;;  %v1193_v31 = vmul.f32 %v14189_v46, %v1157_v52 }
 0x23e   : > { %13065 = vpow2.f32 %v1380_v19  ;;  %v1392_v51 = vmul.f32 1.442695, %v1331_v0  ;;  %v1394_v48 = vmul.f32 1.442695, %v1332_v13  ;;  %v1396_v45 = vmul.f32 1.442695, %v1333_v34 }
 0x23f   : > { %13067 = vpow2.f32 %v1382_v37  ;;  %v1231_v41 = vmul.f32 %v14209_v61, %v1192_v54  ;;  %v1194_v8 = vmul.f32 %v14189_v46, %v1158_v60  ;;  %v1195_v23 = vmul.f32 %v14189_v46, %v1159_v7 }
 0x240   : > { %13069 = vpow2.f32 %v1384_v59  ;;  %v1196_v54 = vmul.f32 %v14189_v46, %v1160_v39  ;;  %v1232_v52 = vmul.f32 %v14209_v61, %v1193_v31  ;;  %v1197_v10 = vmul.f32 %v14189_v46, %v1161_v40 }
 0x241   : > { %13071 = vpow2.f32 %v1386_v58  ;;  %v14308_v9 = vadd.f32 %v14234_v29, %v1231_v41  ;;  %v1233_v11 = vmul.f32 %v14209_v61, %v1194_v8  ;;  %v1234_v60 = vmul.f32 %v14209_v61, %v1195_v23 }
 0x242   : > { %13073 = vpow2.f32 %v1388_v55  ;;  %v1235_v15 = vmul.f32 %v14209_v61, %v1196_v54  ;;  %v14320_v39 = vadd.f32 %v14234_v29, %v1232_v52  ;;  %v1236_v41 = vmul.f32 %v14209_v61, %v1197_v10 }
 0x243   : > { %13075 = vpow2.f32 %v1390_v53  ;;  %v1302_v7 = vsub.f32 0.0, %v14308_v9  ;;  %v14324_v18 = vadd.f32 %v14234_v29, %v1233_v11  ;;  %v14327_v40 = vadd.f32 %v14234_v29, %v1234_v60 }
 0x244   : > { %13077 = vpow2.f32 %v1392_v51  ;;  %v14330_v55 = vadd.f32 %v14234_v29, %v1235_v15  ;;  %v1303_v53 = vsub.f32 0.0, %v14320_v39  ;;  %v14334_v59 = vadd.f32 %v14234_v29, %v1236_v41 }
 0x245   : > { %13079 = vpow2.f32 %v1394_v48  ;;  %v1334_v58 = vmul.f32 1.442695, %v1302_v7  ;;  %v1304_v37 = vsub.f32 0.0, %v14324_v18  ;;  %v1305_v51 = vsub.f32 0.0, %v14327_v40 }
 0x246   : > { %13081 = vpow2.f32 %v1396_v45  ;;  %v1306_v32 = vsub.f32 0.0, %v14330_v55  ;;  %v1336_v42 = vmul.f32 1.442695, %v1303_v53  ;;  %v1307_v49 = vsub.f32 0.0, %v14334_v59 }
 0x247   : > { %13083 = vpow2.f32 %v1334_v58  ;;  %v17422_v48 = vsub.f32 %v13779_v21, %v14132_v14  ;;  %v1338_v0 = vmul.f32 1.442695, %v1304_v37  ;;  %v14344_v13 = vmul.f32 1.442695, %v1305_v51 }
 0x248   : > { %v13066_v57 = vpop.eup %13065  ;;  %v14346_v45 = vmul.f32 1.442695, %v1306_v32  ;;  %v17423_v34 = vsub.f32 %v13784_v24, %v14132_v14  ;;  %13085 = vpow2.f32 %v1336_v42  ;;  %v14352_v23 = vmul.f32 1.442695, %v1307_v49 }
 0x249   : > { %v1198_v3 = vmul.f32 %v14189_v46, %v17422_v48  ;;  %v13068_v31 = vpop.eup %13067  ;;  %v1421_v8 = vadd.f32 1.0, %v13066_v57  ;;  %13087 = vpow2.f32 %v1338_v0  ;;  %v17424_v11 = vsub.f32 %v13789_v27, %v14132_v14 }
 0x24a   : > { %v1199_v19 = vmul.f32 %v14189_v46, %v17423_v34  ;;  %v13070_v54 = vpop.eup %13069  ;;  %v1422_v52 = vadd.f32 1.0, %v13068_v31  ;;  %v17425_v41 = vsub.f32 %v13794_v30, %v14132_v14 }
 0x24b   : > { %v1237_v21 = vmul.f32 %v14209_v61, %v1198_v3  ;;  %v1200_v60 = vmul.f32 %v14189_v46, %v17424_v11  ;;  %v13072_v24 = vpop.eup %13071  ;;  %v1423_v15 = vadd.f32 1.0, %v13070_v54  ;;  %13089 = vrcp.f32 %v1421_v8 }
 0x24c   : > { %v1238_v10 = vmul.f32 %v14209_v61, %v1199_v19  ;;  %v1201_v58 = vmul.f32 %v14189_v46, %v17425_v41  ;;  %v13074_v53 = vpop.eup %13073  ;;  %v1424_v37 = vadd.f32 1.0, %v13072_v24  ;;  %13091 = vrcp.f32 %v1422_v52 }
 0x24d   : > { %v14361_v7 = vadd.f32 %v14234_v29, %v1237_v21  ;;  %v1239_v27 = vmul.f32 %v14209_v61, %v1200_v60  ;;  %v13076_v32 = vpop.eup %13075  ;;  %v1425_v42 = vadd.f32 1.0, %v13074_v53  ;;  %13093 = vrcp.f32 %v1423_v15 }
 0x24e   : > { %v14368_v51 = vadd.f32 %v14234_v29, %v1238_v10  ;;  %v1240_v48 = vmul.f32 %v14209_v61, %v1201_v58  ;;  %v13078_v3 = vpop.eup %13077  ;;  %v1426_v57 = vadd.f32 1.0, %v13076_v32  ;;  %13095 = vrcp.f32 %v1424_v37 }
 0x24f   : > { %v1308_v49 = vsub.f32 0.0, %v14361_v7  ;;  %v14375_v0 = vadd.f32 %v14234_v29, %v1239_v27  ;;  %v13080_v34 = vpop.eup %13079  ;;  %v1427_v19 = vadd.f32 1.0, %v13078_v3  ;;  %13097 = vrcp.f32 %v1425_v42 }
 0x250   : > { %v1309_v30 = vsub.f32 0.0, %v14368_v51  ;;  %v14378_v8 = vadd.f32 %v14234_v29, %v1240_v48  ;;  %v13082_v21 = vpop.eup %13081  ;;  %v1428_v54 = vadd.f32 1.0, %v13080_v34  ;;  %13099 = vrcp.f32 %v1426_v57 }
 0x251   : > { %v1346_v31 = vmul.f32 1.442695, %v1308_v49  ;;  %v1310_v10 = vsub.f32 0.0, %v14375_v0  ;;  %v13084_v11 = vpop.eup %13083  ;;  %v1429_v60 = vadd.f32 1.0, %v13082_v21  ;;  %13101 = vrcp.f32 %v1427_v19 }
 0x252   : > { %v1348_v52 = vmul.f32 1.442695, %v1309_v30  ;;  %v1311_v24 = vsub.f32 0.0, %v14378_v8  ;;  %v17426_v15 = vsub.f32 %v13799_v33, %v14132_v14  ;;  %13103 = vrcp.f32 %v1428_v54  ;;  %v13086_v32 = vpop.eup %13085 }
 0x253   : > { %v1398_v58 = vadd.f32 1.0, %v13084_v11  ;;  %v1350_v53 = vmul.f32 1.442695, %v1310_v10  ;;  %v17427_v37 = vsub.f32 %v13802_v35, %v14132_v14  ;;  %13105 = vrcp.f32 %v1429_v60  ;;  %v13088_v3 = vpop.eup %13087 }
 0x254   : > { %v1202_v41 = vmul.f32 %v14189_v46, %v17426_v15  ;;  %v1352_v42 = vmul.f32 1.442695, %v1311_v24  ;;  %v17428_v48 = vsub.f32 %v13817_v43, %v14132_v14  ;;  %v1399_v57 = vadd.f32 1.0, %v13086_v32 }
 0x255   : > { %v1203_v27 = vmul.f32 %v14189_v46, %v17427_v37  ;;  %13107 = vrcp.f32 %v1398_v58  ;;  %v17429_v35 = vsub.f32 %v13827_v50, %v14132_v14  ;;  %v14400_v19 = vpop.eup %13089  ;;  %v1400_v21 = vadd.f32 1.0, %v13088_v3 }
 0x256   : > { %v1241_v49 = vmul.f32 %v14209_v61, %v1202_v41  ;;  %v1204_v33 = vmul.f32 %v14189_v46, %v17428_v48  ;;  %13109 = vpow2.f32 %v14344_v13  ;;  %v14407_v10 = vpop.eup %13091  ;;  %v17430_v60 = vsub.f32 %v13835_v56, %v14132_v14 }
 0x257   : > { %v1242_v30 = vmul.f32 %v14209_v61, %v1203_v27  ;;  %v1205_v34 = vmul.f32 %v14189_v46, %v17429_v35  ;;  %13111 = vrcp.f32 %v1399_v57  ;;  %v13094_v15 = vpop.eup %13093  ;;  %v17431_v58 = vsub.f32 %v13843_v62, %v14132_v14 }
 0x258   : > { %v14404_v54 = vadd.f32 %v14234_v29, %v1241_v49  ;;  %v1243_v43 = vmul.f32 %v14209_v61, %v1204_v33  ;;  %v1206_v24 = vmul.f32 %v14189_v46, %v17430_v60  ;;  %13113 = vrcp.f32 %v1400_v21  ;;  %v13096_v27 = vpop.eup %13095 }
 0x259   : > { %v14410_v11 = vadd.f32 %v14234_v29, %v1242_v30  ;;  %v1244_v50 = vmul.f32 %v14209_v61, %v1205_v34  ;;  %v1207_v37 = vmul.f32 %v14189_v46, %v17431_v58  ;;  %v1519_v32 = vmul.f32 %v13094_v15, %v14257_v44  ;;  %v13098_v48 = vpop.eup %13097 }
 0x25a   : > { %v1312_v13 = vsub.f32 0.0, %v14404_v54  ;;  %v14419_v41 = vadd.f32 %v14234_v29, %v1243_v43  ;;  %13115 = vpow2.f32 %v14346_v45  ;;  %v1520_v33 = vmul.f32 %v13096_v27, %v14260_v38  ;;  %v13100_v57 = vpop.eup %13099 }
 0x25b   : > { %v1313_v56 = vsub.f32 0.0, %v14410_v11  ;;  %v14429_v49 = vadd.f32 %v14234_v29, %v1244_v50  ;;  %13117 = vpow2.f32 %v14352_v23  ;;  %v1521_v30 = vmul.f32 %v13098_v48, %v14263_v6  ;;  %1552 = vst.msk [vmem:[#allocation2 + $0x141] sm:$0xff] %vm534_vm0, %v1519_v32  ;;  %v13102_v35 = vpop.eup %13101 }
 0x25c   : > { %v1354_v3 = vmul.f32 1.442695, %v1312_v13  ;;  %v1314_v62 = vsub.f32 0.0, %v14419_v41  ;;  %13119 = vpow2.f32 %v1346_v31  ;;  %v1522_v34 = vmul.f32 %v13100_v57, %v14266_v47  ;;  %1553 = vst.msk [vmem:[#allocation2 + $0x151] sm:$0xff] %vm534_vm0, %v1520_v33  ;;  %v13104_v21 = vpop.eup %13103 }
 0x25d   : > { %v1356_v44 = vmul.f32 1.442695, %v1313_v56  ;;  %v1315_v45 = vsub.f32 0.0, %v14429_v49  ;;  %13121 = vpow2.f32 %v1348_v52  ;;  %v1245_v23 = vmul.f32 %v14209_v61, %v1206_v24  ;;  %1554 = vst.msk [vmem:[#allocation2 + $0x159] sm:$0xff] %vm534_vm0, %v1521_v30  ;;  %v13106_v50 = vpop.eup %13105 }
 0x25e   : > { %v1358_v38 = vmul.f32 1.442695, %v1314_v62  ;;  %v1523_v43 = vmul.f32 %v13102_v35, %v14269_v20  ;;  %13123 = vpow2.f32 %v1350_v53  ;;  %v1246_v31 = vmul.f32 %v14209_v61, %v1207_v37  ;;  %1555 = vst.msk [vmem:[#allocation2 + $0x169] sm:$0xff] %vm534_vm0, %v1522_v34 }
 0x25f   : > { %v1360_v6 = vmul.f32 1.442695, %v1315_v45  ;;  %v1524_v60 = vmul.f32 %v13104_v21, %v14272_v25  ;;  %13125 = vpow2.f32 %v1352_v42  ;;  %v14446_v47 = vadd.f32 %v14234_v29, %v1245_v23  ;;  %v13108_v24 = vpop.eup %13107 }
 0x260   : > { %v17432_v52 = vsub.f32 %v13851_v5, %v14132_v14  ;;  %v1525_v53 = vmul.f32 %v13106_v50, %v14275_v28  ;;  %1556 = vst.msk [vmem:[#allocation2 + $0x171] sm:$0xff] %vm534_vm0, %v1523_v43  ;;  %13127 = vpow2.f32 %v1354_v3  ;;  %v14455_v15 = vadd.f32 %v14234_v29, %v1246_v31  ;;  %v13110_v13 = vpop.eup %13109 }
 0x261   : > { %v17433_v25 = vsub.f32 %v13859_v17, %v14132_v14  ;;  %1557 = vst.msk [vmem:[#allocation2 + $0x181] sm:$0xff] %vm534_vm0, %v1524_v60  ;;  %v1494_v5 = vmul.f32 %v13108_v24, %v14308_v9  ;;  %13129 = vpow2.f32 %v1356_v44  ;;  %v1316_v58 = vsub.f32 0.0, %v14446_v47  ;;  %v13112_v37 = vpop.eup %13111 }
 0x262   : > { %v1208_v20 = vmul.f32 %v14189_v46, %v17432_v52  ;;  %1558 = vst.msk [vmem:[#allocation2 + $0x189] sm:$0xff] %vm534_vm0, %v1525_v53  ;;  %v1401_v27 = vadd.f32 1.0, %v13110_v13  ;;  %13131 = vpow2.f32 %v1358_v38  ;;  %v1317_v32 = vsub.f32 0.0, %v14455_v15  ;;  %v13114_v56 = vpop.eup %13113 }
 0x263   : > { %v1209_v42 = vmul.f32 %v14189_v46, %v17433_v25  ;;  %1527 = vst.msk [vmem:[#allocation2 + $0x19] sm:$0xff] %vm534_vm0, %v1494_v5  ;;  %v1495_v48 = vmul.f32 %v13112_v37, %v14320_v39  ;;  %13133 = vpow2.f32 %v1360_v6  ;;  %v1362_v9 = vmul.f32 1.442695, %v1316_v58 }
 0x264   : > { %v1247_v28 = vmul.f32 %v14209_v61, %v1208_v20  ;;  %v13116_v3 = vpop.eup %13115  ;;  %v1496_v62 = vmul.f32 %v13114_v56, %v14324_v18  ;;  %13135 = vrcp.f32 %v1401_v27  ;;  %v1364_v57 = vmul.f32 1.442695, %v1317_v32 }
 0x265   : > { %v1248_v17 = vmul.f32 %v14209_v61, %v1209_v42  ;;  %v13118_v44 = vpop.eup %13117  ;;  %1528 = vst.msk [vmem:[#allocation2 + $0x21] sm:$0xff] %vm534_vm0, %v1495_v48  ;;  %v1402_v45 = vadd.f32 1.0, %v13116_v3  ;;  %13137 = vpow2.f32 %v1362_v9  ;;  %v17434_v39 = vsub.f32 %v13867_v26, %v14132_v14 }
 0x266   : > { %v14471_v33 = vadd.f32 %v14234_v29, %v1247_v28  ;;  %v13120_v34 = vpop.eup %13119  ;;  %1529 = vst.msk [vmem:[#allocation2 + $0x31] sm:$0xff] %vm534_vm0, %v1496_v62  ;;  %v1403_v38 = vadd.f32 1.0, %v13118_v44  ;;  %13139 = vpow2.f32 %v1364_v57  ;;  %v1250_v18 = vmul.f32 %v14209_v61, %v14212_v63 }
 0x267   : > { %v14475_v30 = vadd.f32 %v14234_v29, %v1248_v17  ;;  %v1210_v35 = vmul.f32 %v14189_v46, %v17434_v39  ;;  %v13122_v23 = vpop.eup %13121  ;;  %v1252_v21 = vmul.f32 %v14209_v61, %v14218_v2  ;;  %13141 = vrcp.f32 %v1402_v45 }
 0x268   : > { %v1404_v43 = vadd.f32 1.0, %v13120_v34  ;;  %v13124_v31 = vpop.eup %13123  ;;  %13143 = vrcp.f32 %v1403_v38  ;;  %v1405_v26 = vadd.f32 1.0, %v13122_v23  ;;  %v1318_v14 = vsub.f32 0.0, %v14471_v33 }
 0x269   : > { %v1249_v6 = vmul.f32 %v14209_v61, %v1210_v35  ;;  %v1319_v46 = vsub.f32 0.0, %v14475_v30  ;;  %v13126_v50 = vpop.eup %13125  ;;  %v1406_v60 = vadd.f32 1.0, %v13124_v31  ;;  %v1251_v2 = vmul.f32 %v14209_v61, %v14215_v1 }
 0x26a   : > { %13145 = vrcp.f32 %v1404_v43  ;;  %v13128_v52 = vpop.eup %13127  ;;  %v1253_v20 = vmul.f32 %v14209_v61, %v14221_v4  ;;  %v14497_v24 = vld [vmem:[#allocation2 + $0x18] sm:$0xff]  ;;  %v1407_v53 = vadd.f32 1.0, %v13126_v50  ;;  %v14500_v25 = vadd.f32 %v14234_v29, %v1250_v18 }
 0x26b   : > { %v14491_v63 = vadd.f32 %v14234_v29, %v1249_v6  ;;  %13147 = vrcp.f32 %v1405_v26  ;;  %v13130_v42 = vpop.eup %13129  ;;  %11175 = vmatprep.mubr.msk.f32.mxu0 %vm534_vm0, %v14497_v24  ;;  %v1408_v13 = vadd.f32 1.0, %v13128_v52  ;;  %v14505_v5 = vadd.f32 %v14234_v29, %v1251_v2 }
 0x26c   : > { %13149 = vrcp.f32 %v1406_v60  ;;  %v13132_v1 = vpop.eup %13131  ;;  %v14507_v58 = vld [vmem:[#allocation2 + $0x20] sm:$0xff]  ;;  %v1409_v61 = vadd.f32 1.0, %v13130_v42  ;;  %v1366_v4 = vmul.f32 1.442695, %v1318_v14  ;;  %v14510_v28 = vadd.f32 %v14234_v29, %v1252_v21 }
 0x26d   : > { %13151 = vrcp.f32 %v1407_v53  ;;  %v13134_v37 = vpop.eup %13133  ;;  %11176 = vmatmul.mubr.msk.f32.gmra.mrb[6].mxu0 %vm534_vm0, %v14507_v58  ;;  %v14514_v27 = vld [vmem:[#allocation2 + $0x30] sm:$0xff]  ;;  %v1410_v32 = vadd.f32 1.0, %v13132_v1  ;;  %v1368_v17 = vmul.f32 1.442695, %v1319_v46  ;;  %v1320_v56 = vsub.f32 0.0, %v14491_v63 }
 0x26e   : > { %13153 = vrcp.f32 %v1408_v13  ;;  %v13136_v48 = vpop.eup %13135  ;;  %11178 = vmatprep.mubr.msk.f32.mxu0 %vm534_vm0, %v14514_v27  ;;  %v1411_v9 = vadd.f32 1.0, %v13134_v37  ;;  %v1321_v3 = vsub.f32 0.0, %v14500_v25  ;;  %v14521_v62 = vadd.f32 %v14234_v29, %v1253_v20 }
 0x26f   : > { %13155 = vrcp.f32 %v1409_v61  ;;  %v13138_v57 = vpop.eup %13137  ;;  %v1497_v44 = vmul.f32 %v13136_v48, %v14327_v40  ;;  %v1322_v45 = vsub.f32 0.0, %v14505_v5  ;;  %v1517_v39 = vmul.f32 %v14400_v19, %v14251_v16 }
 0x270   : > { %13157 = vrcp.f32 %v1410_v32  ;;  %v13140_v35 = vpop.eup %13139  ;;  %v1412_v34 = vadd.f32 1.0, %v13138_v57  ;;  %v1323_v38 = vsub.f32 0.0, %v14510_v28  ;;  %v1518_v18 = vmul.f32 %v14407_v10, %v14254_v36 }
 0x271   : > { %13159 = vrcp.f32 %v1411_v9  ;;  %v13142_v23 = vpop.eup %13141  ;;  %1530 = vst.msk [vmem:[#allocation2 + $0x39] sm:$0xff] %vm534_vm0, %v1497_v44  ;;  %v1413_v29 = vadd.f32 1.0, %v13140_v35  ;;  %v1370_v40 = vmul.f32 1.442695, %v1320_v56  ;;  %v1324_v21 = vsub.f32 0.0, %v14521_v62  ;;  %1550 = vst.msk [vmem:[#allocation2 + $0x129] sm:$0xff] %vm534_vm0, %v1517_v39 }
 0x272   : > { %13161 = vpow2.f32 %v1366_v4  ;;  %v13144_v43 = vpop.eup %13143  ;;  %v1498_v16 = vmul.f32 %v13142_v23, %v14330_v55  ;;  %v1372_v19 = vmul.f32 1.442695, %v1321_v3  ;;  %1551 = vst.msk [vmem:[#allocation2 + $0x139] sm:$0xff] %vm534_vm0, %v1518_v18  ;;  %v1374_v10 = vmul.f32 1.442695, %v1322_v45 }
 0x273   : > { %13163 = vrcp.f32 %v1412_v34  ;;  %v1499_v36 = vmul.f32 %v13144_v43, %v14334_v59  ;;  %v1376_v14 = vmul.f32 1.442695, %v1323_v38  ;;  %v1378_v50 = vmul.f32 1.442695, %v1324_v21 }
 0x274   : > { %v13146_v6 = vpop.eup %13145  ;;  %13165 = vrcp.f32 %v1413_v29  ;;  %1531 = vst.msk [vmem:[#allocation2 + $0x49] sm:$0xff] %vm534_vm0, %v1498_v16 }
 0x275   : > { %v13148_v31 = vpop.eup %13147  ;;  %v1500_v26 = vmul.f32 %v13146_v6, %v14361_v7  ;;  %13167 = vpow2.f32 %v1368_v17  ;;  %1532 = vst.msk [vmem:[#allocation2 + $0x51] sm:$0xff] %vm534_vm0, %v1499_v36 }
 0x276   : > { %v13150_v46 = vpop.eup %13149  ;;  %v1501_v55 = vmul.f32 %v13148_v31, %v14368_v51  ;;  %13169 = vpow2.f32 %v1370_v40 }
 0x277   : > { %v13152_v60 = vpop.eup %13151  ;;  %1533 = vst.msk [vmem:[#allocation2 + $0x61] sm:$0xff] %vm534_vm0, %v1500_v26  ;;  %v1502_v59 = vmul.f32 %v13150_v46, %v14375_v0  ;;  %13171 = vpow2.f32 %v1372_v19 }
 0x278   : > { %v13154_v2 = vpop.eup %13153  ;;  %1534 = vst.msk [vmem:[#allocation2 + $0x69] sm:$0xff] %vm534_vm0, %v1501_v55  ;;  %v1503_v7 = vmul.f32 %v13152_v60, %v14378_v8  ;;  %13173 = vpow2.f32 %v1374_v10  ;;  %v14544_v20 = vld [vmem:[#allocation2 + $0x38] sm:$0xff] }
 0x279   : > { %v13156_v52 = vpop.eup %13155  ;;  %1535 = vst.msk [vmem:[#allocation2 + $0x79] sm:$0xff] %vm534_vm0, %v1502_v59  ;;  %v1504_v51 = vmul.f32 %v13154_v2, %v14404_v54  ;;  %13175 = vpow2.f32 %v1376_v14  ;;  %11179 = vmatmul.mubr.msk.f32.gmra.mrb[8].mxu0 %vm534_vm0, %v14544_v20 }
 0x27a   : > { %v13158_v53 = vpop.eup %13157  ;;  %1536 = vst.msk [vmem:[#allocation2 + $0x81] sm:$0xff] %vm534_vm0, %v1503_v7  ;;  %v1505_v0 = vmul.f32 %v13156_v52, %v14410_v11  ;;  %13177 = vpow2.f32 %v1378_v50 }
 0x27b   : > { %v13160_v42 = vpop.eup %13159  ;;  %1537 = vst.msk [vmem:[#allocation2 + $0x91] sm:$0xff] %vm534_vm0, %v1504_v51  ;;  %v1506_v8 = vmul.f32 %v13158_v53, %v14419_v41  ;;  %v14554_v1 = vld [vmem:[#allocation2 + $0x48] sm:$0xff]  ;;  %v14656_v51 = vld [vmem:[#allocation2 + $0x138] sm:$0xff]  ;;  %v14660_v53 = vld [vmem:[#allocation2 + $0x140] sm:$0xff] }
 0x27c   : > { %v13162_v13 = vpop.eup %13161  ;;  %1538 = vst.msk [vmem:[#allocation2 + $0x99] sm:$0xff] %vm534_vm0, %v1505_v0  ;;  %v1507_v54 = vmul.f32 %v13160_v42, %v14429_v49  ;;  %11181 = vmatprep.mubr.msk.f32.mxu0 %vm534_vm0, %v14554_v1  ;;  %v14560_v4 = vld [vmem:[#allocation2 + $0x50] sm:$0xff]  ;;  %v14668_v42 = vld [vmem:[#allocation2 + $0x158] sm:$0xff] }
 0x27d   : > { %v13164_v61 = vpop.eup %13163  ;;  %1539 = vst.msk [vmem:[#allocation2 + $0xa9] sm:$0xff] %vm534_vm0, %v1506_v8  ;;  %v1414_v11 = vadd.f32 1.0, %v13162_v13  ;;  %11182 = vmatmul.mubr.msk.f32.gmra.mrb[10].mxu0 %vm534_vm0, %v14560_v4  ;;  %v14664_v0 = vld [vmem:[#allocation2 + $0x150] sm:$0xff]  ;;  %v14672_v8 = vld [vmem:[#allocation2 + $0x168] sm:$0xff] }
 0x27e   : > { %v13166_v37 = vpop.eup %13165  ;;  %v14565_v41 = vld [vmem:[#allocation2 + $0x60] sm:$0xff]  ;;  %1540 = vst.msk [vmem:[#allocation2 + $0xb1] sm:$0xff] %vm534_vm0, %v1507_v54  ;;  %v1508_v32 = vmul.f32 %v13164_v61, %v14446_v47  ;;  %v14676_v54 = vld [vmem:[#allocation2 + $0x170] sm:$0xff] }
 0x27f   : > { %v13168_v49 = vpop.eup %13167  ;;  %11184 = vmatprep.mubr.msk.f32.mxu0 %vm534_vm0, %v14565_v41  ;;  %v1509_v17 = vmul.f32 %v13166_v37, %v14455_v15  ;;  %13179 = vrcp.f32 %v1414_v11  ;;  %v14573_v3 = vld [vmem:[#allocation2 + $0x68] sm:$0xff]  ;;  %v9838_v61 = vld [vmem:[%s17246_s5 + $0x50] sm:$0xff]  ;;  %v9839_v11 = vld [vmem:[%s17246_s5 + $0x58] sm:$0xff] }
 0x280   : > { %v13170_v56 = vpop.eup %13169  ;;  %1541 = vst.msk [vmem:[#allocation2 + $0xc1] sm:$0xff] %vm534_vm0, %v1508_v32  ;;  %v1415_v48 = vadd.f32 1.0, %v13168_v49  ;;  %v14578_v47 = vld [vmem:[#allocation2 + $0x78] sm:$0xff]  ;;  %v1956_v13 = vld [vmem:[#allocation2 + $0x1] sm:$0xff]  ;;  %v1957_v37 = vld [vmem:[#allocation2 + $0x9] sm:$0xff]  ;;  %v12279_v32 = vpack.c.bf16 %v9839_v11, %v9838_v61 }
 0x281   : > { %v13172_v9 = vpop.eup %13171  ;;  %1542 = vst.msk [vmem:[#allocation2 + $0xc9] sm:$0xff] %vm534_vm0, %v1509_v17  ;;  %v1416_v57 = vadd.f32 1.0, %v13170_v56  ;;  %11185 = vmatmul.mubr.msk.f32.gmra.mrb[12].mxu0 %vm534_vm0, %v14573_v3  ;;  %v14582_v38 = vld [vmem:[#allocation2 + $0x80] sm:$0xff]  ;;  %v9873_v17 = vld [vmem:[%s17246_s5 + $0x68] sm:$0xff]  ;;  %v14802_v61 = vld [vmem:[#allocation2 + $0x151] sm:$0xff] }
 0x282   : > { %v13174_v44 = vpop.eup %13173  ;;  %13181 = vrcp.f32 %v1415_v48  ;;  %v1417_v45 = vadd.f32 1.0, %v13172_v9  ;;  %11187 = vmatprep.mubr.msk.f32.mxu0 %vm534_vm0, %v14578_v47  ;;  %v14586_v23 = vld [vmem:[#allocation2 + $0x90] sm:$0xff]  ;;  %v9872_v49 = vld [vmem:[%s17246_s5 + $0x60] sm:$0xff]  ;;  %17437 = vst [vmem:[#allocation13_spill] sm:$0xff] %v14802_v61 }
 0x283   : > { %v13176_v15 = vpop.eup %13175  ;;  %13183 = vrcp.f32 %v1416_v57  ;;  %v1418_v39 = vadd.f32 1.0, %v13174_v44  ;;  %v14590_v40 = vld [vmem:[#allocation2 + $0x98] sm:$0xff]  ;;  %v14699_v48 = vpack.c.bf16 %v9873_v17, %v9872_v49  ;;  %v14701_v9 = vld [vmem:[#allocation2 + $0x21] sm:$0xff]  ;;  %v14714_v44 = vld [vmem:[#allocation2 + $0x49] sm:$0xff] }
 0x284   : > { %v13178_v35 = vpop.eup %13177  ;;  %13185 = vrcp.f32 %v1417_v45  ;;  %v1419_v34 = vadd.f32 1.0, %v13176_v15  ;;  %v14594_v21 = vld [vmem:[#allocation2 + $0xa8] sm:$0xff]  ;;  %v14694_v56 = vld [vmem:[#allocation2 + $0x19] sm:$0xff]  ;;  %v14705_v57 = vld [vmem:[#allocation2 + $0x31] sm:$0xff] }
 0x285   : > { %13187 = vrcp.f32 %v1418_v39  ;;  %v1420_v18 = vadd.f32 1.0, %v13178_v35  ;;  %11188 = vmatmul.mubr.msk.f32.gmra.mrb[14].mxu0 %vm534_vm0, %v14582_v38  ;;  %v14600_v6 = vld [vmem:[#allocation2 + $0xb0] sm:$0xff]  ;;  %v14722_v15 = vld [vmem:[#allocation2 + $0x61] sm:$0xff]  ;;  %v14730_v35 = vld [vmem:[#allocation2 + $0x79] sm:$0xff] }
 0x286   : > { %13189 = vrcp.f32 %v1419_v34  ;;  %11190 = vmatprep.mubr.msk.f32.mxu0 %vm534_vm0, %v14586_v23  ;;  %v14718_v45 = vld [vmem:[#allocation2 + $0x51] sm:$0xff]  ;;  %v14726_v39 = vld [vmem:[#allocation2 + $0x69] sm:$0xff]  ;;  %v14734_v34 = vld [vmem:[#allocation2 + $0x81] sm:$0xff] }
 0x287   : > { %13191 = vrcp.f32 %v1420_v18  ;;  %v14605_v31 = vld [vmem:[#allocation2 + $0xc0] sm:$0xff]  ;;  %v14738_v18 = vld [vmem:[#allocation2 + $0x91] sm:$0xff] }
 0x288   : > { %v14614_v50 = vld [vmem:[#allocation2 + $0xc8] sm:$0xff]  ;;  %v14806_v11 = vld [vmem:[#allocation2 + $0x159] sm:$0xff]  ;;  %v14814_v49 = vld [vmem:[#allocation2 + $0x171] sm:$0xff] }
 0x289   : > { %v13180_v29 = vpop.eup %13179  ;;  %11191 = vmatmul.mubr.msk.f32.gmra.mrb[16].mxu0 %vm534_vm0, %v14590_v40  ;;  %17438 = vst [vmem:[#allocation14_spill] sm:$0xff] %v14806_v11  ;;  %v9874_v17 = vld [vmem:[%s17246_s5 + $0x70] sm:$0xff] }
 0x28a   : > { %v1510_v43 = vmul.f32 %v13180_v29, %v14471_v33  ;;  %11193 = vmatprep.mubr.msk.f32.mxu0 %vm534_vm0, %v14594_v21  ;;  %v14742_v29 = vld [vmem:[#allocation2 + $0x99] sm:$0xff] }
 0x28c   : > { %v13182_v16 = vpop.eup %13181  ;;  %1543 = vst.msk [vmem:[#allocation2 + $0xd9] sm:$0xff] %vm534_vm0, %v1510_v43  ;;  %v14746_v43 = vld [vmem:[#allocation2 + $0xa9] sm:$0xff] }
 0x28d   : > { %v13184_v19 = vpop.eup %13183  ;;  %v1511_v36 = vmul.f32 %v13182_v16, %v14475_v30  ;;  %11194 = vmatmul.mubr.msk.f32.gmra.mrb[18].mxu0 %vm534_vm0, %v14600_v6  ;;  %v14750_v16 = vld [vmem:[#allocation2 + $0xb1] sm:$0xff] }
 0x28e   : > { %v13186_v10 = vpop.eup %13185  ;;  %v1512_v26 = vmul.f32 %v13184_v19, %v14491_v63  ;;  %11196 = vmatprep.mubr.msk.f32.mxu0 %vm534_vm0, %v14605_v31  ;;  %v14754_v19 = vld [vmem:[#allocation2 + $0xc1] sm:$0xff] }
 0x28f   : > { %v13188_v33 = vpop.eup %13187  ;;  %1544 = vst.msk [vmem:[#allocation2 + $0xe1] sm:$0xff] %vm534_vm0, %v1511_v36  ;;  %v1513_v14 = vmul.f32 %v13186_v10, %v14500_v25  ;;  %v14758_v36 = vld [vmem:[#allocation2 + $0xc9] sm:$0xff] }
 0x290   : > { %v13190_v46 = vpop.eup %13189  ;;  %1545 = vst.msk [vmem:[#allocation2 + $0xf1] sm:$0xff] %vm534_vm0, %v1512_v26  ;;  %v1514_v30 = vmul.f32 %v13188_v33, %v14505_v5 }
 0x291   : > { %v13192_v55 = vpop.eup %13191  ;;  %1546 = vst.msk [vmem:[#allocation2 + $0xf9] sm:$0xff] %vm534_vm0, %v1513_v14  ;;  %v1515_v63 = vmul.f32 %v13190_v46, %v14510_v28  ;;  %11197 = vmatmul.mubr.msk.f32.gmra.mrb[20].mxu0 %vm534_vm0, %v14614_v50 }
 0x292   : > { %1547 = vst.msk [vmem:[#allocation2 + $0x109] sm:$0xff] %vm534_vm0, %v1514_v30  ;;  %v1516_v60 = vmul.f32 %v13192_v55, %v14521_v62 }
 0x293   : > { %v14622_v25 = vld [vmem:[#allocation2 + $0xd8] sm:$0xff]  ;;  %1548 = vst.msk [vmem:[#allocation2 + $0x111] sm:$0xff] %vm534_vm0, %v1515_v63  ;;  %v14790_v63 = vld [vmem:[#allocation2 + $0x129] sm:$0xff] }
 0x294   : > { %11199 = vmatprep.mubr.msk.f32.mxu0 %vm534_vm0, %v14622_v25  ;;  %1549 = vst.msk [vmem:[#allocation2 + $0x121] sm:$0xff] %vm534_vm0, %v1516_v60  ;;  %v14762_v10 = vld [vmem:[#allocation2 + $0xd9] sm:$0xff] }
 0x295   : > { %v14794_v60 = vld [vmem:[#allocation2 + $0x139] sm:$0xff] }
 0x296   : > { %v14628_v5 = vld [vmem:[#allocation2 + $0xe0] sm:$0xff]  ;;  %17435 = vst [vmem:[#allocation11_spill] sm:$0xff] %v14794_v60 }
 0x297   : > { %11200 = vmatmul.mubr.msk.f32.gmra.mrb[22].mxu0 %vm534_vm0, %v14628_v5  ;;  %v14632_v28 = vld [vmem:[#allocation2 + $0xf0] sm:$0xff]  ;;  %v14766_v26 = vld [vmem:[#allocation2 + $0xe1] sm:$0xff] }
 0x298   : > { %11202 = vmatprep.mubr.msk.f32.mxu0 %vm534_vm0, %v14632_v28  ;;  %v14636_v62 = vld [vmem:[#allocation2 + $0xf8] sm:$0xff] }
 0x299   : > { %v14640_v59 = vld [vmem:[#allocation2 + $0x108] sm:$0xff]  ;;  %v14770_v33 = vld [vmem:[#allocation2 + $0xf1] sm:$0xff]  ;;  %v14774_v14 = vld [vmem:[#allocation2 + $0xf9] sm:$0xff] }
 0x29a   : > { %v14644_v2 = vld [vmem:[#allocation2 + $0x110] sm:$0xff] }
 0x29b   : > { %11203 = vmatmul.mubr.msk.f32.gmra.mrb[24].mxu0 %vm534_vm0, %v14636_v62  ;;  %v14648_v7 = vld [vmem:[#allocation2 + $0x120] sm:$0xff]  ;;  %v14652_v52 = vld [vmem:[#allocation2 + $0x128] sm:$0xff]  ;;  %v14782_v30 = vld [vmem:[#allocation2 + $0x111] sm:$0xff] }
 0x29c   : > { %11205 = vmatprep.mubr.msk.f32.mxu0 %vm534_vm0, %v14640_v59  ;;  %v14778_v46 = vld [vmem:[#allocation2 + $0x109] sm:$0xff]  ;;  %v14786_v55 = vld [vmem:[#allocation2 + $0x121] sm:$0xff] }
 0x29f   : > { %11206 = vmatmul.mubr.msk.f32.gmra.mrb[26].mxu0 %vm534_vm0, %v14644_v2 }
 0x2a0   : > { %11208 = vmatprep.mubr.msk.f32.mxu0 %vm534_vm0, %v14648_v7 }
 0x2a3   : > { %11209 = vmatmul.mubr.msk.f32.gmra.mrb[28].mxu0 %vm534_vm0, %v14652_v52 }
 0x2a4   : > { %11211 = vmatprep.mubr.msk.f32.mxu0 %vm534_vm0, %v14656_v51 }
 0x2a7   : > { %11212 = vmatmul.mubr.msk.f32.gmra.mrb[30].mxu0 %vm534_vm0, %v14660_v53 }
 0x2a8   : > { %11214 = vmatprep.mubr.msk.f32.mxu0 %vm534_vm0, %v14664_v0 }
 0x2ab   : > { %11215 = vmatmul.mubr.msk.f32.gmra.mrb[32].mxu0 %vm534_vm0, %v14668_v42 }
 0x2ac   : > { %11217 = vmatprep.mubr.msk.f32.mxu0 %vm534_vm0, %v14672_v8 }
 0x2af   : > { %11218 = vmatmul.mubr.msk.f32.gmra.mrb[34].mxu0 %vm534_vm0, %v14676_v54 }
 0x2b0   : > { %11228 = vmatprep.mubr.msk.f32.mxu0 %vm534_vm0, %v1956_v13  ;;  %v14798_v13 = vld [vmem:[#allocation2 + $0x141] sm:$0xff] }
 0x2b1   : > { %17436 = vst [vmem:[#allocation12_spill] sm:$0xff] %v14798_v13 }
 0x2b3   : > { %11229 = vmatmul.mubr.msk.f32.vlgmr.msra.gmra.mrb[4].mxu0 %vm534_vm0, %v1957_v37  ;;  %v14810_v37 = vld [vmem:[#allocation2 + $0x169] sm:$0xff] }
 0x2b4   : > { %12278 = vmatpush3.bf16.msra.mxu0 %v14178_v22  ;;  %11231 = vmatprep.mubr.msk.f32.mxu0 %vm534_vm0, %v14694_v56  ;;  %v14710_v22 = vld [vmem:[#allocation2 + $0x39] sm:$0xff]  ;;  %17439 = vst [vmem:[#allocation15_spill] sm:$0xff] %v14810_v37 }
 0x2b5   : > { %12280 = vmatprep.subr.bf16.mxu0 %v12279_v32 }
 0x2b7   : > { %11232 = vmatmul.mubr.msk.f32.gmra.mrb[6].mxu0 %vm534_vm0, %v14701_v9 }
 0x2b8   : > { %11234 = vmatprep.mubr.msk.f32.mxu0 %vm534_vm0, %v14705_v57  ;;  %12282 = vmatpush3.bf16.msra.mxu0 %v12279_v32  ;;  %v2346_v32 = vld [vmem:[#allocation2 + $0x2] sm:$0xff] }
 0x2b9   : > { %12284 = vmatprep.subr.bf16.mxu0 %v14699_v48 }
 0x2bb   : > { %11235 = vmatmul.mubr.msk.f32.gmra.mrb[8].mxu0 %vm534_vm0, %v14710_v22 }
 0x2bc   : > { %11237 = vmatprep.mubr.msk.f32.mxu0 %vm534_vm0, %v14714_v44 }
 0x2bf   : > { %11238 = vmatmul.mubr.msk.f32.gmra.mrb[10].mxu0 %vm534_vm0, %v14718_v45 }
 0x2c0   : > { %11240 = vmatprep.mubr.msk.f32.mxu0 %vm534_vm0, %v14722_v15 }
 0x2c3   : > { %11241 = vmatmul.mubr.msk.f32.gmra.mrb[12].mxu0 %vm534_vm0, %v14726_v39 }
 0x2c4   : > { %11243 = vmatprep.mubr.msk.f32.mxu0 %vm534_vm0, %v14730_v35 }
 0x2c7   : > { %11244 = vmatmul.mubr.msk.f32.gmra.mrb[14].mxu0 %vm534_vm0, %v14734_v34 }
 0x2c8   : > { %11246 = vmatprep.mubr.msk.f32.mxu0 %vm534_vm0, %v14738_v18 }
 0x2cb   : > { %11247 = vmatmul.mubr.msk.f32.gmra.mrb[16].mxu0 %vm534_vm0, %v14742_v29 }
 0x2cc   : > { %11249 = vmatprep.mubr.msk.f32.mxu0 %vm534_vm0, %v14746_v43 }
 0x2cf   : > { %11250 = vmatmul.mubr.msk.f32.gmra.mrb[18].mxu0 %vm534_vm0, %v14750_v16 }
 0x2d0   : > { %11252 = vmatprep.mubr.msk.f32.mxu0 %vm534_vm0, %v14754_v19 }
 0x2d3   : > { %11253 = vmatmul.mubr.msk.f32.gmra.mrb[20].mxu0 %vm534_vm0, %v14758_v36 }
 0x2d4   : > { %11255 = vmatprep.mubr.msk.f32.mxu0 %vm534_vm0, %v14762_v10 }
 0x2d7   : > { %11256 = vmatmul.mubr.msk.f32.gmra.mrb[22].mxu0 %vm534_vm0, %v14766_v26 }
 0x2d8   : > { %11258 = vmatprep.mubr.msk.f32.mxu0 %vm534_vm0, %v14770_v33 }
 0x2db   : > { %11259 = vmatmul.mubr.msk.f32.gmra.mrb[24].mxu0 %vm534_vm0, %v14774_v14 }
 0x2dc   : > { %11261 = vmatprep.mubr.msk.f32.mxu0 %vm534_vm0, %v14778_v46 }
 0x2df   : > { %11262 = vmatmul.mubr.msk.f32.gmra.mrb[26].mxu0 %vm534_vm0, %v14782_v30 }
 0x2e0   : > { %11264 = vmatprep.mubr.msk.f32.mxu0 %vm534_vm0, %v14786_v55 }
 0x2e3   : > { %11265 = vmatmul.mubr.msk.f32.gmra.mrb[28].mxu0 %vm534_vm0, %v14790_v63 }
 0x2e4   : > { %11267 = vmatprep.mubr.msk.f32.mxu0 %vm534_vm0, %v14794_v60  ;;  %v14832_v60 = vld [vmem:[#allocation2 + $0x1a] sm:$0xff] }
 0x2e7   : > { %11268 = vmatmul.mubr.msk.f32.gmra.mrb[30].mxu0 %vm534_vm0, %v14798_v13  ;;  %v9909_v13 = vld [vmem:[%s17246_s5 + $0x88] sm:$0xff] }
 0x2e8   : > { %11270 = vmatprep.mubr.msk.f32.mxu0 %vm534_vm0, %v14802_v61  ;;  %v12287_v61 = vpack.c.bf16 %v9875_v12, %v9874_v17  ;;  %v14839_v12 = vld [vmem:[#allocation2 + $0x22] sm:$0xff]  ;;  %v14843_v17 = vld [vmem:[#allocation2 + $0x32] sm:$0xff] }
 0x2e9   : > { %17440 = vst [vmem:[#allocation16_spill] sm:$0xff] %v14843_v17 }
 0x2eb   : > { %11271 = vmatmul.mubr.msk.f32.gmra.mrb[32].mxu0 %vm534_vm0, %v14806_v11  ;;  %v2347_v11 = vld [vmem:[#allocation2 + $0xa] sm:$0xff] }
 0x2ec   : > { %11273 = vmatprep.mubr.msk.f32.mxu0 %vm534_vm0, %v14810_v37  ;;  %v9908_v37 = vld [vmem:[%s17246_s5 + $0x80] sm:$0xff] }
 0x2ef   : > { %11274 = vmatmul.mubr.msk.f32.gmra.mrb[34].mxu0 %vm534_vm0, %v14814_v49 }
 0x2f0   : > { %11284 = vmatprep.mubr.msk.f32.mxu0 %vm534_vm0, %v2346_v32  ;;  %v14837_v32 = vpack.c.bf16 %v9909_v13, %v9908_v37  ;;  %v14852_v13 = vld [vmem:[#allocation2 + $0x4a] sm:$0xff]  ;;  %v14860_v37 = vld [vmem:[#allocation2 + $0x62] sm:$0xff] }
 0x2f1   : > { %17442 = vst [vmem:[#allocation18_spill] sm:$0xff] %v14852_v13  ;;  %17444 = vst [vmem:[#allocation20_spill] sm:$0xff] %v14860_v37 }
 0x2f3   : > { %11285 = vmatmul.mubr.msk.f32.vlgmr.msra.gmra.mrb[4].mxu0 %vm534_vm0, %v2347_v11  ;;  %v14856_v11 = vld [vmem:[#allocation2 + $0x52] sm:$0xff] }
 0x2f4   : > { %12286 = vmatpush3.bf16.msra.mxu0 %v14699_v48  ;;  %11287 = vmatprep.mubr.msk.f32.mxu0 %vm534_vm0, %v14832_v60  ;;  %v14848_v48 = vld [vmem:[#allocation2 + $0x3a] sm:$0xff]  ;;  %17443 = vst [vmem:[#allocation19_spill] sm:$0xff] %v14856_v11 }
 0x2f5   : > { %12288 = vmatprep.subr.bf16.mxu0 %v12287_v61  ;;  %17441 = vst [vmem:[#allocation17_spill] sm:$0xff] %v14848_v48 }
 0x2f7   : > { %11288 = vmatmul.mubr.msk.f32.gmra.mrb[6].mxu0 %vm534_vm0, %v14839_v12 }
 0x2f8   : > { %11290 = vmatprep.mubr.msk.f32.mxu0 %vm534_vm0, %v14843_v17  ;;  %12290 = vmatpush3.bf16.msra.mxu0 %v12287_v61  ;;  %v14864_v61 = vld [vmem:[#allocation2 + $0x6a] sm:$0xff] }
 0x2f9   : > { %12292 = vmatprep.subr.bf16.mxu0 %v14837_v32  ;;  %17445 = vst [vmem:[#allocation21_spill] sm:$0xff] %v14864_v61  ;;  %v9945_v17 = vld [vmem:[%s17246_s5 + $0xa8] sm:$0xff] }
 0x2fb   : > { %11291 = vmatmul.mubr.msk.f32.gmra.mrb[8].mxu0 %vm534_vm0, %v14848_v48  ;;  %v14868_v48 = vld [vmem:[#allocation2 + $0x7a] sm:$0xff] }
 0x2fc   : > { %11293 = vmatprep.mubr.msk.f32.mxu0 %vm534_vm0, %v14852_v13  ;;  %17446 = vst [vmem:[#allocation22_spill] sm:$0xff] %v14868_v48  ;;  %v14872_v13 = vld [vmem:[#allocation2 + $0x82] sm:$0xff] }
 0x2fd   : > { %17447 = vst [vmem:[#allocation23_spill] sm:$0xff] %v14872_v13 }
 0x2ff   : > { %11294 = vmatmul.mubr.msk.f32.gmra.mrb[10].mxu0 %vm534_vm0, %v14856_v11  ;;  %v14876_v11 = vld [vmem:[#allocation2 + $0x92] sm:$0xff] }
 0x300   : > { %11296 = vmatprep.mubr.msk.f32.mxu0 %vm534_vm0, %v14860_v37  ;;  %17448 = vst [vmem:[#allocation24_spill] sm:$0xff] %v14876_v11  ;;  %v14880_v37 = vld [vmem:[#allocation2 + $0x9a] sm:$0xff] }
 0x301   : > { %17449 = vst [vmem:[#allocation25_spill] sm:$0xff] %v14880_v37 }
 0x303   : > { %11297 = vmatmul.mubr.msk.f32.gmra.mrb[12].mxu0 %vm534_vm0, %v14864_v61  ;;  %v14884_v61 = vld [vmem:[#allocation2 + $0xaa] sm:$0xff] }
 0x304   : > { %11299 = vmatprep.mubr.msk.f32.mxu0 %vm534_vm0, %v14868_v48  ;;  %17450 = vst [vmem:[#allocation26_spill] sm:$0xff] %v14884_v61  ;;  %v14888_v48 = vld [vmem:[#allocation2 + $0xb2] sm:$0xff] }
 0x305   : > { %17451 = vst [vmem:[#allocation27_spill] sm:$0xff] %v14888_v48 }
 0x307   : > { %11300 = vmatmul.mubr.msk.f32.gmra.mrb[14].mxu0 %vm534_vm0, %v14872_v13  ;;  %v14892_v13 = vld [vmem:[#allocation2 + $0xc2] sm:$0xff] }
 0x308   : > { %11302 = vmatprep.mubr.msk.f32.mxu0 %vm534_vm0, %v14876_v11  ;;  %17452 = vst [vmem:[#allocation28_spill] sm:$0xff] %v14892_v13  ;;  %v14896_v11 = vld [vmem:[#allocation2 + $0xca] sm:$0xff] }
 0x309   : > { %17453 = vst [vmem:[#allocation29_spill] sm:$0xff] %v14896_v11 }
 0x30b   : > { %11303 = vmatmul.mubr.msk.f32.gmra.mrb[16].mxu0 %vm534_vm0, %v14880_v37  ;;  %v14900_v37 = vld [vmem:[#allocation2 + $0xda] sm:$0xff] }
 0x30c   : > { %11305 = vmatprep.mubr.msk.f32.mxu0 %vm534_vm0, %v14884_v61  ;;  %17454 = vst [vmem:[#allocation30_spill] sm:$0xff] %v14900_v37  ;;  %v14904_v61 = vld [vmem:[#allocation2 + $0xe2] sm:$0xff] }
 0x30d   : > { %17455 = vst [vmem:[#allocation31_spill] sm:$0xff] %v14904_v61 }
 0x30f   : > { %11306 = vmatmul.mubr.msk.f32.gmra.mrb[18].mxu0 %vm534_vm0, %v14888_v48  ;;  %v14908_v48 = vld [vmem:[#allocation2 + $0xf2] sm:$0xff] }
 0x310   : > { %11308 = vmatprep.mubr.msk.f32.mxu0 %vm534_vm0, %v14892_v13  ;;  %17456 = vst [vmem:[#allocation32_spill] sm:$0xff] %v14908_v48  ;;  %v14912_v13 = vld [vmem:[#allocation2 + $0xfa] sm:$0xff] }
 0x311   : > { %17457 = vst [vmem:[#allocation33_spill] sm:$0xff] %v14912_v13 }
 0x313   : > { %11309 = vmatmul.mubr.msk.f32.gmra.mrb[20].mxu0 %vm534_vm0, %v14896_v11  ;;  %v14916_v11 = vld [vmem:[#allocation2 + $0x10a] sm:$0xff] }
 0x314   : > { %11311 = vmatprep.mubr.msk.f32.mxu0 %vm534_vm0, %v14900_v37  ;;  %17458 = vst [vmem:[#allocation34_spill] sm:$0xff] %v14916_v11  ;;  %v14920_v37 = vld [vmem:[#allocation2 + $0x112] sm:$0xff] }
 0x315   : > { %17459 = vst [vmem:[#allocation35_spill] sm:$0xff] %v14920_v37 }
 0x317   : > { %11312 = vmatmul.mubr.msk.f32.gmra.mrb[22].mxu0 %vm534_vm0, %v14904_v61  ;;  %v14924_v61 = vld [vmem:[#allocation2 + $0x122] sm:$0xff] }
 0x318   : > { %11314 = vmatprep.mubr.msk.f32.mxu0 %vm534_vm0, %v14908_v48  ;;  %17460 = vst [vmem:[#allocation36_spill] sm:$0xff] %v14924_v61  ;;  %v14928_v48 = vld [vmem:[#allocation2 + $0x12a] sm:$0xff] }
 0x319   : > { %17461 = vst [vmem:[#allocation37_spill] sm:$0xff] %v14928_v48 }
 0x31b   : > { %11315 = vmatmul.mubr.msk.f32.gmra.mrb[24].mxu0 %vm534_vm0, %v14912_v13  ;;  %v14932_v13 = vld [vmem:[#allocation2 + $0x13a] sm:$0xff] }
 0x31c   : > { %11317 = vmatprep.mubr.msk.f32.mxu0 %vm534_vm0, %v14916_v11  ;;  %17462 = vst [vmem:[#allocation38_spill] sm:$0xff] %v14932_v13  ;;  %v14936_v11 = vld [vmem:[#allocation2 + $0x142] sm:$0xff] }
 0x31d   : > { %17463 = vst [vmem:[#allocation39_spill] sm:$0xff] %v14936_v11 }
 0x31f   : > { %11318 = vmatmul.mubr.msk.f32.gmra.mrb[26].mxu0 %vm534_vm0, %v14920_v37  ;;  %v14940_v37 = vld [vmem:[#allocation2 + $0x152] sm:$0xff] }
 0x320   : > { %11320 = vmatprep.mubr.msk.f32.mxu0 %vm534_vm0, %v14924_v61  ;;  %17464 = vst [vmem:[#allocation40_spill] sm:$0xff] %v14940_v37  ;;  %v14944_v61 = vld [vmem:[#allocation2 + $0x15a] sm:$0xff] }
 0x321   : > { %17465 = vst [vmem:[#allocation41_spill] sm:$0xff] %v14944_v61 }
 0x323   : > { %11321 = vmatmul.mubr.msk.f32.gmra.mrb[28].mxu0 %vm534_vm0, %v14928_v48  ;;  %v14948_v48 = vld [vmem:[#allocation2 + $0x16a] sm:$0xff] }
 0x324   : > { %11323 = vmatprep.mubr.msk.f32.mxu0 %vm534_vm0, %v14932_v13  ;;  %17466 = vst [vmem:[#allocation42_spill] sm:$0xff] %v14948_v48  ;;  %v14952_v13 = vld [vmem:[#allocation2 + $0x172] sm:$0xff] }
 0x325   : > { %17467 = vst [vmem:[#allocation43_spill] sm:$0xff] %v14952_v13 }
 0x327   : > { %11324 = vmatmul.mubr.msk.f32.gmra.mrb[30].mxu0 %vm534_vm0, %v14936_v11  ;;  %v9910_v11 = vld [vmem:[%s17246_s5 + $0x90] sm:$0xff] }
 0x328   : > { %11326 = vmatprep.mubr.msk.f32.mxu0 %vm534_vm0, %v14940_v37  ;;  %v9911_v37 = vld [vmem:[%s17246_s5 + $0x98] sm:$0xff] }
 0x32b   : > { %11327 = vmatmul.mubr.msk.f32.gmra.mrb[32].mxu0 %vm534_vm0, %v14944_v61  ;;  %v12295_v61 = vpack.c.bf16 %v9911_v37, %v9910_v11  ;;  %v17475_v37 = vld [vmem:[#allocation18_spill] sm:$0xff] }
 0x32c   : > { %11329 = vmatprep.mubr.msk.f32.mxu0 %vm534_vm0, %v14948_v48  ;;  %v9944_v48 = vld [vmem:[%s17246_s5 + $0xa0] sm:$0xff] }
 0x32f   : > { %11330 = vmatmul.mubr.msk.f32.gmra.mrb[34].mxu0 %vm534_vm0, %v14952_v13  ;;  %v12299_v13 = vpack.c.bf16 %v9945_v17, %v9944_v48  ;;  %v10016_v17 = vld [vmem:[%s17246_s5 + $0xe0] sm:$0xff]  ;;  %v10017_v48 = vld [vmem:[%s17246_s5 + $0xe8] sm:$0xff] }
 0x330   : > { %11340 = vmatprep.mubr.msk.f32.mxu0 %vm534_vm0, %v14497_v24  ;;  %v15029_v24 = vld [vmem:[#allocation2 + $0x180] sm:$0xff]  ;;  %v15135_v11 = vpack.c.bf16 %v10017_v48, %v10016_v17  ;;  %v17488_v48 = vld [vmem:[#allocation31_spill] sm:$0xff] }
 0x331   : > { %v17487_v17 = vld [vmem:[#allocation30_spill] sm:$0xff] }
 0x333   : > { %11341 = vmatmul.mubr.msk.f32.vlgmr.msra.gmra.mrb[4].mxu0 %vm534_vm0, %v14507_v58  ;;  %v15033_v58 = vld [vmem:[#allocation2 + $0x188] sm:$0xff] }
 0x334   : > { %12294 = vmatpush3.bf16.msra.mxu0 %v14837_v32  ;;  %11343 = vmatprep.mubr.msk.f32.mxu0 %vm534_vm0, %v14514_v27  ;;  %v9946_v27 = vld [vmem:[%s17246_s5 + $0xb0] sm:$0xff] }
 0x335   : > { %12296 = vmatprep.subr.bf16.mxu0 %v12295_v61 }
 0x337   : > { %11344 = vmatmul.mubr.msk.f32.gmra.mrb[6].mxu0 %vm534_vm0, %v14544_v20  ;;  %v9947_v20 = vld [vmem:[%s17246_s5 + $0xb8] sm:$0xff] }
 0x338   : > { %11346 = vmatprep.mubr.msk.f32.mxu0 %vm534_vm0, %v14554_v1  ;;  %12298 = vmatpush3.bf16.msra.mxu0 %v12295_v61  ;;  %v12303_v1 = vpack.c.bf16 %v9947_v20, %v9946_v27  ;;  %v17476_v61 = vld [vmem:[#allocation19_spill] sm:$0xff]  ;;  %v17478_v27 = vld [vmem:[#allocation21_spill] sm:$0xff]  ;;  %v17479_v20 = vld [vmem:[#allocation22_spill] sm:$0xff] }
 0x339   : > { %12300 = vmatprep.subr.bf16.mxu0 %v12299_v13 }
 0x33b   : > { %11347 = vmatmul.mubr.msk.f32.gmra.mrb[8].mxu0 %vm534_vm0, %v14560_v4  ;;  %v9980_v4 = vld [vmem:[%s17246_s5 + $0xc0] sm:$0xff] }
 0x33c   : > { %11349 = vmatprep.mubr.msk.f32.mxu0 %vm534_vm0, %v14565_v41  ;;  %v9981_v41 = vld [vmem:[%s17246_s5 + $0xc8] sm:$0xff] }
 0x33f   : > { %11350 = vmatmul.mubr.msk.f32.gmra.mrb[10].mxu0 %vm534_vm0, %v14573_v3  ;;  %v12307_v3 = vpack.c.bf16 %v9981_v41, %v9980_v4  ;;  %v17481_v4 = vld [vmem:[#allocation24_spill] sm:$0xff]  ;;  %v17482_v41 = vld [vmem:[#allocation25_spill] sm:$0xff] }
 0x340   : > { %11352 = vmatprep.mubr.msk.f32.mxu0 %vm534_vm0, %v14578_v47  ;;  %v17468_v47 = vld [vmem:[#allocation11_spill] sm:$0xff] }
 0x343   : > { %11353 = vmatmul.mubr.msk.f32.gmra.mrb[12].mxu0 %vm534_vm0, %v14582_v38  ;;  %v17469_v38 = vld [vmem:[#allocation12_spill] sm:$0xff] }
 0x344   : > { %11355 = vmatprep.mubr.msk.f32.mxu0 %vm534_vm0, %v14586_v23  ;;  %v17470_v23 = vld [vmem:[#allocation13_spill] sm:$0xff] }
 0x347   : > { %11356 = vmatmul.mubr.msk.f32.gmra.mrb[14].mxu0 %vm534_vm0, %v14590_v40  ;;  %v17471_v40 = vld [vmem:[#allocation14_spill] sm:$0xff] }
 0x348   : > { %11358 = vmatprep.mubr.msk.f32.mxu0 %vm534_vm0, %v14594_v21  ;;  %v17472_v21 = vld [vmem:[#allocation15_spill] sm:$0xff] }
 0x34b   : > { %11359 = vmatmul.mubr.msk.f32.gmra.mrb[16].mxu0 %vm534_vm0, %v14600_v6  ;;  %v15109_v6 = vld [vmem:[#allocation2 + $0x181] sm:$0xff] }
 0x34c   : > { %11361 = vmatprep.mubr.msk.f32.mxu0 %vm534_vm0, %v14605_v31  ;;  %v15113_v31 = vld [vmem:[#allocation2 + $0x189] sm:$0xff] }
 0x34f   : > { %11362 = vmatmul.mubr.msk.f32.gmra.mrb[18].mxu0 %vm534_vm0, %v14614_v50 }
 0x350   : > { %11364 = vmatprep.mubr.msk.f32.mxu0 %vm534_vm0, %v14622_v25 }
 0x353   : > { %11365 = vmatmul.mubr.msk.f32.gmra.mrb[20].mxu0 %vm534_vm0, %v14628_v5 }
 0x354   : > { %11367 = vmatprep.mubr.msk.f32.mxu0 %vm534_vm0, %v14632_v28 }
 0x357   : > { %11368 = vmatmul.mubr.msk.f32.gmra.mrb[22].mxu0 %vm534_vm0, %v14636_v62 }
 0x358   : > { %11370 = vmatprep.mubr.msk.f32.mxu0 %vm534_vm0, %v14640_v59 }
 0x35b   : > { %11371 = vmatmul.mubr.msk.f32.gmra.mrb[24].mxu0 %vm534_vm0, %v14644_v2 }
 0x35c   : > { %11373 = vmatprep.mubr.msk.f32.mxu0 %vm534_vm0, %v14648_v7 }
 0x35f   : > { %11374 = vmatmul.mubr.msk.f32.gmra.mrb[26].mxu0 %vm534_vm0, %v14652_v52 }
 0x360   : > { %11376 = vmatprep.mubr.msk.f32.mxu0 %vm534_vm0, %v14656_v51 }
 0x363   : > { %11377 = vmatmul.mubr.msk.f32.gmra.mrb[28].mxu0 %vm534_vm0, %v14660_v53 }
 0x364   : > { %11379 = vmatprep.mubr.msk.f32.mxu0 %vm534_vm0, %v14664_v0 }
 0x367   : > { %11380 = vmatmul.mubr.msk.f32.gmra.mrb[30].mxu0 %vm534_vm0, %v14668_v42 }
 0x368   : > { %11382 = vmatprep.mubr.msk.f32.mxu0 %vm534_vm0, %v14672_v8 }
 0x36b   : > { %11383 = vmatmul.mubr.msk.f32.gmra.mrb[32].mxu0 %vm534_vm0, %v14676_v54 }
 0x36c   : > { %11385 = vmatprep.mubr.msk.f32.mxu0 %vm534_vm0, %v15029_v24 }
 0x36f   : > { %11386 = vmatmul.mubr.msk.f32.gmra.mrb[34].mxu0 %vm534_vm0, %v15033_v58 }
 0x370   : > { %11396 = vmatprep.mubr.msk.f32.mxu0 %vm534_vm0, %v14694_v56  ;;  %v9982_v56 = vld [vmem:[%s17246_s5 + $0xd0] sm:$0xff] }
 0x373   : > { %11397 = vmatmul.mubr.msk.f32.vlgmr.msra.gmra.mrb[4].mxu0 %vm534_vm0, %v14701_v9  ;;  %v9983_v9 = vld [vmem:[%s17246_s5 + $0xd8] sm:$0xff] }
 0x374   : > { %12302 = vmatpush3.bf16.msra.mxu0 %v12299_v13  ;;  %11399 = vmatprep.mubr.msk.f32.mxu0 %vm534_vm0, %v14705_v57  ;;  %v12311_v32 = vpack.c.bf16 %v9983_v9, %v9982_v56  ;;  %v17473_v13 = vld [vmem:[#allocation16_spill] sm:$0xff]  ;;  %v17484_v56 = vld [vmem:[#allocation27_spill] sm:$0xff] }
 0x375   : > { %12304 = vmatprep.subr.bf16.mxu0 %v12303_v1  ;;  %v17485_v9 = vld [vmem:[#allocation28_spill] sm:$0xff] }
 0x377   : > { %11400 = vmatmul.mubr.msk.f32.gmra.mrb[6].mxu0 %vm534_vm0, %v14710_v22 }
 0x378   : > { %11402 = vmatprep.mubr.msk.f32.mxu0 %vm534_vm0, %v14714_v44  ;;  %12306 = vmatpush3.bf16.msra.mxu0 %v12303_v1  ;;  %v17480_v1 = vld [vmem:[#allocation23_spill] sm:$0xff] }
 0x379   : > { %12308 = vmatprep.subr.bf16.mxu0 %v12307_v3 }
 0x37b   : > { %11403 = vmatmul.mubr.msk.f32.gmra.mrb[8].mxu0 %vm534_vm0, %v14718_v45 }
 0x37c   : > { %11405 = vmatprep.mubr.msk.f32.mxu0 %vm534_vm0, %v14722_v15 }
 0x37f   : > { %11406 = vmatmul.mubr.msk.f32.gmra.mrb[10].mxu0 %vm534_vm0, %v14726_v39 }
 0x380   : > { %11408 = vmatprep.mubr.msk.f32.mxu0 %vm534_vm0, %v14730_v35 }
 0x383   : > { %11409 = vmatmul.mubr.msk.f32.gmra.mrb[12].mxu0 %vm534_vm0, %v14734_v34 }
 0x384   : > { %11411 = vmatprep.mubr.msk.f32.mxu0 %vm534_vm0, %v14738_v18 }
 0x387   : > { %11412 = vmatmul.mubr.msk.f32.gmra.mrb[14].mxu0 %vm534_vm0, %v14742_v29 }
 0x388   : > { %11414 = vmatprep.mubr.msk.f32.mxu0 %vm534_vm0, %v14746_v43 }
 0x38b   : > { %11415 = vmatmul.mubr.msk.f32.gmra.mrb[16].mxu0 %vm534_vm0, %v14750_v16 }
 0x38c   : > { %11417 = vmatprep.mubr.msk.f32.mxu0 %vm534_vm0, %v14754_v19 }
 0x38f   : > { %11418 = vmatmul.mubr.msk.f32.gmra.mrb[18].mxu0 %vm534_vm0, %v14758_v36 }
 0x390   : > { %11420 = vmatprep.mubr.msk.f32.mxu0 %vm534_vm0, %v14762_v10 }
 0x393   : > { %11421 = vmatmul.mubr.msk.f32.gmra.mrb[20].mxu0 %vm534_vm0, %v14766_v26 }
 0x394   : > { %11423 = vmatprep.mubr.msk.f32.mxu0 %vm534_vm0, %v14770_v33 }
 0x397   : > { %11424 = vmatmul.mubr.msk.f32.gmra.mrb[22].mxu0 %vm534_vm0, %v14774_v14 }
 0x398   : > { %11426 = vmatprep.mubr.msk.f32.mxu0 %vm534_vm0, %v14778_v46 }
 0x39b   : > { %11427 = vmatmul.mubr.msk.f32.gmra.mrb[24].mxu0 %vm534_vm0, %v14782_v30 }
 0x39c   : > { %11429 = vmatprep.mubr.msk.f32.mxu0 %vm534_vm0, %v14786_v55 }
 0x39f   : > { %11430 = vmatmul.mubr.msk.f32.gmra.mrb[26].mxu0 %vm534_vm0, %v14790_v63 }
 0x3a0   : > { %11432 = vmatprep.mubr.msk.f32.mxu0 %vm534_vm0, %v17468_v47 }
 0x3a3   : > { %11433 = vmatmul.mubr.msk.f32.gmra.mrb[28].mxu0 %vm534_vm0, %v17469_v38 }
 0x3a4   : > { %11435 = vmatprep.mubr.msk.f32.mxu0 %vm534_vm0, %v17470_v23 }
 0x3a7   : > { %11436 = vmatmul.mubr.msk.f32.gmra.mrb[30].mxu0 %vm534_vm0, %v17471_v40 }
 0x3a8   : > { %11438 = vmatprep.mubr.msk.f32.mxu0 %vm534_vm0, %v17472_v21 }
 0x3ab   : > { %11439 = vmatmul.mubr.msk.f32.gmra.mrb[32].mxu0 %vm534_vm0, %v14814_v49 }
 0x3ac   : > { %11441 = vmatprep.mubr.msk.f32.mxu0 %vm534_vm0, %v15109_v6 }
 0x3af   : > { %11442 = vmatmul.mubr.msk.f32.gmra.mrb[34].mxu0 %vm534_vm0, %v15113_v31 }
 0x3b0   : > { %11452 = vmatprep.mubr.msk.f32.mxu0 %vm534_vm0, %v14832_v60  ;;  %v17474_v60 = vld [vmem:[#allocation17_spill] sm:$0xff] }
 0x3b3   : > { %11453 = vmatmul.mubr.msk.f32.vlgmr.msra.gmra.mrb[4].mxu0 %vm534_vm0, %v14839_v12  ;;  %v17477_v12 = vld [vmem:[#allocation20_spill] sm:$0xff] }
 0x3b4   : > { %12310 = vmatpush3.bf16.msra.mxu0 %v12307_v3  ;;  %11455 = vmatprep.mubr.msk.f32.mxu0 %vm534_vm0, %v17473_v13  ;;  %v17483_v3 = vld [vmem:[#allocation26_spill] sm:$0xff] }
 0x3b5   : > { %12312 = vmatprep.subr.bf16.mxu0 %v12311_v32 }
 0x3b7   : > { %11456 = vmatmul.mubr.msk.f32.gmra.mrb[6].mxu0 %vm534_vm0, %v17474_v60 }
 0x3b8   : > { %11458 = vmatprep.mubr.msk.f32.mxu0 %vm534_vm0, %v17475_v37  ;;  %12314 = vmatpush3.bf16.msra.mxu0 %v12311_v32  ;;  %v17486_v32 = vld [vmem:[#allocation29_spill] sm:$0xff] }
 0x3b9   : > { %12316 = vmatprep.subr.bf16.mxu0 %v15135_v11 }
 0x3bb   : > { %11459 = vmatmul.mubr.msk.f32.gmra.mrb[8].mxu0 %vm534_vm0, %v17476_v61 }
 0x3bc   : > { %11461 = vmatprep.mubr.msk.f32.mxu0 %vm534_vm0, %v17477_v12  ;;  %v3912_v12 = vld [vmem:[#allocation2 + $0x68] sm:$0xff] }
 0x3bf   : > { %11462 = vmatmul.mubr.msk.f32.gmra.mrb[10].mxu0 %vm534_vm0, %v17478_v27  ;;  %v3911_v27 = vld [vmem:[#allocation2 + $0x60] sm:$0xff] }
 0x3c0   : > { %11464 = vmatprep.mubr.msk.f32.mxu0 %vm534_vm0, %v17479_v20  ;;  %v17499_v20 = vld [vmem:[#allocation41_spill] sm:$0xff] }
 0x3c3   : > { %11465 = vmatmul.mubr.msk.f32.gmra.mrb[12].mxu0 %vm534_vm0, %v17480_v1 }
 0x3c4   : > { %11467 = vmatprep.mubr.msk.f32.mxu0 %vm534_vm0, %v17481_v4  ;;  %v17489_v4 = vld [vmem:[#allocation32_spill] sm:$0xff] }
 0x3c7   : > { %11468 = vmatmul.mubr.msk.f32.gmra.mrb[14].mxu0 %vm534_vm0, %v17482_v41  ;;  %v17490_v41 = vld [vmem:[#allocation33_spill] sm:$0xff] }
 0x3c8   : > { %11470 = vmatprep.mubr.msk.f32.mxu0 %vm534_vm0, %v17483_v3  ;;  %v17491_v3 = vld [vmem:[#allocation34_spill] sm:$0xff] }
 0x3cb   : > { %11471 = vmatmul.mubr.msk.f32.gmra.mrb[16].mxu0 %vm534_vm0, %v17484_v56  ;;  %v17492_v56 = vld [vmem:[#allocation35_spill] sm:$0xff] }
 0x3cc   : > { %11473 = vmatprep.mubr.msk.f32.mxu0 %vm534_vm0, %v17485_v9  ;;  %v17493_v9 = vld [vmem:[#allocation36_spill] sm:$0xff] }
 0x3cf   : > { %11474 = vmatmul.mubr.msk.f32.gmra.mrb[18].mxu0 %vm534_vm0, %v17486_v32  ;;  %v17494_v32 = vld [vmem:[#allocation37_spill] sm:$0xff] }
 0x3d0   : > { %11476 = vmatprep.mubr.msk.f32.mxu0 %vm534_vm0, %v17487_v17  ;;  %v17495_v17 = vld [vmem:[#allocation38_spill] sm:$0xff] }
 0x3d3   : > { %11477 = vmatmul.mubr.msk.f32.gmra.mrb[20].mxu0 %vm534_vm0, %v17488_v48  ;;  %v17496_v48 = vld [vmem:[#allocation39_spill] sm:$0xff] }
 0x3d4   : > { %11479 = vmatprep.mubr.msk.f32.mxu0 %vm534_vm0, %v17489_v4  ;;  %v5085_v4 = vld [vmem:[%s17255_s14] sm:$0xff] }
 0x3d7   : > { %11480 = vmatmul.mubr.msk.f32.gmra.mrb[22].mxu0 %vm534_vm0, %v17490_v41 }
 0x3d8   : > { %11482 = vmatprep.mubr.msk.f32.mxu0 %vm534_vm0, %v17491_v3  ;;  %v5086_v3 = vld [vmem:[%s17255_s14 + $0x8] sm:$0xff] }
 0x3d9   : > { %v12332_v41 = vpack.c.bf16 %v5086_v3, %v5085_v4  ;;  %v17500_v4 = vld [vmem:[#allocation42_spill] sm:$0xff]  ;;  %v5090_v3 = vld [vmem:[%s17255_s14 + $0x28] sm:$0xff] }
 0x3db   : > { %11483 = vmatmul.mubr.msk.f32.gmra.mrb[24].mxu0 %vm534_vm0, %v17492_v56  ;;  %12333 = vmatpush3.bf16.msra.mxu1 %v12332_v41  ;;  %v5088_v56 = vld [vmem:[%s17255_s14 + $0x18] sm:$0xff]  ;;  %v5089_v41 = vld [vmem:[%s17255_s14 + $0x20] sm:$0xff] }
 0x3dc   : > { %11485 = vmatprep.mubr.msk.f32.mxu0 %vm534_vm0, %v17493_v9  ;;  %v17497_v9 = vld [vmem:[#allocation40_spill] sm:$0xff] }
 0x3df   : > { %11486 = vmatmul.mubr.msk.f32.gmra.mrb[26].mxu0 %vm534_vm0, %v17494_v32  ;;  %v17498_v32 = vmov 0.0|0.0  }
 0x3e0   : > { %11488 = vmatprep.mubr.msk.f32.mxu0 %vm534_vm0, %v17495_v17  ;;  %12334 = vmatprep.subr.bf16.mxu1 %v17498_v32  ;;  %v5087_v17 = vld [vmem:[%s17255_s14 + $0x10] sm:$0xff] }
 0x3e1   : > { %v12335_v1 = vpack.c.bf16 %v5088_v56, %v5087_v17  ;;  %v15212_v56 = vld [vmem:[#allocation2 + $0x182] sm:$0xff]  ;;  %v5092_v17 = vld [vmem:[%s17255_s14 + $0x38] sm:$0xff] }
 0x3e2   : > { %17502 = vst [vmem:[#allocation11_spill] sm:$0xff] %v15212_v56 }
 0x3e3   : > { %11489 = vmatmul.mubr.msk.f32.gmra.mrb[28].mxu0 %vm534_vm0, %v17496_v48  ;;  %12336 = vmatpush3.bf16.msra.mxu1 %v12335_v1  ;;  %v17501_v48 = vld [vmem:[#allocation43_spill] sm:$0xff]  ;;  %v5091_v1 = vld [vmem:[%s17255_s14 + $0x30] sm:$0xff] }
 0x3e4   : > { %11491 = vmatprep.mubr.msk.f32.mxu0 %vm534_vm0, %v17497_v9  ;;  %12337 = vmatprep.subr.bf16.mxu1 %v17498_v32  ;;  %v12338_v9 = vpack.c.bf16 %v5090_v3, %v5089_v41  ;;  %v12341_v41 = vpack.c.bf16 %v5092_v17, %v5091_v1  ;;  %v15223_v3 = vld [vmem:[#allocation2 + $0x18a] sm:$0xff]  ;;  %v5077_v17 = vld [vmem:[%s533_s23] sm:$0x1]  ;;  %s10422_s23 = sshll.u32 %s13535_s25, 12  ;;  %s17200_s25 = scalar_lea.sflag [#allocation5], %s523_s18 }
 0x3e5   : > { %17503 = vst [vmem:[#allocation12_spill] sm:$0xff] %v15223_v3  ;;  %s17189_s26 = scalar_lea.hbm %s17257_s16, %s10422_s23  ;;  %s13365_s23 = scalar_lea.vmem %s13364_s3, 8192 }
 0x3e6   : > { %p13367_p1 = scmp.lt.s32.totalorder %s13365_s23, %s13359_s30 }
 0x3e7   : > { %11492 = vmatmul.mubr.msk.f32.gmra.mrb[30].mxu0 %vm534_vm0, %v17499_v20  ;;  %12339 = vmatpush3.bf16.msra.mxu1 %v12338_v9  ;;  %v10018_v9 = vld [vmem:[%s17246_s5 + $0xf0] sm:$0xff]  ;;  %v10052_v20 = vld [vmem:[%s17246_s5 + $0x100] sm:$0xff] }
 0x3e8   : > { %11494 = vmatprep.mubr.msk.f32.mxu0 %vm534_vm0, %v17500_v4  ;;  %12340 = vmatprep.subr.bf16.mxu1 %v17498_v32  ;;  %v3908_v4 = vld [vmem:[#allocation2 + $0x38] sm:$0xff]  ;;  %p13368_p2 = por %p13367_p1, %p13366_p0 }
 0x3ea   : > { %p13369_p3 = pnand %p13368_p2, %p13362_p13 }
 0x3eb   : > { %11495 = vmatmul.mubr.msk.f32.gmra.mrb[32].mxu0 %vm534_vm0, %v17501_v48  ;;  %v3907_v48 = vld [vmem:[#allocation2 + $0x30] sm:$0xff]  ;;  %12342 = vmatpush3.bf16.msra.mxu1 %v12341_v41  ;;  %v5078_v41 = vsub.f32 0.0, %v5077_v17 }
 0x3ec   : > { %11497 = vmatprep.mubr.msk.f32.mxu0 %vm534_vm0, %v15212_v56  ;;  %v10019_v56 = vld [vmem:[%s17246_s5 + $0xf8] sm:$0xff]  ;;  %12343 = vmatprep.subr.bf16.mxu1 %v17498_v32 }
 0x3ed   : > { %v12319_v1 = vpack.c.bf16 %v10019_v56, %v10018_v9  ;;  %v5079_v32 = vmul.f32 1.442695, %v5078_v41  ;;  %v3910_v9 = vld [vmem:[#allocation2 + $0x50] sm:$0xff] }
 0x3ee   : > { %v3915_v41 = vld [vmem:[#allocation2 + $0x90] sm:$0xff] }
 0x3ef   : > { %11498 = vmatmul.mubr.msk.f32.gmra.mrb[34].mxu0 %vm534_vm0, %v15223_v3  ;;  %v10053_v3 = vld [vmem:[%s17246_s5 + $0x108] sm:$0xff]  ;;  %13193 = vpow2.f32 %v5079_v32 }
 0x3f0   : > { %11508 = vmatprep.mubr.msk.f32.mxu0 %vm534_vm0, %v3907_v48  ;;  %v3909_v48 = vld [vmem:[#allocation2 + $0x48] sm:$0xff]  ;;  %v12323_v56 = vpack.c.bf16 %v10053_v3, %v10052_v20  ;;  %v3916_v3 = vld [vmem:[#allocation2 + $0x98] sm:$0xff] }
 0x3f3   : > { %11509 = vmatmul.mubr.msk.f32.vlgmr.msra.gmra.mrb[4].mxu0 %vm534_vm0, %v3908_v4  ;;  %v3913_v4 = vld [vmem:[#allocation2 + $0x78] sm:$0xff] }
 0x3f4   : > { %12318 = vmatpush3.bf16.msra.mxu0 %v15135_v11  ;;  %11511 = vmatprep.mubr.msk.f32.mxu0 %vm534_vm0, %v3909_v48  ;;  %v3914_v11 = vld [vmem:[#allocation2 + $0x80] sm:$0xff] }
 0x3f5   : > { %12320 = vmatprep.subr.bf16.mxu0 %v12319_v1 }
 0x3f7   : > { %11512 = vmatmul.mubr.msk.f32.gmra.mrb[6].mxu0 %vm534_vm0, %v3910_v9 }
 0x3f8   : > { %11514 = vmatprep.mubr.msk.f32.mxu0 %vm534_vm0, %v3911_v27  ;;  %12322 = vmatpush3.bf16.msra.mxu0 %v12319_v1  ;;  %v3917_v27 = vld [vmem:[#allocation2 + $0xa8] sm:$0xff]  ;;  %v3918_v1 = vld [vmem:[#allocation2 + $0xb0] sm:$0xff] }
 0x3f9   : > { %12324 = vmatprep.subr.bf16.mxu0 %v12323_v56  ;;  %v13194_v20 = vpop.eup %13193 }
 0x3fa   : > { %v5081_v32 = vadd.f32 1.0, %v13194_v20 }
 0x3fb   : > { %11515 = vmatmul.mubr.msk.f32.gmra.mrb[8].mxu0 %vm534_vm0, %v3912_v12  ;;  %v3919_v12 = vld [vmem:[#allocation2 + $0xc0] sm:$0xff] }
 0x3fc   : > { %11517 = vmatprep.mubr.msk.f32.mxu0 %vm534_vm0, %v3913_v4  ;;  %13195 = vrcp.f32 %v5081_v32  ;;  %v17504_v4 = vmov 0.0  }
 0x3ff   : > { %11518 = vmatmul.mubr.msk.f32.gmra.mrb[10].mxu0 %vm534_vm0, %v3914_v11 }
 0x400   : > { %11520 = vmatprep.mubr.msk.f32.mxu0 %vm534_vm0, %v3915_v41 }
 0x403   : > { %11521 = vmatmul.mubr.msk.f32.gmra.mrb[12].mxu0 %vm534_vm0, %v3916_v3 }
 0x404   : > { %11523 = vmatprep.mubr.msk.f32.mxu0 %vm534_vm0, %v3917_v27 }
 0x406   : > { %v13196_v48 = vpop.eup %13195 }
 0x407   : > { %11524 = vmatmul.mubr.msk.f32.gmra.mrb[14].mxu0 %vm534_vm0, %v3918_v1  ;;  %v5084_v9 = vmul.f32 %v13196_v48, %v5077_v17 }
 0x408   : > { %11526 = vmatprep.mubr.msk.f32.mxu0 %vm534_vm0, %v3919_v12 }
 0x409   : > { %11685 = vmatmul.mubr.msk.f32.vlgmr.msra.gmra.mrb[4].mxu1 %vm5094_vm3, %v5084_v9 }
 0x40a   : > { %11695 = vmatprep.mubr.msk.f32.mxu1 %vm13424_vm1, %v17504_v4 }
 0x40b   : > { %11527 = vmatmul.mubr.msk.f32.gmra.mrb[16].mxu0 %vm534_vm0, %v14614_v50  ;;  %v3937_v50 = vld [vmem:[#allocation2 + $0x198] sm:$0xff] }
 0x40c   : > { %11529 = vmatprep.mubr.msk.f32.mxu0 %vm534_vm0, %v14622_v25  ;;  %v3938_v25 = vld [vmem:[#allocation2 + $0x1a0] sm:$0xff] }
 0x40f   : > { %11530 = vmatmul.mubr.msk.f32.gmra.mrb[18].mxu0 %vm534_vm0, %v14628_v5  ;;  %v10054_v5 = vld [vmem:[%s17246_s5 + $0x110] sm:$0xff] }
 0x410   : > { %11532 = vmatprep.mubr.msk.f32.mxu0 %vm534_vm0, %v14632_v28  ;;  %v10055_v28 = vld [vmem:[%s17246_s5 + $0x118] sm:$0xff] }
 0x413   : > { %11533 = vmatmul.mubr.msk.f32.gmra.mrb[20].mxu0 %vm534_vm0, %v14636_v62  ;;  %v12327_v62 = vpack.c.bf16 %v10055_v28, %v10054_v5 }
 0x414   : > { %11535 = vmatprep.mubr.msk.f32.mxu0 %vm534_vm0, %v14640_v59  ;;  %v4327_v59 = vld [vmem:[#allocation2 + $0x199] sm:$0xff] }
 0x417   : > { %11536 = vmatmul.mubr.msk.f32.gmra.mrb[22].mxu0 %vm534_vm0, %v14644_v2  ;;  %v4328_v2 = vld [vmem:[#allocation2 + $0x1a1] sm:$0xff] }
 0x418   : > { %11538 = vmatprep.mubr.msk.f32.mxu0 %vm534_vm0, %v14648_v7  ;;  %v17505_v7 = vld [vmem:[#allocation20_spill] sm:$0xff] }
 0x41b   : > { %11539 = vmatmul.mubr.msk.f32.gmra.mrb[24].mxu0 %vm534_vm0, %v14652_v52  ;;  %v17506_v52 = vld [vmem:[#allocation21_spill] sm:$0xff] }
 0x41c   : > { %11541 = vmatprep.mubr.msk.f32.mxu0 %vm534_vm0, %v14656_v51  ;;  %v17507_v51 = vld [vmem:[#allocation22_spill] sm:$0xff] }
 0x41f   : > { %11542 = vmatmul.mubr.msk.f32.gmra.mrb[26].mxu0 %vm534_vm0, %v14660_v53  ;;  %v17508_v53 = vld [vmem:[#allocation23_spill] sm:$0xff] }
 0x420   : > { %11544 = vmatprep.mubr.msk.f32.mxu0 %vm534_vm0, %v14664_v0  ;;  %v17509_v0 = vld [vmem:[#allocation24_spill] sm:$0xff] }
 0x423   : > { %11545 = vmatmul.mubr.msk.f32.gmra.mrb[28].mxu0 %vm534_vm0, %v14668_v42  ;;  %v17510_v42 = vld [vmem:[#allocation25_spill] sm:$0xff] }
 0x424   : > { %11547 = vmatprep.mubr.msk.f32.mxu0 %vm534_vm0, %v14672_v8  ;;  %v17511_v8 = vld [vmem:[#allocation26_spill] sm:$0xff] }
 0x427   : > { %11548 = vmatmul.mubr.msk.f32.gmra.mrb[30].mxu0 %vm534_vm0, %v14676_v54  ;;  %v17512_v54 = vld [vmem:[#allocation27_spill] sm:$0xff] }
 0x428   : > { %11550 = vmatprep.mubr.msk.f32.mxu0 %vm534_vm0, %v15029_v24  ;;  %v5205_v24 = vld [vmem:[%s17250_s9 + $0x8] sm:$0xff] }
 0x42b   : > { %11551 = vmatmul.mubr.msk.f32.gmra.mrb[32].mxu0 %vm534_vm0, %v15033_v58  ;;  %v5206_v58 = vld [vmem:[%s17250_s9 + $0x10] sm:$0xff] }
 0x42c   : > { %11553 = vmatprep.mubr.msk.f32.mxu0 %vm534_vm0, %v3937_v50 }
 0x42f   : > { %11554 = vmatmul.mubr.msk.f32.gmra.mrb[34].mxu0 %vm534_vm0, %v3938_v25 }
 0x430   : > { %11564 = vmatprep.mubr.msk.f32.mxu0 %vm534_vm0, %v14705_v57  ;;  %v17513_v57 = vld [vmem:[#allocation28_spill] sm:$0xff] }
 0x433   : > { %11565 = vmatmul.mubr.msk.f32.vlgmr.msra.gmra.mrb[4].mxu0 %vm534_vm0, %v14710_v22  ;;  %v17514_v22 = vld [vmem:[#allocation29_spill] sm:$0xff] }
 0x434   : > { %12326 = vmatpush3.bf16.msra.mxu0 %v12323_v56  ;;  %11567 = vmatprep.mubr.msk.f32.mxu0 %vm534_vm0, %v14714_v44  ;;  %v17515_v44 = vld [vmem:[#allocation30_spill] sm:$0xff] }
 0x435   : > { %12328 = vmatprep.subr.bf16.mxu0 %v12327_v62 }
 0x437   : > { %11568 = vmatmul.mubr.msk.f32.gmra.mrb[6].mxu0 %vm534_vm0, %v14718_v45  ;;  %v17516_v45 = vld [vmem:[#allocation31_spill] sm:$0xff] }
 0x438   : > { %11570 = vmatprep.mubr.msk.f32.mxu0 %vm534_vm0, %v14722_v15  ;;  %12330 = vmatpush3.bf16.msra.mxu0 %v12327_v62  ;;  %v17517_v15 = vld [vmem:[#allocation32_spill] sm:$0xff] }
 0x43b   : > { %11571 = vmatmul.mubr.msk.f32.gmra.mrb[8].mxu0 %vm534_vm0, %v14726_v39  ;;  %v17518_v39 = vld [vmem:[#allocation33_spill] sm:$0xff] }
 0x43c   : > { %11573 = vmatprep.mubr.msk.f32.mxu0 %vm534_vm0, %v14730_v35  ;;  %v17519_v35 = vld [vmem:[#allocation34_spill] sm:$0xff] }
 0x43f   : > { %11574 = vmatmul.mubr.msk.f32.gmra.mrb[10].mxu0 %vm534_vm0, %v14734_v34  ;;  %v17520_v34 = vld [vmem:[#allocation35_spill] sm:$0xff] }
 0x440   : > { %11576 = vmatprep.mubr.msk.f32.mxu0 %vm534_vm0, %v14738_v18  ;;  %v17521_v18 = vld [vmem:[#allocation36_spill] sm:$0xff] }
 0x443   : > { %11577 = vmatmul.mubr.msk.f32.gmra.mrb[12].mxu0 %vm534_vm0, %v14742_v29  ;;  %v17522_v29 = vld [vmem:[#allocation37_spill] sm:$0xff] }
 0x444   : > { %11579 = vmatprep.mubr.msk.f32.mxu0 %vm534_vm0, %v14746_v43  ;;  %v17523_v43 = vld [vmem:[#allocation38_spill] sm:$0xff] }
 0x447   : > { %11580 = vmatmul.mubr.msk.f32.gmra.mrb[14].mxu0 %vm534_vm0, %v14750_v16  ;;  %v17524_v16 = vld [vmem:[#allocation39_spill] sm:$0xff] }
 0x448   : > { %11582 = vmatprep.mubr.msk.f32.mxu0 %vm534_vm0, %v14754_v19  ;;  %v17525_v19 = vld [vmem:[#allocation40_spill] sm:$0xff] }
 0x44b   : > { %11583 = vmatmul.mubr.msk.f32.gmra.mrb[16].mxu0 %vm534_vm0, %v14758_v36  ;;  %v17526_v36 = vld [vmem:[#allocation41_spill] sm:$0xff] }
 0x44c   : > { %11585 = vmatprep.mubr.msk.f32.mxu0 %vm534_vm0, %v14762_v10  ;;  %v17527_v10 = vld [vmem:[#allocation42_spill] sm:$0xff] }
 0x44f   : > { %11586 = vmatmul.mubr.msk.f32.gmra.mrb[18].mxu0 %vm534_vm0, %v14766_v26  ;;  %v17528_v26 = vld [vmem:[#allocation43_spill] sm:$0xff] }
 0x450   : > { %11588 = vmatprep.mubr.msk.f32.mxu0 %vm534_vm0, %v14770_v33  ;;  %v17529_v33 = vld [vmem:[#allocation11_spill] sm:$0xff] }
 0x453   : > { %11589 = vmatmul.mubr.msk.f32.gmra.mrb[20].mxu0 %vm534_vm0, %v14774_v14  ;;  %v4717_v14 = vld [vmem:[#allocation2 + $0x19a] sm:$0xff] }
 0x454   : > { %11591 = vmatprep.mubr.msk.f32.mxu0 %vm534_vm0, %v14778_v46  ;;  %v17530_v46 = vld [vmem:[#allocation12_spill] sm:$0xff] }
 0x457   : > { %11592 = vmatmul.mubr.msk.f32.gmra.mrb[22].mxu0 %vm534_vm0, %v14782_v30  ;;  %v4718_v30 = vld [vmem:[#allocation2 + $0x1a2] sm:$0xff] }
 0x458   : > { %11594 = vmatprep.mubr.msk.f32.mxu0 %vm534_vm0, %v14786_v55 }
 0x45b   : > { %11595 = vmatmul.mubr.msk.f32.gmra.mrb[24].mxu0 %vm534_vm0, %v14790_v63 }
 0x45c   : > { %11597 = vmatprep.mubr.msk.f32.mxu0 %vm534_vm0, %v17468_v47 }
 0x45f   : > { %11598 = vmatmul.mubr.msk.f32.gmra.mrb[26].mxu0 %vm534_vm0, %v17469_v38  ;;  %v5207_v38 = vld [vmem:[%s17250_s9 + $0x18] sm:$0xff] }
 0x460   : > { %11600 = vmatprep.mubr.msk.f32.mxu0 %vm534_vm0, %v17470_v23  ;;  %v15441_v23 = vpack.c.bf16 %v5207_v38, %v5206_v58 }
 0x463   : > { %11601 = vmatmul.mubr.msk.f32.gmra.mrb[28].mxu0 %vm534_vm0, %v17471_v40  ;;  %v17531_v40 = vmov 0.0|0.0  }
 0x464   : > { %11603 = vmatprep.mubr.msk.f32.mxu0 %vm534_vm0, %v17472_v21  ;;  %v5093_v21 = vld [vmem:[%s17256_s15] sm:$0x1] }
 0x467   : > { %11604 = vmatmul.mubr.msk.f32.gmra.mrb[30].mxu0 %vm534_vm0, %v14814_v49  ;;  %v5204_v49 = vld [vmem:[%s17250_s9] sm:$0xff] }
 0x468   : > { %11606 = vmatprep.mubr.msk.f32.mxu0 %vm534_vm0, %v15109_v6  ;;  %v15435_v47 = vpack.c.bf16 %v5205_v24, %v5204_v49 }
 0x46a   : > { %12345 = vmatpush3.bf16.msra.mxu1 %v15435_v47 }
 0x46b   : > { %11607 = vmatmul.mubr.msk.f32.gmra.mrb[32].mxu0 %vm534_vm0, %v15113_v31  ;;  %12346 = vmatprep.subr.bf16.mxu1 %v17531_v40  ;;  %v15452_v31 = vld [vmem:[%s17247_s6] ss:$0 sm:$0xff] }
 0x46c   : > { %11609 = vmatprep.mubr.msk.f32.mxu0 %vm534_vm0, %v4327_v59 }
 0x46e   : > { %12348 = vmatpush3.bf16.msra.mxu1 %v15441_v23 }
 0x46f   : > { %11610 = vmatmul.mubr.msk.f32.gmra.mrb[34].mxu0 %vm534_vm0, %v4328_v2  ;;  %12349 = vmatprep.subr.bf16.mxu1 %v17531_v40 }
 0x470   : > { %11620 = vmatprep.mubr.msk.f32.mxu0 %vm534_vm0, %v17473_v13  ;;  %v17532_v13 = vld [vmem:[#allocation10_spill] sm:$0xff] }
 0x473   : > { %11621 = vmatmul.mubr.msk.f32.vlgmr.msra.gmra.mrb[4].mxu0 %vm534_vm0, %v17474_v60 }
 0x474   : > { %11623 = vmatprep.mubr.msk.f32.mxu0 %vm534_vm0, %v17475_v37 }
 0x477   : > { %11624 = vmatmul.mubr.msk.f32.gmra.mrb[6].mxu0 %vm534_vm0, %v17476_v61 }
 0x478   : > { %11626 = vmatprep.mubr.msk.f32.mxu0 %vm534_vm0, %v17505_v7 }
 0x47b   : > { %11627 = vmatmul.mubr.msk.f32.gmra.mrb[8].mxu0 %vm534_vm0, %v17506_v52 }
 0x47c   : > { %11629 = vmatprep.mubr.msk.f32.mxu0 %vm534_vm0, %v17507_v51 }
 0x47f   : > { %11630 = vmatmul.mubr.msk.f32.gmra.mrb[10].mxu0 %vm534_vm0, %v17508_v53 }
 0x480   : > { %11632 = vmatprep.mubr.msk.f32.mxu0 %vm534_vm0, %v17509_v0 }
 0x483   : > { %11633 = vmatmul.mubr.msk.f32.gmra.mrb[12].mxu0 %vm534_vm0, %v17510_v42 }
 0x484   : > { %11635 = vmatprep.mubr.msk.f32.mxu0 %vm534_vm0, %v17511_v8 }
 0x487   : > { %11636 = vmatmul.mubr.msk.f32.gmra.mrb[14].mxu0 %vm534_vm0, %v17512_v54 }
 0x488   : > { %11638 = vmatprep.mubr.msk.f32.mxu0 %vm534_vm0, %v17513_v57 }
 0x48b   : > { %11639 = vmatmul.mubr.msk.f32.gmra.mrb[16].mxu0 %vm534_vm0, %v17514_v22 }
 0x48c   : > { %11641 = vmatprep.mubr.msk.f32.mxu0 %vm534_vm0, %v17515_v44 }
 0x48f   : > { %11642 = vmatmul.mubr.msk.f32.gmra.mrb[18].mxu0 %vm534_vm0, %v17516_v45 }
 0x490   : > { %11644 = vmatprep.mubr.msk.f32.mxu0 %vm534_vm0, %v17517_v15 }
 0x493   : > { %11645 = vmatmul.mubr.msk.f32.gmra.mrb[20].mxu0 %vm534_vm0, %v17518_v39 }
 0x494   : > { %11647 = vmatprep.mubr.msk.f32.mxu0 %vm534_vm0, %v17519_v35 }
 0x497   : > { %11648 = vmatmul.mubr.msk.f32.gmra.mrb[22].mxu0 %vm534_vm0, %v17520_v34 }
 0x498   : > { %11650 = vmatprep.mubr.msk.f32.mxu0 %vm534_vm0, %v17521_v18 }
 0x49b   : > { %11651 = vmatmul.mubr.msk.f32.gmra.mrb[24].mxu0 %vm534_vm0, %v17522_v29 }
 0x49c   : > { %11653 = vmatprep.mubr.msk.f32.mxu0 %vm534_vm0, %v17523_v43 }
 0x49f   : > { %11654 = vmatmul.mubr.msk.f32.gmra.mrb[26].mxu0 %vm534_vm0, %v17524_v16 }
 0x4a0   : > { %11656 = vmatprep.mubr.msk.f32.mxu0 %vm534_vm0, %v17525_v19 }
 0x4a3   : > { %11657 = vmatmul.mubr.msk.f32.gmra.mrb[28].mxu0 %vm534_vm0, %v17526_v36 }
 0x4a4   : > { %11659 = vmatprep.mubr.msk.f32.mxu0 %vm534_vm0, %v17527_v10 }
 0x4a7   : > { %11660 = vmatmul.mubr.msk.f32.gmra.mrb[30].mxu0 %vm534_vm0, %v17528_v26 }
 0x4a8   : > { %11662 = vmatprep.mubr.msk.f32.mxu0 %vm534_vm0, %v17529_v33 }
 0x4ab   : > { %11663 = vmatmul.mubr.msk.f32.gmra.mrb[32].mxu0 %vm534_vm0, %v17530_v46 }
 0x4ac   : > { %11665 = vmatprep.mubr.msk.f32.mxu0 %vm534_vm0, %v4717_v14 }
 0x4af   : > { %11666 = vmatmul.mubr.msk.f32.gmra.mrb[34].mxu0 %vm534_vm0, %v4718_v30 }
 0x4dc   : > { %v5164_v55 = vpop.f32.mrb[4].mxu1 }
 0x4dd   : > { %v11686_v63 = vpop.f32.mrb[5].mxu1  ;;  %v5165_v6 = vadd.f32 %v5164_v55, %v5093_v21 }
 0x4df   : > { %v15455_v60 = vrot.slane %v5165_v6, %v17532_v13 }
 0x546   : > { %v11622_v37 = vpop.f32.mrb[4].mxu0 }
 0x547   : > { %v12443_v61 = vadd.f32 %v11622_v37, %v15452_v31  ;;  %v4886_v17 = vpop.f32.mrb[5].mxu0 }
 0x548   : > { %v12444_v56 = vadd.f32 %v15452_v31, %v4886_v17 }
 0x549   : > { %v15460_v11 = vadd.f32 %v12443_v61, %v15455_v60 }
 0x54a   : > { %v15463_v41 = vadd.f32 %v12444_v56, %v15455_v60  ;;  %v11625_v20 = vpop.f32.mrb[6].mxu0 }
 0x54b   : > { %v5282_v32 = vmul.f32 %v15460_v11, %v15460_v11  ;;  %v12445_v3 = vadd.f32 %v11625_v20, %v15452_v31  ;;  %v4896_v27 = vpop.f32.mrb[7].mxu0  ;;  %v5213_v1 = vsel %vm534_vm0, %v15460_v11, 0.0 }
 0x54c   : > { %v5212_v12 = vsel %vm534_vm0, %v15463_v41, 0.0  ;;  %v5281_v48 = vmul.f32 %v15463_v41, %v15463_v41  ;;  %v12446_v9 = vadd.f32 %v15452_v31, %v4896_v27 }
 0x54d   : > { %v15476_v50 = vadd.f32 %v12445_v3, %v15455_v60  ;;  %v5314_v25 = vsel %vm534_vm0, %v5282_v32, 0.0  ;;  %v5214_v59 = vadd.f32 %v5213_v1, %v5212_v12 }
 0x54e   : > { %v5313_v5 = vsel %vm534_vm0, %v5281_v48, 0.0  ;;  %v15481_v28 = vadd.f32 %v12446_v9, %v15455_v60  ;;  %v11628_v62 = vpop.f32.mrb[8].mxu0 }
 0x54f   : > { %v5284_v2 = vmul.f32 %v15476_v50, %v15476_v50  ;;  %v12447_v7 = vadd.f32 %v11628_v62, %v15452_v31  ;;  %v4906_v52 = vpop.f32.mrb[9].mxu0  ;;  %v5315_v42 = vadd.f32 %v5314_v25, %v5313_v5  ;;  %v5217_v57 = vsel %vm534_vm0, %v15476_v50, 0.0 }
 0x550   : > { %v5215_v51 = vsel %vm534_vm0, %v15481_v28, 0.0  ;;  %v5283_v53 = vmul.f32 %v15481_v28, %v15481_v28  ;;  %v12448_v0 = vadd.f32 %v15452_v31, %v4906_v52 }
 0x551   : > { %v5216_v8 = vadd.f32 %v5215_v51, %v5214_v59  ;;  %v15492_v54 = vadd.f32 %v12447_v7, %v15455_v60  ;;  %v5318_v15 = vsel %vm534_vm0, %v5284_v2, 0.0 }
 0x552   : > { %v5316_v22 = vsel %vm534_vm0, %v5283_v53, 0.0  ;;  %v15498_v44 = vadd.f32 %v12448_v0, %v15455_v60  ;;  %v11631_v45 = vpop.f32.mrb[10].mxu0 }
 0x553   : > { %v5317_v39 = vadd.f32 %v5316_v22, %v5315_v42  ;;  %v5286_v35 = vmul.f32 %v15492_v54, %v15492_v54  ;;  %v5218_v34 = vadd.f32 %v5217_v57, %v5216_v8  ;;  %v4916_v18 = vpop.f32.mrb[11].mxu0  ;;  %v12449_v16 = vadd.f32 %v11631_v45, %v15452_v31 }
 0x554   : > { %v5219_v29 = vsel %vm534_vm0, %v15498_v44, 0.0  ;;  %v5285_v43 = vmul.f32 %v15498_v44, %v15498_v44  ;;  %v12450_v19 = vadd.f32 %v15452_v31, %v4916_v18  ;;  %v5221_v26 = vsel %vm534_vm0, %v15492_v54, 0.0 }
 0x555   : > { %v5220_v36 = vadd.f32 %v5219_v29, %v5218_v34  ;;  %v5319_v10 = vadd.f32 %v5318_v15, %v5317_v39  ;;  %v15513_v14 = vadd.f32 %v12449_v16, %v15455_v60  ;;  %v5322_v58 = vsel %vm534_vm0, %v5286_v35, 0.0 }
 0x556   : > { %v5320_v33 = vsel %vm534_vm0, %v5285_v43, 0.0  ;;  %v15516_v46 = vadd.f32 %v12450_v19, %v15455_v60  ;;  %v11634_v30 = vpop.f32.mrb[12].mxu0 }
 0x557   : > { %v5321_v55 = vadd.f32 %v5320_v33, %v5319_v10  ;;  %v5222_v63 = vadd.f32 %v5221_v26, %v5220_v36  ;;  %v12451_v49 = vadd.f32 %v11634_v30, %v15452_v31  ;;  %v4926_v24 = vpop.f32.mrb[13].mxu0  ;;  %v5288_v38 = vmul.f32 %v15513_v14, %v15513_v14 }
 0x558   : > { %v5223_v21 = vsel %vm534_vm0, %v15516_v46, 0.0  ;;  %v5287_v6 = vmul.f32 %v15516_v46, %v15516_v46  ;;  %v12452_v56 = vadd.f32 %v15452_v31, %v4926_v24  ;;  %v5225_v3 = vsel %vm534_vm0, %v15513_v14, 0.0 }
 0x559   : > { %v5224_v37 = vadd.f32 %v5223_v21, %v5222_v63  ;;  %v5323_v61 = vadd.f32 %v5322_v58, %v5321_v55  ;;  %v15527_v17 = vadd.f32 %v12451_v49, %v15455_v60  ;;  %v5326_v27 = vsel %vm534_vm0, %v5288_v38, 0.0 }
 0x55a   : > { %v5324_v20 = vsel %vm534_vm0, %v5287_v6, 0.0  ;;  %v11637_v32 = vpop.f32.mrb[14].mxu0  ;;  %v15535_v12 = vadd.f32 %v12452_v56, %v15455_v60 }
 0x55b   : > { %v5325_v1 = vadd.f32 %v5324_v20, %v5323_v61  ;;  %v4936_v48 = vpop.f32.mrb[15].mxu0  ;;  %v5290_v9 = vmul.f32 %v15527_v17, %v15527_v17  ;;  %v5226_v25 = vadd.f32 %v5225_v3, %v5224_v37  ;;  %v12453_v5 = vadd.f32 %v11637_v32, %v15452_v31 }
 0x55c   : > { %v12454_v62 = vadd.f32 %v15452_v31, %v4936_v48  ;;  %v5227_v59 = vsel %vm534_vm0, %v15535_v12, 0.0  ;;  %v5289_v2 = vmul.f32 %v15535_v12, %v15535_v12  ;;  %v5229_v42 = vsel %vm534_vm0, %v15527_v17, 0.0 }
 0x55d   : > { %v5327_v7 = vadd.f32 %v5326_v27, %v5325_v1  ;;  %v5228_v52 = vadd.f32 %v5227_v59, %v5226_v25  ;;  %v15546_v51 = vadd.f32 %v12453_v5, %v15455_v60  ;;  %v5330_v45 = vsel %vm534_vm0, %v5290_v9, 0.0 }
 0x55e   : > { %v15549_v53 = vadd.f32 %v12454_v62, %v15455_v60  ;;  %v11640_v0 = vpop.f32.mrb[16].mxu0  ;;  %v5328_v8 = vsel %vm534_vm0, %v5289_v2, 0.0 }
 0x55f   : > { %v12455_v57 = vadd.f32 %v11640_v0, %v15452_v31  ;;  %v4946_v22 = vpop.f32.mrb[17].mxu0  ;;  %v5329_v15 = vadd.f32 %v5328_v8, %v5327_v7  ;;  %v5292_v39 = vmul.f32 %v15546_v51, %v15546_v51  ;;  %v5230_v35 = vadd.f32 %v5229_v42, %v5228_v52 }
 0x560   : > { %v5231_v34 = vsel %vm534_vm0, %v15549_v53, 0.0  ;;  %v5291_v18 = vmul.f32 %v15549_v53, %v15549_v53  ;;  %v12456_v43 = vadd.f32 %v15452_v31, %v4946_v22  ;;  %v5233_v10 = vsel %vm534_vm0, %v15546_v51, 0.0 }
 0x561   : > { %v15563_v29 = vadd.f32 %v12455_v57, %v15455_v60  ;;  %v5232_v16 = vadd.f32 %v5231_v34, %v5230_v35  ;;  %v5331_v19 = vadd.f32 %v5330_v45, %v5329_v15  ;;  %v5334_v38 = vsel %vm534_vm0, %v5292_v39, 0.0 }
 0x562   : > { %v11643_v36 = vpop.f32.mrb[18].mxu0  ;;  %v5332_v26 = vsel %vm534_vm0, %v5291_v18, 0.0  ;;  %v15572_v30 = vadd.f32 %v12456_v43, %v15455_v60 }
 0x563   : > { %v5294_v33 = vmul.f32 %v15563_v29, %v15563_v29  ;;  %v4956_v55 = vpop.f32.mrb[19].mxu0  ;;  %v5333_v63 = vadd.f32 %v5332_v26, %v5331_v19  ;;  %v5234_v49 = vadd.f32 %v5233_v10, %v5232_v16  ;;  %v12457_v24 = vadd.f32 %v11643_v36, %v15452_v31 }
 0x564   : > { %v12458_v58 = vadd.f32 %v15452_v31, %v4956_v55  ;;  %v5235_v21 = vsel %vm534_vm0, %v15572_v30, 0.0  ;;  %v5293_v6 = vmul.f32 %v15572_v30, %v15572_v30  ;;  %v5237_v3 = vsel %vm534_vm0, %v15563_v29, 0.0 }
 0x565   : > { %v5236_v37 = vadd.f32 %v5235_v21, %v5234_v49  ;;  %v5335_v61 = vadd.f32 %v5334_v38, %v5333_v63  ;;  %v15582_v56 = vadd.f32 %v12457_v24, %v15455_v60  ;;  %v5338_v9 = vsel %vm534_vm0, %v5294_v33, 0.0 }
 0x566   : > { %v15585_v20 = vadd.f32 %v12458_v58, %v15455_v60  ;;  %v11646_v32 = vpop.f32.mrb[20].mxu0  ;;  %v5336_v27 = vsel %vm534_vm0, %v5293_v6, 0.0 }
 0x567   : > { %v12459_v1 = vadd.f32 %v11646_v32, %v15452_v31  ;;  %v4966_v48 = vpop.f32.mrb[21].mxu0  ;;  %v5337_v25 = vadd.f32 %v5336_v27, %v5335_v61  ;;  %v5296_v5 = vmul.f32 %v15582_v56, %v15582_v56  ;;  %v5238_v62 = vadd.f32 %v5237_v3, %v5236_v37 }
 0x568   : > { %v5239_v59 = vsel %vm534_vm0, %v15585_v20, 0.0  ;;  %v5295_v2 = vmul.f32 %v15585_v20, %v15585_v20  ;;  %v12460_v52 = vadd.f32 %v15452_v31, %v4966_v48  ;;  %v5241_v57 = vsel %vm534_vm0, %v15582_v56, 0.0 }
 0x569   : > { %v15599_v7 = vadd.f32 %v12459_v1, %v15455_v60  ;;  %v5240_v0 = vadd.f32 %v5239_v59, %v5238_v62  ;;  %v5339_v42 = vadd.f32 %v5338_v9, %v5337_v25  ;;  %v5342_v16 = vsel %vm534_vm0, %v5296_v5, 0.0 }
 0x56a   : > { %v11649_v8 = vpop.f32.mrb[22].mxu0  ;;  %v5340_v22 = vsel %vm534_vm0, %v5295_v2, 0.0  ;;  %v15608_v15 = vadd.f32 %v12460_v52, %v15455_v60 }
 0x56b   : > { %v5298_v45 = vmul.f32 %v15599_v7, %v15599_v7  ;;  %v4976_v39 = vpop.f32.mrb[23].mxu0  ;;  %v5341_v35 = vadd.f32 %v5340_v22, %v5339_v42  ;;  %v5242_v34 = vadd.f32 %v5241_v57, %v5240_v0  ;;  %v12461_v18 = vadd.f32 %v11649_v8, %v15452_v31 }
 0x56c   : > { %v12462_v43 = vadd.f32 %v15452_v31, %v4976_v39  ;;  %v5243_v19 = vsel %vm534_vm0, %v15608_v15, 0.0  ;;  %v5297_v36 = vmul.f32 %v15608_v15, %v15608_v15  ;;  %v5245_v49 = vsel %vm534_vm0, %v15599_v7, 0.0 }
 0x56d   : > { %v5244_v10 = vadd.f32 %v5243_v19, %v5242_v34  ;;  %v5343_v26 = vadd.f32 %v5342_v16, %v5341_v35  ;;  %v15618_v33 = vadd.f32 %v12461_v18, %v15455_v60  ;;  %v5346_v21 = vsel %vm534_vm0, %v5298_v45, 0.0 }
 0x56e   : > { %v15621_v55 = vadd.f32 %v12462_v43, %v15455_v60  ;;  %v11652_v63 = vpop.f32.mrb[24].mxu0  ;;  %v5344_v24 = vsel %vm534_vm0, %v5297_v36, 0.0 }
 0x56f   : > { %v12463_v58 = vadd.f32 %v11652_v63, %v15452_v31  ;;  %v4986_v38 = vpop.f32.mrb[25].mxu0  ;;  %v5345_v6 = vadd.f32 %v5344_v24, %v5343_v26  ;;  %v5300_v37 = vmul.f32 %v15618_v33, %v15618_v33  ;;  %v5246_v61 = vadd.f32 %v5245_v49, %v5244_v10 }
 0x570   : > { %v5247_v32 = vsel %vm534_vm0, %v15621_v55, 0.0  ;;  %v5299_v3 = vmul.f32 %v15621_v55, %v15621_v55  ;;  %v12464_v1 = vadd.f32 %v15452_v31, %v4986_v38  ;;  %v5249_v5 = vsel %vm534_vm0, %v15618_v33, 0.0 }
 0x571   : > { %v15635_v27 = vadd.f32 %v12463_v58, %v15455_v60  ;;  %v5248_v48 = vadd.f32 %v5247_v32, %v5246_v61  ;;  %v5347_v9 = vadd.f32 %v5346_v21, %v5345_v6  ;;  %v5350_v22 = vsel %vm534_vm0, %v5300_v37, 0.0 }
 0x572   : > { %v11655_v25 = vpop.f32.mrb[26].mxu0  ;;  %v5348_v62 = vsel %vm534_vm0, %v5299_v3, 0.0  ;;  %v15644_v2 = vadd.f32 %v12464_v1, %v15455_v60 }
 0x573   : > { %v5302_v59 = vmul.f32 %v15635_v27, %v15635_v27  ;;  %v4996_v52 = vpop.f32.mrb[27].mxu0  ;;  %v5349_v0 = vadd.f32 %v5348_v62, %v5347_v9  ;;  %v5250_v42 = vadd.f32 %v5249_v5, %v5248_v48  ;;  %v12465_v8 = vadd.f32 %v11655_v25, %v15452_v31 }
 0x574   : > { %v12466_v57 = vadd.f32 %v15452_v31, %v4996_v52  ;;  %v5251_v45 = vsel %vm534_vm0, %v15644_v2, 0.0  ;;  %v5301_v39 = vmul.f32 %v15644_v2, %v15644_v2  ;;  %v5253_v19 = vsel %vm534_vm0, %v15635_v27, 0.0 }
 0x575   : > { %v5252_v35 = vadd.f32 %v5251_v45, %v5250_v42  ;;  %v5351_v34 = vadd.f32 %v5350_v22, %v5349_v0  ;;  %v15654_v18 = vadd.f32 %v12465_v8, %v15455_v60  ;;  %v5354_v63 = vsel %vm534_vm0, %v5302_v59, 0.0 }
 0x576   : > { %v15657_v43 = vadd.f32 %v12466_v57, %v15455_v60  ;;  %v11658_v16 = vpop.f32.mrb[28].mxu0  ;;  %v5352_v36 = vsel %vm534_vm0, %v5301_v39, 0.0 }
 0x577   : > { %v12467_v10 = vadd.f32 %v11658_v16, %v15452_v31  ;;  %v5006_v26 = vpop.f32.mrb[29].mxu0  ;;  %v5353_v49 = vadd.f32 %v5352_v36, %v5351_v34  ;;  %v5304_v24 = vmul.f32 %v15654_v18, %v15654_v18  ;;  %v5254_v58 = vadd.f32 %v5253_v19, %v5252_v35 }
 0x578   : > { %v5255_v38 = vsel %vm534_vm0, %v15657_v43, 0.0  ;;  %v5303_v21 = vmul.f32 %v15657_v43, %v15657_v43  ;;  %v12468_v37 = vadd.f32 %v15452_v31, %v5006_v26  ;;  %v5257_v1 = vsel %vm534_vm0, %v15654_v18, 0.0 }
 0x579   : > { %v15671_v6 = vadd.f32 %v12467_v10, %v15455_v60  ;;  %v5256_v61 = vadd.f32 %v5255_v38, %v5254_v58  ;;  %v5355_v32 = vadd.f32 %v5354_v63, %v5353_v49  ;;  %v5358_v42 = vsel %vm534_vm0, %v5304_v24, 0.0 }
 0x57a   : > { %v11661_v3 = vpop.f32.mrb[30].mxu0  ;;  %v5356_v48 = vsel %vm534_vm0, %v5303_v21, 0.0  ;;  %v15680_v25 = vadd.f32 %v12468_v37, %v15455_v60 }
 0x57b   : > { %v5306_v9 = vmul.f32 %v15671_v6, %v15671_v6  ;;  %v5016_v5 = vpop.f32.mrb[31].mxu0  ;;  %v5357_v62 = vadd.f32 %v5356_v48, %v5355_v32  ;;  %v5258_v59 = vadd.f32 %v5257_v1, %v5256_v61  ;;  %v12469_v52 = vadd.f32 %v11661_v3, %v15452_v31 }
 0x57c   : > { %v12470_v0 = vadd.f32 %v15452_v31, %v5016_v5  ;;  %v5259_v8 = vsel %vm534_vm0, %v15680_v25, 0.0  ;;  %v5305_v57 = vmul.f32 %v15680_v25, %v15680_v25  ;;  %v5261_v16 = vsel %vm534_vm0, %v15671_v6, 0.0 }
 0x57d   : > { %v5260_v22 = vadd.f32 %v5259_v8, %v5258_v59  ;;  %v5359_v45 = vadd.f32 %v5358_v42, %v5357_v62  ;;  %v15690_v39 = vadd.f32 %v12469_v52, %v15455_v60  ;;  %v5362_v26 = vsel %vm534_vm0, %v5306_v9, 0.0 }
 0x57e   : > { %v15693_v35 = vadd.f32 %v12470_v0, %v15455_v60  ;;  %v11664_v34 = vpop.f32.mrb[32].mxu0  ;;  %v5360_v19 = vsel %vm534_vm0, %v5305_v57, 0.0 }
 0x57f   : > { %v12471_v36 = vadd.f32 %v11664_v34, %v15452_v31  ;;  %v5026_v10 = vpop.f32.mrb[33].mxu0  ;;  %v5361_v63 = vadd.f32 %v5360_v19, %v5359_v45  ;;  %v5308_v49 = vmul.f32 %v15690_v39, %v15690_v39  ;;  %v5262_v24 = vadd.f32 %v5261_v16, %v5260_v22 }
 0x580   : > { %v5263_v58 = vsel %vm534_vm0, %v15693_v35, 0.0  ;;  %v5307_v38 = vmul.f32 %v15693_v35, %v15693_v35  ;;  %v12472_v37 = vadd.f32 %v15452_v31, %v5026_v10  ;;  %v5265_v1 = vsel %vm534_vm0, %v15690_v39, 0.0 }
 0x581   : > { %v15707_v21 = vadd.f32 %v12471_v36, %v15455_v60  ;;  %v5264_v61 = vadd.f32 %v5263_v58, %v5262_v24  ;;  %v5363_v32 = vadd.f32 %v5362_v26, %v5361_v63  ;;  %v5366_v42 = vsel %vm534_vm0, %v5308_v49, 0.0 }
 0x582   : > { %v11667_v3 = vpop.f32.mrb[34].mxu0  ;;  %v5364_v48 = vsel %vm534_vm0, %v5307_v38, 0.0  ;;  %v15714_v9 = vadd.f32 %v12472_v37, %v15455_v60 }
 0x583   : > { %v5036_v5 = vpop.f32.mrb[35].mxu0  ;;  %v5365_v62 = vadd.f32 %v5364_v48, %v5363_v32  ;;  %v5266_v59 = vadd.f32 %v5265_v1, %v5264_v61  ;;  %v12473_v52 = vadd.f32 %v11667_v3, %v15452_v31  ;;  %v5310_v8 = vmul.f32 %v15707_v21, %v15707_v21 }
 0x584   : > { %v12474_v0 = vadd.f32 %v15452_v31, %v5036_v5  ;;  %v5267_v57 = vsel %vm534_vm0, %v15714_v9, 0.0  ;;  %v5309_v22 = vmul.f32 %v15714_v9, %v15714_v9  ;;  %v5269_v31 = vsel %vm534_vm0, %v15707_v21, 0.0 }
 0x585   : > { %v5268_v45 = vadd.f32 %v5267_v57, %v5266_v59  ;;  %v5367_v34 = vadd.f32 %v5366_v42, %v5365_v62  ;;  %v15726_v16 = vadd.f32 %v12473_v52, %v15455_v60  ;;  %v5370_v63 = vsel %vm534_vm0, %v5310_v8, 0.0 }
 0x586   : > { %v15729_v19 = vadd.f32 %v12474_v0, %v15455_v60  ;;  %v5368_v36 = vsel %vm534_vm0, %v5309_v22, 0.0 }
 0x587   : > { %v5369_v10 = vadd.f32 %v5368_v36, %v5367_v34  ;;  %v5270_v26 = vadd.f32 %v5269_v31, %v5268_v45  ;;  %v5312_v49 = vmul.f32 %v15726_v16, %v15726_v16  ;;  %v5273_v37 = vsel %vm534_vm0, %v15726_v16, 0.0  ;;  %v5208_v31 = vld [vmem:[%s17251_s10] sm:$0xff]  ;;  %v5209_v36 = vld [vmem:[%s17251_s10 + $0x8] sm:$0xff] }
 0x588   : > { %v5271_v24 = vsel %vm534_vm0, %v15729_v19, 0.0  ;;  %v5311_v58 = vmul.f32 %v15729_v19, %v15729_v19 }
 0x589   : > { %v5272_v60 = vadd.f32 %v5271_v24, %v5270_v26  ;;  %v5371_v38 = vadd.f32 %v5370_v63, %v5369_v10  ;;  %v5374_v1 = vsel %vm534_vm0, %v5312_v49, 0.0  ;;  %v12356_v10 = vpack.c.bf16 %v5209_v36, %v5208_v31 }
 0x58a   : > { %v5372_v61 = vsel %vm534_vm0, %v5311_v58, 0.0 }
 0x58b   : > { %v5274_v32 = vadd.f32 %v5273_v37, %v5272_v60  ;;  %v5373_v3 = vadd.f32 %v5372_v61, %v5371_v38 }
 0x58d   : > { %v5275_v48 = vrot.slane %v5274_v32, 4  ;;  %v5375_v5 = vadd.f32 %v5374_v1, %v5373_v3 }
 0x58f   : > { %v5276_v62 = vadd.f32 %v5275_v48, %v5274_v32  ;;  %v5376_v59 = vrot.slane %v5375_v5, 4 }
 0x591   : > { %v5277_v52 = vrot.slane %v5276_v62, 2  ;;  %v5377_v0 = vadd.f32 %v5376_v59, %v5375_v5  ;;  %v6130_v59 = vld [vmem:[%s17252_s11 + $0x18] sm:$0xff] }
 0x593   : > { %v5278_v42 = vadd.f32 %v5277_v52, %v5276_v62  ;;  %v5378_v8 = vrot.slane %v5377_v0, 2  ;;  %v6127_v62 = vld [vmem:[%s17252_s11] sm:$0xff]  ;;  %v6095_v52 = vld [vmem:[#allocation3] sm:$0xff] }
 0x594   : > { %11739 = vmatprep.mubr.msk.f32.mxu0 %vm534_vm0, %v6095_v52 }
 0x595   : > { %v5279_v57 = vrot.slane %v5278_v42, 1  ;;  %v5379_v45 = vadd.f32 %v5378_v8, %v5377_v0  ;;  %v10128_v8 = vld [vmem:[%s17252_s11 + $0x20] sm:$0xff] }
 0x597   : > { %v5280_v22 = vadd.f32 %v5279_v57, %v5278_v42  ;;  %v5380_v34 = vrot.slane %v5379_v45, 1  ;;  %v10129_v57 = vld [vmem:[%s17252_s11 + $0x28] sm:$0xff] }
 0x599   : > { %11696 = vmatmul.mubr.msk.f32.vlgmr.msra.gmra.mrb[6].mxu1 %vm534_vm0, %v5280_v22  ;;  %v5381_v26 = vadd.f32 %v5380_v34, %v5379_v45  ;;  %v15796_v45 = vpack.c.bf16 %v10129_v57, %v10128_v8 }
 0x59a   : > { %12351 = vmatpush3.bf16.msra.mxu1 %v15435_v47  ;;  %11706 = vmatprep.mubr.msk.f32.mxu1 %vm13424_vm1, %v17504_v4  ;;  %v5210_v47 = vld [vmem:[%s17251_s10 + $0x10] sm:$0xff] }
 0x59b   : > { %12352 = vmatprep.subr.bf16.mxu1 %v17531_v40 }
 0x59e   : > { %12354 = vmatpush3.bf16.msra.mxu1 %v15441_v23  ;;  %v5211_v23 = vld [vmem:[%s17251_s10 + $0x18] sm:$0xff] }
 0x59f   : > { %12355 = vmatprep.subr.bf16.mxu1 %v17531_v40  ;;  %v12359_v63 = vpack.c.bf16 %v5211_v23, %v5210_v47  ;;  %v6096_v47 = vld [vmem:[#allocation3 + $0x8] sm:$0xff] }
 0x5a1   : > { %11707 = vmatmul.mubr.msk.f32.vlgmr.msra.gmra.mrb[8].mxu1 %vm534_vm0, %v5381_v26 }
 0x5a2   : > { %12357 = vmatpush3.bf16.msra.mxu1 %v12356_v10  ;;  %11717 = vmatprep.mubr.msk.f32.mxu1 %vm13424_vm1, %v17504_v4 }
 0x5a3   : > { %12358 = vmatprep.subr.bf16.mxu1 %v17531_v40 }
 0x5a6   : > { %12360 = vmatpush3.bf16.msra.mxu1 %v12359_v63 }
 0x5a7   : > { %12361 = vmatprep.subr.bf16.mxu1 %v17531_v40 }
 0x66c   : > { %v5451_v49 = vpop.f32.mrb[6].mxu1 }
 0x66d   : > { %v5455_v24 = vmul.f32 0.00390625, %v5451_v49  ;;  %v11697_v58 = vpop.f32.mrb[7].mxu1 }
 0x66f   : > { %11718 = vmatmul.mubr.msk.f32.vlgmr.msra.gmra.mrb[10].mxu1 %vm534_vm0, %v5455_v24  ;;  %v5530_v38 = vmul.f32 %v5455_v24, %v5455_v24 }
 0x670   : > { %12363 = vmatpush3.bf16.msra.mxu1 %v12356_v10  ;;  %11728 = vmatprep.mubr.msk.f32.mxu1 %vm13424_vm1, %v17504_v4  ;;  %v6128_v4 = vld [vmem:[%s17252_s11 + $0x8] sm:$0xff] }
 0x671   : > { %12364 = vmatprep.subr.bf16.mxu1 %v17531_v40  ;;  %v6129_v40 = vld [vmem:[%s17252_s11 + $0x10] sm:$0xff]  ;;  %v12367_v0 = vpack.c.bf16 %v6128_v4, %v6127_v62 }
 0x672   : > { %v12371_v42 = vpack.c.bf16 %v6130_v59, %v6129_v40 }
 0x673   : > { %12368 = vmatprep.subr.bf16.mxu0 %v12367_v0 }
 0x674   : > { %v5525_v60 = vpop.f32.mrb[8].mxu1  ;;  %12366 = vmatpush3.bf16.msra.mxu1 %v12359_v63  ;;  %12370 = vmatpush3.bf16.msra.mxu0 %v12367_v0 }
 0x675   : > { %v5529_v37 = vmul.f32 0.00390625, %v5525_v60  ;;  %v11708_v61 = vpop.f32.mrb[9].mxu1  ;;  %12439 = vmatprep.subr.bf16.mxu1 %v12367_v0  ;;  %12372 = vmatprep.subr.bf16.mxu0 %v12371_v42 }
 0x677   : > { %v5531_v32 = vsub.f32 %v5529_v37, %v5530_v38 }
 0x678   : > { %12374 = vmatpush3.bf16.msra.mxu0 %v12371_v42 }
 0x679   : > { %v5532_v3 = vadd.f32 1e-06, %v5531_v32 }
 0x67b   : > { %13197 = vrsqrt.f32 %v5532_v3  ;;  %11740 = vmatmul.mubr.msk.f32.vlgmr.msra.gmra.mrb[36].mxu0 %vm534_vm0, %v6096_v47  ;;  %v10093_v47 = vld [vmem:[%s17248_s7] ss:$0 sm:$0xff] }
 0x685   : > { %v13198_v1 = vpop.eup %13197 }
 0x686   : > { %11729 = vmatmul.mubr.msk.f32.vlgmr.msra.gmra.mrb[12].mxu1 %vm534_vm0, %v13198_v1 }
 0x687   : > { %12441 = vmatpush3.bf16.msra.mxu1 %v12367_v0 }
 0x688   : > { %12440 = vmatprep.subr.bf16.mxu1 %v12371_v42 }
 0x68b   : > { %12442 = vmatpush3.bf16.msra.mxu1 %v12371_v42 }
 0x68c   : > { %12376 = vmatprep.subr.bf16.mxu1 %v15796_v45 }
 0x742   : > { %v5603_v48 = vpop.f32.mrb[10].mxu1 }
 0x743   : > { %v11719_v5 = vpop.f32.mrb[11].mxu1  ;;  %v15794_v22 = vrot.slane %v5603_v48, %v17532_v13 }
 0x745   : > { %v5684_v34 = vsub.f32 %v15463_v41, %v15794_v22  ;;  %v5685_v31 = vsub.f32 %v15460_v11, %v15794_v22  ;;  %v5686_v36 = vsub.f32 %v15481_v28, %v15794_v22  ;;  %v5687_v10 = vsub.f32 %v15476_v50, %v15794_v22 }
 0x746   : > { %v5688_v26 = vsub.f32 %v15498_v44, %v15794_v22  ;;  %v5689_v23 = vsub.f32 %v15492_v54, %v15794_v22  ;;  %v5690_v41 = vsub.f32 %v15516_v46, %v15794_v22  ;;  %v5691_v11 = vsub.f32 %v15513_v14, %v15794_v22 }
 0x747   : > { %v5692_v28 = vsub.f32 %v15535_v12, %v15794_v22  ;;  %v5693_v50 = vsub.f32 %v15527_v17, %v15794_v22  ;;  %v5694_v44 = vsub.f32 %v15549_v53, %v15794_v22  ;;  %v5695_v54 = vsub.f32 %v15546_v51, %v15794_v22 }
 0x748   : > { %v5696_v46 = vsub.f32 %v15572_v30, %v15794_v22  ;;  %v5697_v14 = vsub.f32 %v15563_v29, %v15794_v22  ;;  %v5698_v12 = vsub.f32 %v15585_v20, %v15794_v22  ;;  %v5699_v63 = vsub.f32 %v15582_v56, %v15794_v22 }
 0x749   : > { %v5700_v17 = vsub.f32 %v15608_v15, %v15794_v22  ;;  %v5701_v51 = vsub.f32 %v15599_v7, %v15794_v22  ;;  %v5702_v53 = vsub.f32 %v15621_v55, %v15794_v22  ;;  %v5703_v29 = vsub.f32 %v15618_v33, %v15794_v22 }
 0x74a   : > { %v5704_v30 = vsub.f32 %v15644_v2, %v15794_v22  ;;  %v5705_v56 = vsub.f32 %v15635_v27, %v15794_v22  ;;  %v5706_v20 = vsub.f32 %v15657_v43, %v15794_v22  ;;  %v5707_v15 = vsub.f32 %v15654_v18, %v15794_v22 }
 0x74b   : > { %v5708_v7 = vsub.f32 %v15680_v25, %v15794_v22  ;;  %v5709_v55 = vsub.f32 %v15671_v6, %v15794_v22  ;;  %v5710_v33 = vsub.f32 %v15693_v35, %v15794_v22  ;;  %v5711_v2 = vsub.f32 %v15690_v39, %v15794_v22 }
 0x74c   : > { %v5712_v43 = vsub.f32 %v15714_v9, %v15794_v22  ;;  %v5713_v18 = vsub.f32 %v15707_v21, %v15794_v22  ;;  %v5714_v25 = vsub.f32 %v15729_v19, %v15794_v22  ;;  %v5715_v6 = vsub.f32 %v15726_v16, %v15794_v22 }
 0x759   : > { %v5676_v49 = vpop.f32.mrb[12].mxu1 }
 0x75a   : > { %v5719_v27 = vrot.slane %v5676_v49, %v17532_v13  ;;  %v11730_v24 = vpop.f32.mrb[13].mxu1 }
 0x75c   : > { %v5720_v58 = vmul.f32 %v5719_v27, %v5684_v34  ;;  %v5721_v35 = vmul.f32 %v5719_v27, %v5685_v31  ;;  %v5722_v60 = vmul.f32 %v5719_v27, %v5686_v36  ;;  %v5723_v38 = vmul.f32 %v5719_v27, %v5687_v10 }
 0x75d   : > { %v5724_v39 = vmul.f32 %v5719_v27, %v5688_v26  ;;  %v5725_v37 = vmul.f32 %v5719_v27, %v5689_v23  ;;  %v5726_v13 = vmul.f32 %v5719_v27, %v5690_v41  ;;  %v5727_v61 = vmul.f32 %v5719_v27, %v5691_v11 }
 0x75e   : > { %v5728_v32 = vmul.f32 %v5719_v27, %v5692_v28  ;;  %v5729_v3 = vmul.f32 %v5719_v27, %v5693_v50  ;;  %v5730_v9 = vmul.f32 %v5719_v27, %v5694_v44  ;;  %v5731_v1 = vmul.f32 %v5719_v27, %v5695_v54  ;;  %v15871_v50 = vld [vmem:[%s17249_s8] ss:$0 sm:$0xff] }
 0x75f   : > { %v5732_v48 = vmul.f32 %v5719_v27, %v5696_v46  ;;  %v5733_v21 = vmul.f32 %v5719_v27, %v5697_v14  ;;  %v5734_v5 = vmul.f32 %v5719_v27, %v5698_v12  ;;  %v5735_v62 = vmul.f32 %v5719_v27, %v5699_v63 }
 0x760   : > { %v5736_v19 = vmul.f32 %v5719_v27, %v5700_v17  ;;  %v5737_v4 = vmul.f32 %v5719_v27, %v5701_v51  ;;  %v5738_v40 = vmul.f32 %v5719_v27, %v5702_v53  ;;  %v5739_v16 = vmul.f32 %v5719_v27, %v5703_v29 }
 0x761   : > { %v5740_v59 = vmul.f32 %v5719_v27, %v5704_v30  ;;  %v5741_v52 = vmul.f32 %v5719_v27, %v5705_v56  ;;  %v5742_v0 = vmul.f32 %v5719_v27, %v5706_v20  ;;  %v5743_v42 = vmul.f32 %v5719_v27, %v5707_v15 }
 0x762   : > { %v5744_v8 = vmul.f32 %v5719_v27, %v5708_v7  ;;  %v5745_v57 = vmul.f32 %v5719_v27, %v5709_v55  ;;  %v5746_v22 = vmul.f32 %v5719_v27, %v5710_v33  ;;  %v5747_v34 = vmul.f32 %v5719_v27, %v5711_v2 }
 0x763   : > { %v5748_v31 = vmul.f32 %v5719_v27, %v5712_v43  ;;  %v5749_v36 = vmul.f32 %v5719_v27, %v5713_v18  ;;  %v5750_v10 = vmul.f32 %v5719_v27, %v5714_v25  ;;  %v5751_v26 = vmul.f32 %v5719_v27, %v5715_v6 }
 0x764   : > { %v5759_v23 = vmul.f32 %v10093_v47, %v5720_v58  ;;  %v5760_v41 = vmul.f32 %v10093_v47, %v5721_v35  ;;  %v5761_v11 = vmul.f32 %v10093_v47, %v5722_v60  ;;  %v5762_v28 = vmul.f32 %v10093_v47, %v5723_v38 }
 0x765   : > { %v5763_v44 = vmul.f32 %v10093_v47, %v5724_v39  ;;  %v5764_v54 = vmul.f32 %v10093_v47, %v5725_v37  ;;  %v5765_v46 = vmul.f32 %v10093_v47, %v5726_v13  ;;  %v5766_v14 = vmul.f32 %v10093_v47, %v5727_v61 }
 0x766   : > { %v5767_v12 = vmul.f32 %v10093_v47, %v5728_v32  ;;  %v5768_v63 = vmul.f32 %v10093_v47, %v5729_v3  ;;  %v5769_v17 = vmul.f32 %v10093_v47, %v5730_v9  ;;  %v5770_v51 = vmul.f32 %v10093_v47, %v5731_v1 }
 0x767   : > { %v5771_v53 = vmul.f32 %v10093_v47, %v5732_v48  ;;  %v5772_v29 = vmul.f32 %v10093_v47, %v5733_v21  ;;  %v5773_v30 = vmul.f32 %v10093_v47, %v5734_v5  ;;  %v5774_v56 = vmul.f32 %v10093_v47, %v5735_v62 }
 0x768   : > { %v5775_v20 = vmul.f32 %v10093_v47, %v5736_v19  ;;  %v15874_v15 = vadd.f32 %v15871_v50, %v5759_v23  ;;  %v15877_v7 = vadd.f32 %v15871_v50, %v5760_v41  ;;  %v15880_v49 = vadd.f32 %v15871_v50, %v5761_v11 }
 0x769   : > { %v5776_v55 = vmul.f32 %v10093_v47, %v5737_v4  ;;  %v5777_v33 = vmul.f32 %v10093_v47, %v5738_v40  ;;  %v5778_v2 = vmul.f32 %v10093_v47, %v5739_v16  ;;  %v15883_v27 = vadd.f32 %v15871_v50, %v5762_v28 }
 0x76a   : > { %v15885_v24 = vmul.f32 %v10093_v47, %v5740_v59  ;;  %v15887_v43 = vmul.f32 %v10093_v47, %v5741_v52  ;;  %v15889_v18 = vmul.f32 %v10093_v47, %v5742_v0  ;;  %v15892_v25 = vadd.f32 %v15871_v50, %v5763_v44 }
 0x76b   : > { %v15894_v6 = vmul.f32 %v10093_v47, %v5743_v42  ;;  %v15896_v58 = vmul.f32 %v10093_v47, %v5744_v8  ;;  %v15899_v35 = vadd.f32 %v15871_v50, %v5764_v54  ;;  %v15902_v60 = vadd.f32 %v15871_v50, %v5765_v46 }
 0x76c   : > { %v15904_v38 = vmul.f32 %v10093_v47, %v5745_v57  ;;  %v5830_v39 = vsub.f32 0.0, %v15874_v15  ;;  %v5831_v37 = vsub.f32 0.0, %v15877_v7  ;;  %v5832_v13 = vsub.f32 0.0, %v15880_v49 }
 0x76d   : > { %v15909_v61 = vmul.f32 %v10093_v47, %v5746_v22  ;;  %v15911_v32 = vmul.f32 %v10093_v47, %v5747_v34  ;;  %v15914_v3 = vadd.f32 %v15871_v50, %v5766_v14  ;;  %v5833_v9 = vsub.f32 0.0, %v15883_v27 }
 0x76e   : > { %v15917_v1 = vmul.f32 %v10093_v47, %v5748_v31  ;;  %v15919_v48 = vmul.f32 %v10093_v47, %v5749_v36  ;;  %v15922_v21 = vadd.f32 %v15871_v50, %v5767_v12  ;;  %v5834_v5 = vsub.f32 0.0, %v15892_v25 }
 0x76f   : > { %v15925_v62 = vmul.f32 %v10093_v47, %v5750_v10  ;;  %v15928_v19 = vadd.f32 %v15871_v50, %v5768_v63  ;;  %v5835_v4 = vsub.f32 0.0, %v15899_v35  ;;  %v5836_v40 = vsub.f32 0.0, %v15902_v60 }
 0x770   : > { %v15933_v16 = vadd.f32 %v15871_v50, %v5769_v17  ;;  %v5862_v59 = vmul.f32 1.442695, %v5830_v39  ;;  %v5864_v52 = vmul.f32 1.442695, %v5831_v37  ;;  %v5866_v0 = vmul.f32 1.442695, %v5832_v13 }
 0x771   : > { %v15935_v42 = vmul.f32 %v10093_v47, %v5751_v26  ;;  %v15938_v8 = vadd.f32 %v15871_v50, %v5770_v51  ;;  %v5837_v57 = vsub.f32 0.0, %v15914_v3  ;;  %v5868_v22 = vmul.f32 1.442695, %v5833_v9 }
 0x772   : > { %v15942_v34 = vadd.f32 %v15871_v50, %v5771_v53  ;;  %v5838_v31 = vsub.f32 0.0, %v15922_v21  ;;  %13199 = vpow2.f32 %v5862_v59  ;;  %v5870_v36 = vmul.f32 1.442695, %v5834_v5 }
 0x773   : > { %v15946_v10 = vadd.f32 %v15871_v50, %v5772_v29  ;;  %v5839_v23 = vsub.f32 0.0, %v15928_v19  ;;  %13201 = vpow2.f32 %v5864_v52  ;;  %v5872_v26 = vmul.f32 1.442695, %v5835_v4 }
 0x774   : > { %v15950_v47 = vadd.f32 %v15871_v50, %v5773_v30  ;;  %v5840_v41 = vsub.f32 0.0, %v15933_v16  ;;  %13203 = vpow2.f32 %v5866_v0  ;;  %v5874_v11 = vmul.f32 1.442695, %v5836_v40 }
 0x775   : > { %v15954_v28 = vadd.f32 %v15871_v50, %v5774_v56  ;;  %v5841_v44 = vsub.f32 0.0, %v15938_v8  ;;  %13205 = vpow2.f32 %v5868_v22  ;;  %v5876_v54 = vmul.f32 1.442695, %v5837_v57 }
 0x776   : > { %v15958_v46 = vadd.f32 %v15871_v50, %v5775_v20  ;;  %v5842_v14 = vsub.f32 0.0, %v15942_v34  ;;  %13207 = vpow2.f32 %v5870_v36  ;;  %v5878_v12 = vmul.f32 1.442695, %v5838_v31 }
 0x777   : > { %v15962_v63 = vadd.f32 %v15871_v50, %v5776_v55  ;;  %v5843_v17 = vsub.f32 0.0, %v15946_v10  ;;  %13209 = vpow2.f32 %v5872_v26  ;;  %v5880_v51 = vmul.f32 1.442695, %v5839_v23 }
 0x778   : > { %v15966_v53 = vadd.f32 %v15871_v50, %v5777_v33  ;;  %v5844_v29 = vsub.f32 0.0, %v15950_v47  ;;  %13211 = vpow2.f32 %v5874_v11  ;;  %v5882_v30 = vmul.f32 1.442695, %v5840_v41 }
 0x779   : > { %v15970_v56 = vadd.f32 %v15871_v50, %v5778_v2  ;;  %v5845_v20 = vsub.f32 0.0, %v15954_v28  ;;  %13213 = vpow2.f32 %v5876_v54  ;;  %v5884_v39 = vmul.f32 1.442695, %v5841_v44 }
 0x77a   : > { %v15975_v55 = vadd.f32 %v15871_v50, %v15885_v24  ;;  %v5846_v37 = vsub.f32 0.0, %v15958_v46  ;;  %13215 = vpow2.f32 %v5878_v12  ;;  %v5886_v33 = vmul.f32 1.442695, %v5842_v14 }
 0x77b   : > { %v15980_v13 = vadd.f32 %v15871_v50, %v15887_v43  ;;  %v5847_v9 = vsub.f32 0.0, %v15962_v63  ;;  %13217 = vpow2.f32 %v5880_v51  ;;  %v5888_v2 = vmul.f32 1.442695, %v5843_v17 }
 0x77c   : > { %v15983_v5 = vpop.eup %13199  ;;  %v15987_v4 = vadd.f32 %v15871_v50, %v15889_v18  ;;  %v5848_v24 = vsub.f32 0.0, %v15966_v53  ;;  %13219 = vpow2.f32 %v5882_v30  ;;  %v5890_v40 = vmul.f32 1.442695, %v5844_v29 }
 0x77d   : > { %v15990_v59 = vpop.eup %13201  ;;  %v15994_v43 = vadd.f32 %v15871_v50, %v15894_v6  ;;  %v5849_v52 = vsub.f32 0.0, %v15970_v56  ;;  %13221 = vpow2.f32 %v5884_v39  ;;  %v5892_v0 = vmul.f32 1.442695, %v5845_v20 }
 0x77e   : > { %v15997_v57 = vpop.eup %13203  ;;  %v16001_v18 = vadd.f32 %v15871_v50, %v15896_v58  ;;  %v5850_v22 = vsub.f32 0.0, %v15975_v55  ;;  %13223 = vpow2.f32 %v5886_v33  ;;  %v5894_v31 = vmul.f32 1.442695, %v5846_v37 }
 0x77f   : > { %v16004_v36 = vpop.eup %13205  ;;  %v16008_v6 = vadd.f32 %v15871_v50, %v15904_v38  ;;  %v5851_v23 = vsub.f32 0.0, %v15980_v13  ;;  %13225 = vpow2.f32 %v5888_v2  ;;  %v5896_v26 = vmul.f32 1.442695, %v5847_v9 }
 0x780   : > { %v16011_v41 = vpop.eup %13207  ;;  %v16015_v58 = vadd.f32 %v15871_v50, %v15909_v61  ;;  %v5852_v11 = vsub.f32 0.0, %v15987_v4  ;;  %13227 = vpow2.f32 %v5890_v40  ;;  %v5898_v44 = vmul.f32 1.442695, %v5848_v24 }
 0x781   : > { %v16018_v54 = vpop.eup %13209  ;;  %v16022_v38 = vadd.f32 %v15871_v50, %v15911_v32  ;;  %v5853_v14 = vsub.f32 0.0, %v15994_v43  ;;  %13229 = vpow2.f32 %v5892_v0  ;;  %v5900_v12 = vmul.f32 1.442695, %v5849_v52 }
 0x782   : > { %v16025_v17 = vpop.eup %13211  ;;  %v16029_v61 = vadd.f32 %v15871_v50, %v15917_v1  ;;  %v5854_v51 = vsub.f32 0.0, %v16001_v18  ;;  %13231 = vpow2.f32 %v5894_v31  ;;  %v5902_v29 = vmul.f32 1.442695, %v5850_v22 }
 0x783   : > { %17533 = vst [vmem:[#allocation13_spill] sm:$0xff] %v16022_v38  ;;  %v16032_v30 = vpop.eup %13213  ;;  %v16036_v32 = vadd.f32 %v15871_v50, %v15919_v48  ;;  %v5855_v20 = vsub.f32 0.0, %v16008_v6  ;;  %13233 = vpow2.f32 %v5896_v26  ;;  %v5904_v39 = vmul.f32 1.442695, %v5851_v23 }
 0x784   : > { %17534 = vst [vmem:[#allocation14_spill] sm:$0xff] %v16029_v61  ;;  %v13216_v37 = vpop.eup %13215  ;;  %v16041_v33 = vadd.f32 %v15871_v50, %v15925_v62  ;;  %v5856_v1 = vsub.f32 0.0, %v16015_v58  ;;  %13235 = vpow2.f32 %v5898_v44  ;;  %v5906_v9 = vmul.f32 1.442695, %v5852_v11 }
 0x785   : > { %17535 = vst [vmem:[#allocation15_spill] sm:$0xff] %v16036_v32  ;;  %v13218_v2 = vpop.eup %13217  ;;  %v16046_v24 = vadd.f32 %v15871_v50, %v15935_v42  ;;  %v5857_v48 = vsub.f32 0.0, %v16022_v38  ;;  %13237 = vpow2.f32 %v5900_v12  ;;  %v5908_v40 = vmul.f32 1.442695, %v5853_v14 }
 0x786   : > { %17536 = vst [vmem:[#allocation16_spill] sm:$0xff] %v16041_v33  ;;  %v13220_v52 = vpop.eup %13219  ;;  %v5858_v0 = vsub.f32 0.0, %v16029_v61  ;;  %13239 = vpow2.f32 %v5902_v29  ;;  %v5910_v22 = vmul.f32 1.442695, %v5854_v51  ;;  %v5859_v31 = vsub.f32 0.0, %v16036_v32 }
 0x787   : > { %v13222_v62 = vpop.eup %13221  ;;  %13241 = vpow2.f32 %v5904_v39  ;;  %v5912_v23 = vmul.f32 1.442695, %v5855_v20  ;;  %v5860_v11 = vsub.f32 0.0, %v16041_v33  ;;  %v5914_v50 = vmul.f32 1.442695, %v5856_v1 }
 0x788   : > { %v13224_v26 = vpop.eup %13223  ;;  %13243 = vpow2.f32 %v5906_v9  ;;  %v5861_v44 = vsub.f32 0.0, %v16046_v24  ;;  %v5916_v14 = vmul.f32 1.442695, %v5857_v48  ;;  %v5918_v61 = vmul.f32 1.442695, %v5858_v0 }
 0x789   : > { %v13226_v42 = vpop.eup %13225  ;;  %13245 = vpow2.f32 %v5908_v40  ;;  %v5920_v51 = vmul.f32 1.442695, %v5859_v31  ;;  %v5922_v39 = vmul.f32 1.442695, %v5860_v11  ;;  %v5926_v1 = vadd.f32 1.0, %v15983_v5 }
 0x78a   : > { %v13228_v12 = vpop.eup %13227  ;;  %13247 = vpow2.f32 %v5910_v22  ;;  %v5924_v32 = vmul.f32 1.442695, %v5861_v44  ;;  %v5927_v48 = vadd.f32 1.0, %v15990_v59  ;;  %v5928_v0 = vadd.f32 1.0, %v15997_v57 }
 0x78b   : > { %v13230_v29 = vpop.eup %13229  ;;  %13249 = vpow2.f32 %v5912_v23  ;;  %v5929_v31 = vadd.f32 1.0, %v16004_v36  ;;  %v5930_v11 = vadd.f32 1.0, %v16011_v41  ;;  %v5931_v5 = vadd.f32 1.0, %v16018_v54 }
 0x78c   : > { %v13232_v38 = vpop.eup %13231  ;;  %13251 = vpow2.f32 %v5914_v50  ;;  %v5932_v50 = vadd.f32 1.0, %v16025_v17  ;;  %v5934_v44 = vadd.f32 1.0, %v13216_v37  ;;  %v5937_v17 = vadd.f32 1.0, %v13222_v62 }
 0x78d   : > { %v13234_v20 = vpop.eup %13233  ;;  %13253 = vpow2.f32 %v5916_v14  ;;  %v5935_v14 = vadd.f32 1.0, %v13218_v2  ;;  %v5939_v37 = vadd.f32 1.0, %v13226_v42 }
 0x78e   : > { %v13236_v33 = vpop.eup %13235  ;;  %13255 = vpow2.f32 %v5918_v61 }
 0x78f   : > { %v13238_v9 = vpop.eup %13237  ;;  %13257 = vpow2.f32 %v5920_v51  ;;  %v5936_v51 = vadd.f32 1.0, %v13220_v52 }
 0x790   : > { %v13240_v40 = vpop.eup %13239  ;;  %13259 = vpow2.f32 %v5922_v39 }
 0x791   : > { %v16056_v22 = vpop.eup %13241  ;;  %13261 = vpow2.f32 %v5924_v32  ;;  %v5933_v32 = vadd.f32 1.0, %v16032_v30  ;;  %v5938_v30 = vadd.f32 1.0, %v13224_v26  ;;  %v5943_v26 = vadd.f32 1.0, %v13234_v20 }
 0x792   : > { %v16059_v23 = vpop.eup %13243  ;;  %13263 = vrcp.f32 %v5926_v1  ;;  %v5946_v20 = vadd.f32 1.0, %v13240_v40 }
 0x793   : > { %v16062_v61 = vpop.eup %13245  ;;  %13265 = vrcp.f32 %v5927_v48 }
 0x794   : > { %v16065_v59 = vpop.eup %13247  ;;  %13267 = vrcp.f32 %v5928_v0 }
 0x795   : > { %v16068_v57 = vpop.eup %13249  ;;  %13269 = vrcp.f32 %v5929_v31  ;;  %v5940_v31 = vadd.f32 1.0, %v13228_v12  ;;  %v5944_v12 = vadd.f32 1.0, %v13236_v33 }
 0x796   : > { %v16071_v36 = vpop.eup %13251  ;;  %13271 = vrcp.f32 %v5930_v11  ;;  %v5941_v11 = vadd.f32 1.0, %v13230_v29 }
 0x797   : > { %v16073_v41 = vpop.eup %13253  ;;  %13273 = vrcp.f32 %v5931_v5 }
 0x798   : > { %v16075_v54 = vpop.eup %13255  ;;  %13275 = vrcp.f32 %v5932_v50  ;;  %v5942_v50 = vadd.f32 1.0, %v13232_v38 }
 0x799   : > { %v16077_v39 = vpop.eup %13257  ;;  %13277 = vrcp.f32 %v5933_v32 }
 0x79a   : > { %v16079_v1 = vpop.eup %13259  ;;  %13279 = vrcp.f32 %v5934_v44 }
 0x79b   : > { %v16081_v48 = vpop.eup %13261  ;;  %13281 = vrcp.f32 %v5935_v14  ;;  %v5945_v14 = vadd.f32 1.0, %v13238_v9 }
 0x79c   : > { %v13264_v0 = vpop.eup %13263  ;;  %13283 = vrcp.f32 %v5936_v51  ;;  %v5947_v51 = vadd.f32 1.0, %v16056_v22 }
 0x79d   : > { %v13266_v2 = vpop.eup %13265  ;;  %13285 = vrcp.f32 %v5937_v17  ;;  %v6022_v52 = vmul.f32 %v13264_v0, %v15874_v15  ;;  %v5951_v0 = vadd.f32 1.0, %v16068_v57 }
 0x79e   : > { %v13268_v5 = vpop.eup %13267  ;;  %13287 = vrcp.f32 %v5938_v30  ;;  %v6023_v62 = vmul.f32 %v13266_v2, %v15877_v7  ;;  %v5953_v2 = vadd.f32 1.0, %v16073_v41 }
 0x79f   : > { %v13270_v32 = vpop.eup %13269  ;;  %13289 = vrcp.f32 %v5939_v37  ;;  %v6024_v44 = vmul.f32 %v13268_v5, %v15880_v49  ;;  %6055 = vst.msk [vmem:[#allocation3 + $0x19] sm:$0xff] %vm534_vm0, %v6022_v52 }
 0x7a0   : > { %v13272_v42 = vpop.eup %13271  ;;  %13291 = vrcp.f32 %v5940_v31  ;;  %v6025_v29 = vmul.f32 %v13270_v32, %v15883_v27  ;;  %6056 = vst.msk [vmem:[#allocation3 + $0x21] sm:$0xff] %vm534_vm0, %v6023_v62  ;;  %v5956_v32 = vadd.f32 1.0, %v16079_v1  ;;  %v10131_v1 = vld [vmem:[%s17252_s11 + $0x38] sm:$0xff] }
 0x7a1   : > { %v13274_v15 = vpop.eup %13273  ;;  %13293 = vrcp.f32 %v5941_v11  ;;  %v6026_v38 = vmul.f32 %v13272_v42, %v15892_v25  ;;  %6057 = vst.msk [vmem:[#allocation3 + $0x31] sm:$0xff] %vm534_vm0, %v6024_v44  ;;  %v5948_v25 = vadd.f32 1.0, %v16059_v23 }
 0x7a2   : > { %v13276_v7 = vpop.eup %13275  ;;  %13295 = vrcp.f32 %v5942_v50  ;;  %v6027_v49 = vmul.f32 %v13274_v15, %v15899_v35  ;;  %6058 = vst.msk [vmem:[#allocation3 + $0x39] sm:$0xff] %vm534_vm0, %v6025_v29  ;;  %v5949_v35 = vadd.f32 1.0, %v16062_v61  ;;  %v5955_v50 = vadd.f32 1.0, %v16077_v39 }
 0x7a3   : > { %v13278_v33 = vpop.eup %13277  ;;  %13297 = vrcp.f32 %v5943_v26  ;;  %v6028_v27 = vmul.f32 %v13276_v7, %v15902_v60  ;;  %6059 = vst.msk [vmem:[#allocation3 + $0x49] sm:$0xff] %vm534_vm0, %v6026_v38  ;;  %v5950_v60 = vadd.f32 1.0, %v16065_v59 }
 0x7a4   : > { %v13280_v9 = vpop.eup %13279  ;;  %13299 = vrcp.f32 %v5944_v12  ;;  %v6029_v17 = vmul.f32 %v13278_v33, %v15914_v3  ;;  %6060 = vst.msk [vmem:[#allocation3 + $0x51] sm:$0xff] %vm534_vm0, %v6027_v49  ;;  %v10165_v49 = vld [vmem:[%s17252_s11 + $0x48] sm:$0xff] }
 0x7a5   : > { %v13282_v40 = vpop.eup %13281  ;;  %13301 = vrcp.f32 %v5945_v14  ;;  %v6030_v30 = vmul.f32 %v13280_v9, %v15922_v21  ;;  %6061 = vst.msk [vmem:[#allocation3 + $0x61] sm:$0xff] %vm534_vm0, %v6028_v27 }
 0x7a6   : > { %v13284_v22 = vpop.eup %13283  ;;  %13303 = vrcp.f32 %v5946_v20  ;;  %v6031_v37 = vmul.f32 %v13282_v40, %v15928_v19  ;;  %6062 = vst.msk [vmem:[#allocation3 + $0x69] sm:$0xff] %vm534_vm0, %v6029_v17  ;;  %v16105_v23 = vld [vmem:[#allocation3 + $0x18] sm:$0xff]  ;;  %v5952_v19 = vadd.f32 1.0, %v16071_v36  ;;  %v10164_v20 = vld [vmem:[%s17252_s11 + $0x40] sm:$0xff] }
 0x7a7   : > { %v13286_v3 = vpop.eup %13285  ;;  %13305 = vrcp.f32 %v5947_v51  ;;  %v6032_v61 = vmul.f32 %v13284_v22, %v15933_v16  ;;  %6063 = vst.msk [vmem:[#allocation3 + $0x79] sm:$0xff] %vm534_vm0, %v6030_v30  ;;  %11742 = vmatprep.mubr.msk.f32.mxu0 %vm534_vm0, %v16105_v23  ;;  %v16112_v21 = vld [vmem:[#allocation3 + $0x20] sm:$0xff] }
 0x7a8   : > { %v13288_v59 = vpop.eup %13287  ;;  %13307 = vrcp.f32 %v5948_v25  ;;  %v6033_v31 = vmul.f32 %v13286_v3, %v15938_v8  ;;  %6064 = vst.msk [vmem:[#allocation3 + $0x81] sm:$0xff] %vm534_vm0, %v6031_v37  ;;  %11743 = vmatmul.mubr.msk.f32.gmra.mrb[38].mxu0 %vm534_vm0, %v16112_v21  ;;  %v16119_v57 = vld [vmem:[#allocation3 + $0x30] sm:$0xff]  ;;  %v5954_v8 = vadd.f32 1.0, %v16075_v54 }
 0x7a9   : > { %v13290_v16 = vpop.eup %13289  ;;  %13309 = vrcp.f32 %v5949_v35  ;;  %v6034_v11 = vmul.f32 %v13288_v59, %v15942_v34  ;;  %6065 = vst.msk [vmem:[#allocation3 + $0x91] sm:$0xff] %vm534_vm0, %v6032_v61  ;;  %11745 = vmatprep.mubr.msk.f32.mxu0 %vm534_vm0, %v16119_v57  ;;  %v16132_v34 = vld [vmem:[#allocation3 + $0x38] sm:$0xff] }
 0x7aa   : > { %v13292_v36 = vpop.eup %13291  ;;  %13311 = vrcp.f32 %v5950_v60  ;;  %v6035_v52 = vmul.f32 %v13290_v16, %v15946_v10  ;;  %6066 = vst.msk [vmem:[#allocation3 + $0x99] sm:$0xff] %vm534_vm0, %v6033_v31  ;;  %v16139_v10 = vld [vmem:[#allocation3 + $0x48] sm:$0xff] }
 0x7ab   : > { %v13294_v5 = vpop.eup %13293  ;;  %13313 = vrcp.f32 %v5951_v0  ;;  %v6036_v41 = vmul.f32 %v13292_v36, %v15950_v47  ;;  %6067 = vst.msk [vmem:[#allocation3 + $0xa9] sm:$0xff] %vm534_vm0, %v6034_v11  ;;  %v5957_v47 = vadd.f32 1.0, %v16081_v48  ;;  %v16156_v12 = vld [vmem:[#allocation3 + $0x50] sm:$0xff] }
 0x7ac   : > { %v13296_v62 = vpop.eup %13295  ;;  %13315 = vrcp.f32 %v5952_v19  ;;  %v6037_v54 = vmul.f32 %v13294_v5, %v15954_v28  ;;  %6068 = vst.msk [vmem:[#allocation3 + $0xb1] sm:$0xff] %vm534_vm0, %v6035_v52  ;;  %11746 = vmatmul.mubr.msk.f32.gmra.mrb[40].mxu0 %vm534_vm0, %v16132_v34  ;;  %v10130_v28 = vld [vmem:[%s17252_s11 + $0x30] sm:$0xff] }
 0x7ad   : > { %v13298_v39 = vpop.eup %13297  ;;  %13317 = vrcp.f32 %v5953_v2  ;;  %v6038_v26 = vmul.f32 %v13296_v62, %v15958_v46  ;;  %6069 = vst.msk [vmem:[#allocation3 + $0xc1] sm:$0xff] %vm534_vm0, %v6036_v41  ;;  %11748 = vmatprep.mubr.msk.f32.mxu0 %vm534_vm0, %v16139_v10  ;;  %v12379_v38 = vpack.c.bf16 %v10131_v1, %v10130_v28  ;;  %v16191_v25 = vld [vmem:[#allocation3 + $0x68] sm:$0xff]  ;;  %v17539_v2 = vld [vmem:[#allocation15_spill] sm:$0xff]  ;;  %v17540_v52 = vld [vmem:[#allocation16_spill] sm:$0xff] }
 0x7ae   : > { %v13300_v44 = vpop.eup %13299  ;;  %13319 = vrcp.f32 %v5954_v8  ;;  %v6039_v48 = vmul.f32 %v13298_v39, %v15962_v63  ;;  %6070 = vst.msk [vmem:[#allocation3 + $0xc9] sm:$0xff] %vm534_vm0, %v6037_v54  ;;  %v16164_v63 = vld [vmem:[#allocation3 + $0x60] sm:$0xff]  ;;  %v16197_v40 = vld [vmem:[#allocation3 + $0x78] sm:$0xff] }
 0x7af   : > { %v13302_v46 = vpop.eup %13301  ;;  %13321 = vrcp.f32 %v5955_v50  ;;  %v6040_v42 = vmul.f32 %v13300_v44, %v15966_v53  ;;  %6071 = vst.msk [vmem:[#allocation3 + $0xd9] sm:$0xff] %vm534_vm0, %v6038_v26  ;;  %v16217_v3 = vld [vmem:[#allocation3 + $0x80] sm:$0xff] }
 0x7b0   : > { %v13304_v29 = vpop.eup %13303  ;;  %13323 = vrcp.f32 %v5956_v32  ;;  %v6041_v15 = vmul.f32 %v13302_v46, %v15970_v56  ;;  %6072 = vst.msk [vmem:[#allocation3 + $0xe1] sm:$0xff] %vm534_vm0, %v6039_v48  ;;  %v16160_v14 = vld [vmem:[#allocation3 + $0x90] sm:$0xff]  ;;  %11749 = vmatmul.mubr.msk.f32.gmra.mrb[42].mxu0 %vm534_vm0, %v16156_v12  ;;  %v6484_v46 = vld [vmem:[#allocation3 + $0x1] sm:$0xff] }
 0x7b1   : > { %v13306_v7 = vpop.eup %13305  ;;  %13325 = vrcp.f32 %v5957_v47  ;;  %v6042_v53 = vmul.f32 %v13304_v29, %v15975_v55  ;;  %6073 = vst.msk [vmem:[#allocation3 + $0xf1] sm:$0xff] %vm534_vm0, %v6040_v42  ;;  %11757 = vmatprep.mubr.msk.f32.mxu1 %vm534_vm0, %v16160_v14  ;;  %v16170_v56 = vld [vmem:[#allocation3 + $0x98] sm:$0xff]  ;;  %11751 = vmatprep.mubr.msk.f32.mxu0 %vm534_vm0, %v16164_v63  ;;  %v10166_v29 = vld [vmem:[%s17252_s11 + $0x50] sm:$0xff] }
 0x7b2   : > { %v13308_v33 = vpop.eup %13307  ;;  %v6043_v55 = vmul.f32 %v13306_v7, %v15980_v13  ;;  %6074 = vst.msk [vmem:[#allocation3 + $0xf9] sm:$0xff] %vm534_vm0, %v6041_v15  ;;  %11758 = vmatmul.mubr.msk.f32.vlgmr.msra.gmra.mrb[14].mxu1 %vm534_vm0, %v16170_v56  ;;  %v16184_v51 = vld [vmem:[#allocation3 + $0xa8] sm:$0xff] }
 0x7b3   : > { %v13310_v27 = vpop.eup %13309  ;;  %v6044_v9 = vmul.f32 %v13308_v33, %v15987_v4  ;;  %6075 = vst.msk [vmem:[#allocation3 + $0x109] sm:$0xff] %vm534_vm0, %v6042_v53  ;;  %12378 = vmatpush3.bf16.msra.mxu1 %v15796_v45  ;;  %11760 = vmatprep.mubr.msk.f32.mxu1 %vm534_vm0, %v16184_v51  ;;  %v16199_v4 = vpack.c.bf16 %v10165_v49, %v10164_v20  ;;  %v16203_v30 = vld [vmem:[#allocation3 + $0xb0] sm:$0xff]  ;;  %v10167_v15 = vld [vmem:[%s17252_s11 + $0x58] sm:$0xff]  ;;  %v10201_v20 = vld [vmem:[%s17252_s11 + $0x68] sm:$0xff] }
 0x7b4   : > { %v13312_v13 = vpop.eup %13311  ;;  %v6045_v17 = vmul.f32 %v13310_v27, %v15994_v43  ;;  %6076 = vst.msk [vmem:[#allocation3 + $0x111] sm:$0xff] %vm534_vm0, %v6043_v55  ;;  %11752 = vmatmul.mubr.msk.f32.gmra.mrb[44].mxu0 %vm534_vm0, %v16191_v25  ;;  %12380 = vmatprep.subr.bf16.mxu1 %v12379_v38  ;;  %v16211_v60 = vld [vmem:[#allocation3 + $0xc0] sm:$0xff]  ;;  %v12387_v7 = vpack.c.bf16 %v10167_v15, %v10166_v29  ;;  %v10200_v53 = vld [vmem:[%s17252_s11 + $0x60] sm:$0xff] }
 0x7b5   : > { %v13314_v35 = vpop.eup %13313  ;;  %v6046_v45 = vmul.f32 %v13312_v13, %v16001_v18  ;;  %6077 = vst.msk [vmem:[#allocation3 + $0x121] sm:$0xff] %vm534_vm0, %v6044_v9  ;;  %11754 = vmatprep.mubr.msk.f32.mxu0 %vm534_vm0, %v16197_v40  ;;  %v16226_v31 = vld [vmem:[#allocation3 + $0xc8] sm:$0xff]  ;;  %v16308_v49 = vld [vmem:[#allocation3 + $0x19] sm:$0xff]  ;;  %v16313_v33 = vpack.c.bf16 %v10201_v20, %v10200_v53  ;;  %v16319_v27 = vld [vmem:[#allocation3 + $0x31] sm:$0xff] }
 0x7b6   : > { %v13316_v43 = vpop.eup %13315  ;;  %v6047_v22 = vmul.f32 %v13314_v35, %v16008_v6  ;;  %6078 = vst.msk [vmem:[#allocation3 + $0x129] sm:$0xff] %vm534_vm0, %v6045_v17  ;;  %11761 = vmatmul.mubr.msk.f32.gmra.mrb[16].mxu1 %vm534_vm0, %v16203_v30  ;;  %v17537_v6 = vld [vmem:[#allocation13_spill] sm:$0xff]  ;;  %v16232_v36 = vld [vmem:[#allocation3 + $0xd8] sm:$0xff]  ;;  %v10202_v53 = vld [vmem:[%s17252_s11 + $0x70] sm:$0xff] }
 0x7b7   : > { %v13318_v37 = vpop.eup %13317  ;;  %v6048_v18 = vmul.f32 %v13316_v43, %v16015_v58  ;;  %6079 = vst.msk [vmem:[#allocation3 + $0x139] sm:$0xff] %vm534_vm0, %v6046_v45  ;;  %11763 = vmatprep.mubr.msk.f32.mxu1 %vm534_vm0, %v16211_v60  ;;  %12382 = vmatpush3.bf16.msra.mxu1 %v12379_v38  ;;  %v17538_v58 = vld [vmem:[#allocation14_spill] sm:$0xff]  ;;  %v16241_v41 = vld [vmem:[#allocation3 + $0xe0] sm:$0xff]  ;;  %v10203_v20 = vld [vmem:[%s17252_s11 + $0x78] sm:$0xff] }
 0x7b8   : > { %v13320_v0 = vpop.eup %13319  ;;  %v6049_v61 = vmul.f32 %v13318_v37, %v17537_v6  ;;  %6080 = vst.msk [vmem:[#allocation3 + $0x141] sm:$0xff] %vm534_vm0, %v6047_v22  ;;  %11755 = vmatmul.mubr.msk.f32.gmra.mrb[46].mxu0 %vm534_vm0, %v16217_v3  ;;  %12384 = vmatprep.subr.bf16.mxu1 %v16199_v4  ;;  %v16246_v62 = vld [vmem:[#allocation3 + $0xf0] sm:$0xff]  ;;  %v16315_v55 = vld [vmem:[#allocation3 + $0x21] sm:$0xff]  ;;  %v16324_v9 = vld [vmem:[#allocation3 + $0x39] sm:$0xff] }
 0x7b9   : > { %v13322_v59 = vpop.eup %13321  ;;  %v6050_v19 = vmul.f32 %v13320_v0, %v17538_v58  ;;  %6081 = vst.msk [vmem:[#allocation3 + $0x151] sm:$0xff] %vm534_vm0, %v6048_v18  ;;  %v16250_v32 = vld [vmem:[#allocation3 + $0xf8] sm:$0xff]  ;;  %v6485_v38 = vld [vmem:[#allocation3 + $0x9] sm:$0xff]  ;;  %v16348_v43 = vld [vmem:[#allocation3 + $0x81] sm:$0xff] }
 0x7ba   : > { %v13324_v16 = vpop.eup %13323  ;;  %v6051_v11 = vmul.f32 %v13322_v59, %v17539_v2  ;;  %6082 = vst.msk [vmem:[#allocation3 + $0x159] sm:$0xff] %vm534_vm0, %v6049_v61  ;;  %11764 = vmatmul.mubr.msk.f32.gmra.mrb[18].mxu1 %vm534_vm0, %v16226_v31  ;;  %v16328_v13 = vld [vmem:[#allocation3 + $0x49] sm:$0xff]  ;;  %v16332_v17 = vld [vmem:[#allocation3 + $0x51] sm:$0xff]  ;;  %v16344_v45 = vld [vmem:[#allocation3 + $0x79] sm:$0xff] }
 0x7bb   : > { %v13326_v8 = vpop.eup %13325  ;;  %v6052_v5 = vmul.f32 %v13324_v16, %v17540_v52  ;;  %6083 = vst.msk [vmem:[#allocation3 + $0x169] sm:$0xff] %vm534_vm0, %v6050_v19  ;;  %11766 = vmatprep.mubr.msk.f32.mxu1 %vm534_vm0, %v16232_v36  ;;  %v16258_v54 = vld [vmem:[#allocation3 + $0x110] sm:$0xff]  ;;  %v16356_v37 = vld [vmem:[#allocation3 + $0x99] sm:$0xff]  ;;  %v16368_v6 = vld [vmem:[#allocation3 + $0xc1] sm:$0xff] }
 0x7bc   : > { %v6053_v50 = vmul.f32 %v13326_v8, %v16046_v24  ;;  %6084 = vst.msk [vmem:[#allocation3 + $0x171] sm:$0xff] %vm534_vm0, %v6051_v11  ;;  %v16254_v24 = vld [vmem:[#allocation3 + $0x108] sm:$0xff]  ;;  %v16262_v39 = vld [vmem:[#allocation3 + $0x120] sm:$0xff]  ;;  %v16352_v22 = vld [vmem:[#allocation3 + $0x91] sm:$0xff] }
 0x7bd   : > { %6085 = vst.msk [vmem:[#allocation3 + $0x181] sm:$0xff] %vm534_vm0, %v6052_v5  ;;  %v16266_v47 = vld [vmem:[#allocation3 + $0x128] sm:$0xff]  ;;  %v16364_v0 = vld [vmem:[#allocation3 + $0xb1] sm:$0xff]  ;;  %v16376_v59 = vld [vmem:[#allocation3 + $0xd9] sm:$0xff] }
 0x7be   : > { %6086 = vst.msk [vmem:[#allocation3 + $0x189] sm:$0xff] %vm534_vm0, %v6053_v50  ;;  %11767 = vmatmul.mubr.msk.f32.gmra.mrb[20].mxu1 %vm534_vm0, %v16241_v41  ;;  %v16270_v26 = vld [vmem:[#allocation3 + $0x138] sm:$0xff]  ;;  %v16340_v35 = vld [vmem:[#allocation3 + $0x69] sm:$0xff]  ;;  %v16380_v58 = vld [vmem:[#allocation3 + $0xe1] sm:$0xff] }
 0x7bf   : > { %11769 = vmatprep.mubr.msk.f32.mxu1 %vm534_vm0, %v16246_v62  ;;  %v16274_v28 = vld [vmem:[#allocation3 + $0x140] sm:$0xff]  ;;  %v16360_v18 = vld [vmem:[#allocation3 + $0xa9] sm:$0xff]  ;;  %v16384_v19 = vld [vmem:[#allocation3 + $0xf1] sm:$0xff] }
 0x7c0   : > { %v16278_v1 = vld [vmem:[#allocation3 + $0x150] sm:$0xff]  ;;  %v16388_v16 = vld [vmem:[#allocation3 + $0xf9] sm:$0xff]  ;;  %v16400_v8 = vld [vmem:[#allocation3 + $0x121] sm:$0xff] }
 0x7c1   : > { %v16282_v44 = vld [vmem:[#allocation3 + $0x158] sm:$0xff]  ;;  %v16372_v61 = vld [vmem:[#allocation3 + $0xc9] sm:$0xff]  ;;  %v16412_v50 = vld [vmem:[#allocation3 + $0x141] sm:$0xff] }
 0x7c2   : > { %11770 = vmatmul.mubr.msk.f32.gmra.mrb[22].mxu1 %vm534_vm0, %v16250_v32  ;;  %v16286_v48 = vld [vmem:[#allocation3 + $0x168] sm:$0xff]  ;;  %v16396_v11 = vld [vmem:[#allocation3 + $0x111] sm:$0xff]  ;;  %v16408_v5 = vld [vmem:[#allocation3 + $0x139] sm:$0xff]  ;;  %17542 = vst [vmem:[#allocation18_spill] sm:$0xff] %v16412_v50 }
 0x7c3   : > { %11772 = vmatprep.mubr.msk.f32.mxu1 %vm534_vm0, %v16254_v24  ;;  %v16290_v42 = vld [vmem:[#allocation3 + $0x170] sm:$0xff]  ;;  %17541 = vst [vmem:[#allocation17_spill] sm:$0xff] %v16408_v5  ;;  %v16420_v29 = vld [vmem:[#allocation3 + $0x159] sm:$0xff] }
 0x7c4   : > { %v16392_v2 = vld [vmem:[#allocation3 + $0x109] sm:$0xff]  ;;  %17544 = vst [vmem:[#allocation20_spill] sm:$0xff] %v16420_v29 }
 0x7c5   : > { %v16404_v52 = vld [vmem:[#allocation3 + $0x129] sm:$0xff] }
 0x7c6   : > { %11773 = vmatmul.mubr.msk.f32.gmra.mrb[24].mxu1 %vm534_vm0, %v16258_v54  ;;  %v16424_v15 = vld [vmem:[#allocation3 + $0x169] sm:$0xff] }
 0x7c7   : > { %11775 = vmatprep.mubr.msk.f32.mxu1 %vm534_vm0, %v16262_v39  ;;  %17545 = vst [vmem:[#allocation21_spill] sm:$0xff] %v16424_v15 }
 0x7ca   : > { %11776 = vmatmul.mubr.msk.f32.gmra.mrb[26].mxu1 %vm534_vm0, %v16266_v47 }
 0x7cb   : > { %11778 = vmatprep.mubr.msk.f32.mxu1 %vm534_vm0, %v16270_v26 }
 0x7ce   : > { %11779 = vmatmul.mubr.msk.f32.gmra.mrb[28].mxu1 %vm534_vm0, %v16274_v28 }
 0x7cf   : > { %11781 = vmatprep.mubr.msk.f32.mxu1 %vm534_vm0, %v16278_v1 }
 0x7d2   : > { %11782 = vmatmul.mubr.msk.f32.gmra.mrb[30].mxu1 %vm534_vm0, %v16282_v44 }
 0x7d3   : > { %11784 = vmatprep.mubr.msk.f32.mxu1 %vm534_vm0, %v16286_v48 }
 0x7d6   : > { %11785 = vmatmul.mubr.msk.f32.gmra.mrb[32].mxu1 %vm534_vm0, %v16290_v42 }
 0x7d7   : > { %11795 = vmatprep.mubr.msk.f32.mxu1 %vm534_vm0, %v6484_v46  ;;  %v16416_v46 = vld [vmem:[#allocation3 + $0x151] sm:$0xff] }
 0x7d8   : > { %17543 = vst [vmem:[#allocation19_spill] sm:$0xff] %v16416_v46 }
 0x7da   : > { %11796 = vmatmul.mubr.msk.f32.vlgmr.msra.gmra.mrb[34].mxu1 %vm534_vm0, %v6485_v38  ;;  %v6874_v38 = vld [vmem:[#allocation3 + $0x2] sm:$0xff] }
 0x7db   : > { %12386 = vmatpush3.bf16.msra.mxu1 %v16199_v4  ;;  %11798 = vmatprep.mubr.msk.f32.mxu1 %vm534_vm0, %v16308_v49  ;;  %v16336_v4 = vld [vmem:[#allocation3 + $0x61] sm:$0xff] }
 0x7dc   : > { %12388 = vmatprep.subr.bf16.mxu1 %v12387_v7 }
 0x7de   : > { %11799 = vmatmul.mubr.msk.f32.gmra.mrb[36].mxu1 %vm534_vm0, %v16315_v55 }
 0x7df   : > { %11801 = vmatprep.mubr.msk.f32.mxu1 %vm534_vm0, %v16319_v27  ;;  %12390 = vmatpush3.bf16.msra.mxu1 %v12387_v7  ;;  %v16428_v7 = vld [vmem:[#allocation3 + $0x171] sm:$0xff] }
 0x7e0   : > { %12392 = vmatprep.subr.bf16.mxu1 %v16313_v33  ;;  %17546 = vst [vmem:[#allocation22_spill] sm:$0xff] %v16428_v7 }
 0x7e2   : > { %11802 = vmatmul.mubr.msk.f32.gmra.mrb[38].mxu1 %vm534_vm0, %v16324_v9 }
 0x7e3   : > { %11804 = vmatprep.mubr.msk.f32.mxu1 %vm534_vm0, %v16328_v13 }
 0x7e6   : > { %11805 = vmatmul.mubr.msk.f32.gmra.mrb[40].mxu1 %vm534_vm0, %v16332_v17 }
 0x7e7   : > { %11807 = vmatprep.mubr.msk.f32.mxu1 %vm534_vm0, %v16336_v4 }
 0x7ea   : > { %11808 = vmatmul.mubr.msk.f32.gmra.mrb[42].mxu1 %vm534_vm0, %v16340_v35 }
 0x7eb   : > { %11810 = vmatprep.mubr.msk.f32.mxu1 %vm534_vm0, %v16344_v45 }
 0x7ee   : > { %11811 = vmatmul.mubr.msk.f32.gmra.mrb[44].mxu1 %vm534_vm0, %v16348_v43 }
 0x7ef   : > { %11813 = vmatprep.mubr.msk.f32.mxu1 %vm534_vm0, %v16352_v22 }
 0x7f2   : > { %11814 = vmatmul.mubr.msk.f32.gmra.mrb[14].mxu1 %vm534_vm0, %v16356_v37 }
 0x7f3   : > { %11816 = vmatprep.mubr.msk.f32.mxu1 %vm534_vm0, %v16360_v18 }
 0x7f6   : > { %11817 = vmatmul.mubr.msk.f32.gmra.mrb[16].mxu1 %vm534_vm0, %v16364_v0 }
 0x7f7   : > { %11819 = vmatprep.mubr.msk.f32.mxu1 %vm534_vm0, %v16368_v6 }
 0x7fa   : > { %11820 = vmatmul.mubr.msk.f32.gmra.mrb[18].mxu1 %vm534_vm0, %v16372_v61 }
 0x7fb   : > { %11822 = vmatprep.mubr.msk.f32.mxu1 %vm534_vm0, %v16376_v59 }
 0x7fe   : > { %11823 = vmatmul.mubr.msk.f32.gmra.mrb[20].mxu1 %vm534_vm0, %v16380_v58 }
 0x7ff   : > { %11825 = vmatprep.mubr.msk.f32.mxu1 %vm534_vm0, %v16384_v19 }
 0x802   : > { %11826 = vmatmul.mubr.msk.f32.gmra.mrb[22].mxu1 %vm534_vm0, %v16388_v16 }
 0x803   : > { %11828 = vmatprep.mubr.msk.f32.mxu1 %vm534_vm0, %v16392_v2 }
 0x806   : > { %11829 = vmatmul.mubr.msk.f32.gmra.mrb[24].mxu1 %vm534_vm0, %v16396_v11 }
 0x807   : > { %11831 = vmatprep.mubr.msk.f32.mxu1 %vm534_vm0, %v16400_v8 }
 0x80a   : > { %11832 = vmatmul.mubr.msk.f32.gmra.mrb[26].mxu1 %vm534_vm0, %v16404_v52 }
 0x80b   : > { %11834 = vmatprep.mubr.msk.f32.mxu1 %vm534_vm0, %v16408_v5  ;;  %v16446_v5 = vld [vmem:[#allocation3 + $0x1a] sm:$0xff] }
 0x80e   : > { %11835 = vmatmul.mubr.msk.f32.gmra.mrb[28].mxu1 %vm534_vm0, %v16412_v50  ;;  %v10237_v50 = vld [vmem:[%s17252_s11 + $0x88] sm:$0xff] }
 0x80f   : > { %11837 = vmatprep.mubr.msk.f32.mxu1 %vm534_vm0, %v16416_v46  ;;  %v12395_v46 = vpack.c.bf16 %v10203_v20, %v10202_v53  ;;  %v16453_v53 = vld [vmem:[#allocation3 + $0x22] sm:$0xff]  ;;  %v16457_v20 = vld [vmem:[#allocation3 + $0x32] sm:$0xff] }
 0x812   : > { %11838 = vmatmul.mubr.msk.f32.gmra.mrb[30].mxu1 %vm534_vm0, %v16420_v29  ;;  %v6875_v29 = vld [vmem:[#allocation3 + $0xa] sm:$0xff] }
 0x813   : > { %11840 = vmatprep.mubr.msk.f32.mxu1 %vm534_vm0, %v16424_v15  ;;  %v10236_v15 = vld [vmem:[%s17252_s11 + $0x80] sm:$0xff] }
 0x816   : > { %11841 = vmatmul.mubr.msk.f32.gmra.mrb[32].mxu1 %vm534_vm0, %v16428_v7  ;;  %v16459_v7 = vpop.f32.mrb[36].mxu0 }
 0x817   : > { %11851 = vmatprep.mubr.msk.f32.mxu1 %vm534_vm0, %v6874_v38  ;;  %v16451_v38 = vpack.c.bf16 %v10237_v50, %v10236_v15  ;;  %17547 = vst [vmem:[#allocation23_spill] sm:$0xff] %v16459_v7  ;;  %v16470_v50 = vld [vmem:[#allocation3 + $0x4a] sm:$0xff]  ;;  %v16474_v15 = vld [vmem:[#allocation3 + $0x52] sm:$0xff]  ;;  %v16486_v7 = vld [vmem:[#allocation3 + $0x7a] sm:$0xff] }
 0x818   : > { %17550 = vst [vmem:[#allocation26_spill] sm:$0xff] %v16470_v50  ;;  %17551 = vst [vmem:[#allocation27_spill] sm:$0xff] %v16474_v15 }
 0x819   : > { %17554 = vst [vmem:[#allocation30_spill] sm:$0xff] %v16486_v7 }
 0x81a   : > { %11852 = vmatmul.mubr.msk.f32.vlgmr.msra.gmra.mrb[34].mxu1 %vm534_vm0, %v6875_v29  ;;  %v16466_v29 = vld [vmem:[#allocation3 + $0x3a] sm:$0xff] }
 0x81b   : > { %12394 = vmatpush3.bf16.msra.mxu1 %v16313_v33  ;;  %11854 = vmatprep.mubr.msk.f32.mxu1 %vm534_vm0, %v16446_v5  ;;  %v16463_v33 = vpop.f32.mrb[37].mxu0  ;;  %17549 = vst [vmem:[#allocation25_spill] sm:$0xff] %v16466_v29 }
 0x81c   : > { %12396 = vmatprep.subr.bf16.mxu1 %v12395_v46  ;;  %17548 = vst [vmem:[#allocation24_spill] sm:$0xff] %v16463_v33  ;;  %v16482_v33 = vld [vmem:[#allocation3 + $0x6a] sm:$0xff] }
 0x81d   : > { %17553 = vst [vmem:[#allocation29_spill] sm:$0xff] %v16482_v33 }
 0x81e   : > { %11855 = vmatmul.mubr.msk.f32.gmra.mrb[36].mxu1 %vm534_vm0, %v16453_v53 }
 0x81f   : > { %11857 = vmatprep.mubr.msk.f32.mxu1 %vm534_vm0, %v16457_v20  ;;  %12398 = vmatpush3.bf16.msra.mxu1 %v12395_v46  ;;  %v16478_v46 = vld [vmem:[#allocation3 + $0x62] sm:$0xff] }
 0x820   : > { %12400 = vmatprep.subr.bf16.mxu1 %v16451_v38  ;;  %17552 = vst [vmem:[#allocation28_spill] sm:$0xff] %v16478_v46 }
 0x822   : > { %11858 = vmatmul.mubr.msk.f32.gmra.mrb[38].mxu1 %vm534_vm0, %v16466_v29  ;;  %v10273_v29 = vld [vmem:[%s17252_s11 + $0xa8] sm:$0xff] }
 0x823   : > { %11860 = vmatprep.mubr.msk.f32.mxu1 %vm534_vm0, %v16470_v50  ;;  %v16490_v50 = vld [vmem:[#allocation3 + $0x82] sm:$0xff] }
 0x824   : > { %17555 = vst [vmem:[#allocation31_spill] sm:$0xff] %v16490_v50 }
 0x826   : > { %11861 = vmatmul.mubr.msk.f32.gmra.mrb[40].mxu1 %vm534_vm0, %v16474_v15  ;;  %v16494_v15 = vld [vmem:[#allocation3 + $0x92] sm:$0xff] }
 0x827   : > { %11863 = vmatprep.mubr.msk.f32.mxu1 %vm534_vm0, %v16478_v46  ;;  %17556 = vst [vmem:[#allocation32_spill] sm:$0xff] %v16494_v15  ;;  %v16498_v46 = vld [vmem:[#allocation3 + $0x9a] sm:$0xff] }
 0x828   : > { %17557 = vst [vmem:[#allocation33_spill] sm:$0xff] %v16498_v46 }
 0x82a   : > { %11864 = vmatmul.mubr.msk.f32.gmra.mrb[42].mxu1 %vm534_vm0, %v16482_v33  ;;  %v16502_v33 = vld [vmem:[#allocation3 + $0xaa] sm:$0xff] }
 0x82b   : > { %11866 = vmatprep.mubr.msk.f32.mxu1 %vm534_vm0, %v16486_v7  ;;  %17558 = vst [vmem:[#allocation34_spill] sm:$0xff] %v16502_v33  ;;  %v16506_v7 = vld [vmem:[#allocation3 + $0xb2] sm:$0xff] }
 0x82c   : > { %17559 = vst [vmem:[#allocation35_spill] sm:$0xff] %v16506_v7 }
 0x82e   : > { %11867 = vmatmul.mubr.msk.f32.gmra.mrb[44].mxu1 %vm534_vm0, %v16490_v50  ;;  %v16510_v50 = vld [vmem:[#allocation3 + $0xc2] sm:$0xff] }
 0x82f   : > { %11869 = vmatprep.mubr.msk.f32.mxu1 %vm534_vm0, %v16494_v15  ;;  %17560 = vst [vmem:[#allocation36_spill] sm:$0xff] %v16510_v50  ;;  %v16514_v15 = vld [vmem:[#allocation3 + $0xca] sm:$0xff] }
 0x830   : > { %17561 = vst [vmem:[#allocation37_spill] sm:$0xff] %v16514_v15 }
 0x832   : > { %11870 = vmatmul.mubr.msk.f32.gmra.mrb[14].mxu1 %vm534_vm0, %v16498_v46  ;;  %v16518_v46 = vld [vmem:[#allocation3 + $0xda] sm:$0xff] }
 0x833   : > { %11872 = vmatprep.mubr.msk.f32.mxu1 %vm534_vm0, %v16502_v33  ;;  %17562 = vst [vmem:[#allocation38_spill] sm:$0xff] %v16518_v46  ;;  %v16522_v33 = vld [vmem:[#allocation3 + $0xe2] sm:$0xff] }
 0x834   : > { %17563 = vst [vmem:[#allocation39_spill] sm:$0xff] %v16522_v33 }
 0x836   : > { %11873 = vmatmul.mubr.msk.f32.gmra.mrb[16].mxu1 %vm534_vm0, %v16506_v7  ;;  %v16526_v7 = vld [vmem:[#allocation3 + $0xf2] sm:$0xff] }
 0x837   : > { %11875 = vmatprep.mubr.msk.f32.mxu1 %vm534_vm0, %v16510_v50  ;;  %17564 = vst [vmem:[#allocation40_spill] sm:$0xff] %v16526_v7  ;;  %v16530_v50 = vld [vmem:[#allocation3 + $0xfa] sm:$0xff] }
 0x838   : > { %17565 = vst [vmem:[#allocation41_spill] sm:$0xff] %v16530_v50 }
 0x83a   : > { %11876 = vmatmul.mubr.msk.f32.gmra.mrb[18].mxu1 %vm534_vm0, %v16514_v15  ;;  %v16534_v15 = vld [vmem:[#allocation3 + $0x10a] sm:$0xff] }
 0x83b   : > { %11878 = vmatprep.mubr.msk.f32.mxu1 %vm534_vm0, %v16518_v46  ;;  %17566 = vst [vmem:[#allocation42_spill] sm:$0xff] %v16534_v15  ;;  %v16538_v46 = vld [vmem:[#allocation3 + $0x112] sm:$0xff] }
 0x83c   : > { %17567 = vst [vmem:[#allocation43_spill] sm:$0xff] %v16538_v46 }
 0x83e   : > { %11879 = vmatmul.mubr.msk.f32.gmra.mrb[20].mxu1 %vm534_vm0, %v16522_v33  ;;  %v16542_v33 = vld [vmem:[#allocation3 + $0x122] sm:$0xff] }
 0x83f   : > { %11881 = vmatprep.mubr.msk.f32.mxu1 %vm534_vm0, %v16526_v7  ;;  %17568 = vst [vmem:[#allocation11_spill] sm:$0xff] %v16542_v33  ;;  %v16546_v7 = vld [vmem:[#allocation3 + $0x12a] sm:$0xff] }
 0x840   : > { %17569 = vst [vmem:[#allocation12_spill] sm:$0xff] %v16546_v7 }
 0x842   : > { %11882 = vmatmul.mubr.msk.f32.gmra.mrb[22].mxu1 %vm534_vm0, %v16530_v50  ;;  %v16550_v50 = vld [vmem:[#allocation3 + $0x13a] sm:$0xff] }
 0x843   : > { %11884 = vmatprep.mubr.msk.f32.mxu1 %vm534_vm0, %v16534_v15  ;;  %17570 = vst [vmem:[#allocation10_spill] sm:$0xff] %v16550_v50  ;;  %v16554_v15 = vld [vmem:[#allocation3 + $0x142] sm:$0xff] }
 0x844   : > { %17571 = vst [vmem:[#allocation13_spill] sm:$0xff] %v16554_v15 }
 0x846   : > { %11885 = vmatmul.mubr.msk.f32.gmra.mrb[24].mxu1 %vm534_vm0, %v16538_v46  ;;  %v16558_v46 = vld [vmem:[#allocation3 + $0x152] sm:$0xff] }
 0x847   : > { %11887 = vmatprep.mubr.msk.f32.mxu1 %vm534_vm0, %v16542_v33  ;;  %17572 = vst [vmem:[#allocation14_spill] sm:$0xff] %v16558_v46  ;;  %v16562_v33 = vld [vmem:[#allocation3 + $0x15a] sm:$0xff] }
 0x848   : > { %17573 = vst [vmem:[#allocation15_spill] sm:$0xff] %v16562_v33 }
 0x84a   : > { %11888 = vmatmul.mubr.msk.f32.gmra.mrb[26].mxu1 %vm534_vm0, %v16546_v7  ;;  %v16566_v7 = vld [vmem:[#allocation3 + $0x16a] sm:$0xff] }
 0x84b   : > { %11890 = vmatprep.mubr.msk.f32.mxu1 %vm534_vm0, %v16550_v50  ;;  %17574 = vst [vmem:[#allocation16_spill] sm:$0xff] %v16566_v7  ;;  %v16570_v50 = vld [vmem:[#allocation3 + $0x172] sm:$0xff] }
 0x84c   : > { %17575 = vst [vmem:[#allocation44_spill] sm:$0xff] %v16570_v50 }
 0x84e   : > { %11891 = vmatmul.mubr.msk.f32.gmra.mrb[28].mxu1 %vm534_vm0, %v16554_v15  ;;  %v10238_v15 = vld [vmem:[%s17252_s11 + $0x90] sm:$0xff] }
 0x84f   : > { %11893 = vmatprep.mubr.msk.f32.mxu1 %vm534_vm0, %v16558_v46  ;;  %v10239_v46 = vld [vmem:[%s17252_s11 + $0x98] sm:$0xff] }
 0x852   : > { %11894 = vmatmul.mubr.msk.f32.gmra.mrb[30].mxu1 %vm534_vm0, %v16562_v33  ;;  %v12403_v33 = vpack.c.bf16 %v10239_v46, %v10238_v15 }
 0x853   : > { %11896 = vmatprep.mubr.msk.f32.mxu1 %vm534_vm0, %v16566_v7  ;;  %v10272_v7 = vld [vmem:[%s17252_s11 + $0xa0] sm:$0xff] }
 0x856   : > { %11897 = vmatmul.mubr.msk.f32.gmra.mrb[32].mxu1 %vm534_vm0, %v16570_v50  ;;  %v12407_v50 = vpack.c.bf16 %v10273_v29, %v10272_v7 }
 0x857   : > { %11907 = vmatprep.mubr.msk.f32.mxu1 %vm534_vm0, %v16105_v23 }
 0x85a   : > { %11908 = vmatmul.mubr.msk.f32.vlgmr.msra.gmra.mrb[34].mxu1 %vm534_vm0, %v16112_v21 }
 0x85b   : > { %12402 = vmatpush3.bf16.msra.mxu1 %v16451_v38  ;;  %11910 = vmatprep.mubr.msk.f32.mxu1 %vm534_vm0, %v16119_v57 }
 0x85c   : > { %12404 = vmatprep.subr.bf16.mxu1 %v12403_v33 }
 0x85e   : > { %11911 = vmatmul.mubr.msk.f32.gmra.mrb[36].mxu1 %vm534_vm0, %v16132_v34 }
 0x85f   : > { %11913 = vmatprep.mubr.msk.f32.mxu1 %vm534_vm0, %v16139_v10  ;;  %12406 = vmatpush3.bf16.msra.mxu1 %v12403_v33 }
 0x860   : > { %12408 = vmatprep.subr.bf16.mxu1 %v12407_v50 }
 0x862   : > { %11914 = vmatmul.mubr.msk.f32.gmra.mrb[38].mxu1 %vm534_vm0, %v16156_v12 }
 0x863   : > { %11916 = vmatprep.mubr.msk.f32.mxu1 %vm534_vm0, %v16164_v63 }
 0x866   : > { %11917 = vmatmul.mubr.msk.f32.gmra.mrb[40].mxu1 %vm534_vm0, %v16191_v25 }
 0x867   : > { %11919 = vmatprep.mubr.msk.f32.mxu1 %vm534_vm0, %v16197_v40 }
 0x86a   : > { %11920 = vmatmul.mubr.msk.f32.gmra.mrb[42].mxu1 %vm534_vm0, %v16217_v3 }
 0x86b   : > { %11922 = vmatprep.mubr.msk.f32.mxu1 %vm534_vm0, %v16160_v14 }
 0x86e   : > { %11923 = vmatmul.mubr.msk.f32.gmra.mrb[44].mxu1 %vm534_vm0, %v16170_v56 }
 0x86f   : > { %11925 = vmatprep.mubr.msk.f32.mxu1 %vm534_vm0, %v16184_v51 }
 0x872   : > { %11926 = vmatmul.mubr.msk.f32.gmra.mrb[14].mxu1 %vm534_vm0, %v16203_v30 }
 0x873   : > { %11928 = vmatprep.mubr.msk.f32.mxu1 %vm534_vm0, %v16211_v60 }
 0x876   : > { %11929 = vmatmul.mubr.msk.f32.gmra.mrb[16].mxu1 %vm534_vm0, %v16226_v31 }
 0x877   : > { %11931 = vmatprep.mubr.msk.f32.mxu1 %vm534_vm0, %v16232_v36 }
 0x87a   : > { %11932 = vmatmul.mubr.msk.f32.gmra.mrb[18].mxu1 %vm534_vm0, %v16241_v41 }
 0x87b   : > { %11934 = vmatprep.mubr.msk.f32.mxu1 %vm534_vm0, %v16246_v62  ;;  %v16625_v23 = vpop.f32.mrb[38].mxu0 }
 0x87c   : > { %17576 = vst [vmem:[#allocation45_spill] sm:$0xff] %v16625_v23  ;;  %v16627_v21 = vpop.f32.mrb[39].mxu0 }
 0x87d   : > { %17577 = vst [vmem:[#allocation46_spill] sm:$0xff] %v16627_v21  ;;  %v10309_v21 = vld [vmem:[%s17252_s11 + $0xc8] sm:$0xff] }
 0x87e   : > { %11935 = vmatmul.mubr.msk.f32.gmra.mrb[20].mxu1 %vm534_vm0, %v16250_v32 }
 0x87f   : > { %11937 = vmatprep.mubr.msk.f32.mxu1 %vm534_vm0, %v16254_v24  ;;  %v16633_v7 = vpop.f32.mrb[40].mxu0 }
 0x880   : > { %17578 = vst [vmem:[#allocation47_spill] sm:$0xff] %v16633_v7  ;;  %v16635_v38 = vpop.f32.mrb[41].mxu0  ;;  %v10308_v7 = vld [vmem:[%s17252_s11 + $0xc0] sm:$0xff] }
 0x881   : > { %17579 = vst [vmem:[#allocation48_spill] sm:$0xff] %v16635_v38  ;;  %v12415_v23 = vpack.c.bf16 %v10309_v21, %v10308_v7  ;;  %v17589_v21 = vld [vmem:[#allocation20_spill] sm:$0xff]  ;;  %v17590_v7 = vld [vmem:[#allocation21_spill] sm:$0xff] }
 0x882   : > { %11938 = vmatmul.mubr.msk.f32.gmra.mrb[22].mxu1 %vm534_vm0, %v16258_v54 }
 0x883   : > { %11940 = vmatprep.mubr.msk.f32.mxu1 %vm534_vm0, %v16262_v39  ;;  %v16641_v33 = vpop.f32.mrb[42].mxu0 }
 0x884   : > { %17580 = vst [vmem:[#allocation49_spill] sm:$0xff] %v16641_v33  ;;  %v16643_v29 = vpop.f32.mrb[43].mxu0 }
 0x885   : > { %17581 = vst [vmem:[#allocation50_spill] sm:$0xff] %v16643_v29 }
 0x886   : > { %11941 = vmatmul.mubr.msk.f32.gmra.mrb[24].mxu1 %vm534_vm0, %v16266_v47 }
 0x887   : > { %11943 = vmatprep.mubr.msk.f32.mxu1 %vm534_vm0, %v16270_v26  ;;  %v16649_v15 = vpop.f32.mrb[44].mxu0 }
 0x888   : > { %17582 = vst [vmem:[#allocation51_spill] sm:$0xff] %v16649_v15  ;;  %v16651_v46 = vpop.f32.mrb[45].mxu0  ;;  %v16671_v15 = vld [vmem:[#allocation3 + $0x188] sm:$0xff] }
 0x889   : > { %17583 = vst [vmem:[#allocation52_spill] sm:$0xff] %v16651_v46  ;;  %v16667_v46 = vld [vmem:[#allocation3 + $0x180] sm:$0xff] }
 0x88a   : > { %11944 = vmatmul.mubr.msk.f32.gmra.mrb[26].mxu1 %vm534_vm0, %v16274_v28 }
 0x88b   : > { %11946 = vmatprep.mubr.msk.f32.mxu1 %vm534_vm0, %v16278_v1  ;;  %v16657_v38 = vpop.f32.mrb[46].mxu0 }
 0x88c   : > { %17584 = vst [vmem:[#allocation53_spill] sm:$0xff] %v16657_v38  ;;  %v16659_v33 = vpop.f32.mrb[47].mxu0  ;;  %v10275_v38 = vld [vmem:[%s17252_s11 + $0xb8] sm:$0xff] }
 0x88d   : > { %17585 = vst [vmem:[#allocation54_spill] sm:$0xff] %v16659_v33  ;;  %v10274_v33 = vld [vmem:[%s17252_s11 + $0xb0] sm:$0xff] }
 0x88e   : > { %11947 = vmatmul.mubr.msk.f32.gmra.mrb[28].mxu1 %vm534_vm0, %v16282_v44  ;;  %v12411_v29 = vpack.c.bf16 %v10275_v38, %v10274_v33  ;;  %v17591_v38 = vld [vmem:[#allocation22_spill] sm:$0xff]  ;;  %v16747_v33 = vld [vmem:[#allocation3 + $0x181] sm:$0xff] }
 0x88f   : > { %11949 = vmatprep.mubr.msk.f32.mxu1 %vm534_vm0, %v16286_v48 }
 0x892   : > { %11950 = vmatmul.mubr.msk.f32.gmra.mrb[30].mxu1 %vm534_vm0, %v16290_v42 }
 0x893   : > { %11952 = vmatprep.mubr.msk.f32.mxu1 %vm534_vm0, %v16667_v46 }
 0x896   : > { %11953 = vmatmul.mubr.msk.f32.gmra.mrb[32].mxu1 %vm534_vm0, %v16671_v15 }
 0x897   : > { %11963 = vmatprep.mubr.msk.f32.mxu1 %vm534_vm0, %v16308_v49  ;;  %v17586_v49 = vld [vmem:[#allocation17_spill] sm:$0xff] }
 0x898   : > { %17592 = vst [vmem:[#allocation17_spill] sm:$0xff] %v16747_v33 }
 0x89a   : > { %11964 = vmatmul.mubr.msk.f32.vlgmr.msra.gmra.mrb[34].mxu1 %vm534_vm0, %v16315_v55  ;;  %v17587_v55 = vld [vmem:[#allocation18_spill] sm:$0xff] }
 0x89b   : > { %12410 = vmatpush3.bf16.msra.mxu1 %v12407_v50  ;;  %11966 = vmatprep.mubr.msk.f32.mxu1 %vm534_vm0, %v16319_v27  ;;  %v17588_v50 = vld [vmem:[#allocation19_spill] sm:$0xff] }
 0x89c   : > { %12412 = vmatprep.subr.bf16.mxu1 %v12411_v29 }
 0x89e   : > { %11967 = vmatmul.mubr.msk.f32.gmra.mrb[36].mxu1 %vm534_vm0, %v16324_v9 }
 0x89f   : > { %11969 = vmatprep.mubr.msk.f32.mxu1 %vm534_vm0, %v16328_v13  ;;  %12414 = vmatpush3.bf16.msra.mxu1 %v12411_v29  ;;  %v16751_v29 = vld [vmem:[#allocation3 + $0x189] sm:$0xff] }
 0x8a0   : > { %12416 = vmatprep.subr.bf16.mxu1 %v12415_v23  ;;  %17593 = vst [vmem:[#allocation55_spill] sm:$0xff] %v16751_v29 }
 0x8a2   : > { %11970 = vmatmul.mubr.msk.f32.gmra.mrb[38].mxu1 %vm534_vm0, %v16332_v17 }
 0x8a3   : > { %11972 = vmatprep.mubr.msk.f32.mxu1 %vm534_vm0, %v16336_v4 }
 0x8a6   : > { %11973 = vmatmul.mubr.msk.f32.gmra.mrb[40].mxu1 %vm534_vm0, %v16340_v35 }
 0x8a7   : > { %11975 = vmatprep.mubr.msk.f32.mxu1 %vm534_vm0, %v16344_v45 }
 0x8aa   : > { %11976 = vmatmul.mubr.msk.f32.gmra.mrb[42].mxu1 %vm534_vm0, %v16348_v43 }
 0x8ab   : > { %11978 = vmatprep.mubr.msk.f32.mxu1 %vm534_vm0, %v16352_v22 }
 0x8ae   : > { %11979 = vmatmul.mubr.msk.f32.gmra.mrb[44].mxu1 %vm534_vm0, %v16356_v37 }
 0x8af   : > { %11981 = vmatprep.mubr.msk.f32.mxu1 %vm534_vm0, %v16360_v18 }
 0x8b2   : > { %11982 = vmatmul.mubr.msk.f32.gmra.mrb[14].mxu1 %vm534_vm0, %v16364_v0 }
 0x8b3   : > { %11984 = vmatprep.mubr.msk.f32.mxu1 %vm534_vm0, %v16368_v6 }
 0x8b6   : > { %11985 = vmatmul.mubr.msk.f32.gmra.mrb[16].mxu1 %vm534_vm0, %v16372_v61 }
 0x8b7   : > { %11987 = vmatprep.mubr.msk.f32.mxu1 %vm534_vm0, %v16376_v59 }
 0x8ba   : > { %11988 = vmatmul.mubr.msk.f32.gmra.mrb[18].mxu1 %vm534_vm0, %v16380_v58 }
 0x8bb   : > { %11990 = vmatprep.mubr.msk.f32.mxu1 %vm534_vm0, %v16384_v19 }
 0x8be   : > { %11991 = vmatmul.mubr.msk.f32.gmra.mrb[20].mxu1 %vm534_vm0, %v16388_v16 }
 0x8bf   : > { %11993 = vmatprep.mubr.msk.f32.mxu1 %vm534_vm0, %v16392_v2 }
 0x8c2   : > { %11994 = vmatmul.mubr.msk.f32.gmra.mrb[22].mxu1 %vm534_vm0, %v16396_v11 }
 0x8c3   : > { %11996 = vmatprep.mubr.msk.f32.mxu1 %vm534_vm0, %v16400_v8 }
 0x8c6   : > { %11997 = vmatmul.mubr.msk.f32.gmra.mrb[24].mxu1 %vm534_vm0, %v16404_v52 }
 0x8c7   : > { %11999 = vmatprep.mubr.msk.f32.mxu1 %vm534_vm0, %v17586_v49 }
 0x8ca   : > { %12000 = vmatmul.mubr.msk.f32.gmra.mrb[26].mxu1 %vm534_vm0, %v17587_v55  ;;  %v17594_v55 = vld [vmem:[#allocation25_spill] sm:$0xff] }
 0x8cb   : > { %12002 = vmatprep.mubr.msk.f32.mxu1 %vm534_vm0, %v17588_v50  ;;  %v10310_v50 = vld [vmem:[%s17252_s11 + $0xd0] sm:$0xff] }
 0x8ce   : > { %12003 = vmatmul.mubr.msk.f32.gmra.mrb[28].mxu1 %vm534_vm0, %v17589_v21  ;;  %v10311_v21 = vld [vmem:[%s17252_s11 + $0xd8] sm:$0xff] }
 0x8cf   : > { %12005 = vmatprep.mubr.msk.f32.mxu1 %vm534_vm0, %v17590_v7  ;;  %v10345_v7 = vld [vmem:[%s17252_s11 + $0xe8] sm:$0xff] }
 0x8d2   : > { %12006 = vmatmul.mubr.msk.f32.gmra.mrb[30].mxu1 %vm534_vm0, %v17591_v38  ;;  %v12419_v38 = vpack.c.bf16 %v10311_v21, %v10310_v50  ;;  %v17596_v50 = vld [vmem:[#allocation27_spill] sm:$0xff]  ;;  %v17597_v21 = vld [vmem:[#allocation28_spill] sm:$0xff] }
 0x8d3   : > { %12008 = vmatprep.mubr.msk.f32.mxu1 %vm534_vm0, %v16747_v33  ;;  %v10344_v33 = vld [vmem:[%s17252_s11 + $0xe0] sm:$0xff] }
 0x8d6   : > { %12009 = vmatmul.mubr.msk.f32.gmra.mrb[32].mxu1 %vm534_vm0, %v16751_v29  ;;  %v12423_v29 = vpack.c.bf16 %v10345_v7, %v10344_v33  ;;  %v17600_v7 = vld [vmem:[#allocation31_spill] sm:$0xff]  ;;  %v17601_v33 = vld [vmem:[#allocation32_spill] sm:$0xff] }
 0x8d7   : > { %12019 = vmatprep.mubr.msk.f32.mxu1 %vm534_vm0, %v16446_v5  ;;  %v17595_v5 = vld [vmem:[#allocation26_spill] sm:$0xff] }
 0x8da   : > { %12020 = vmatmul.mubr.msk.f32.vlgmr.msra.gmra.mrb[34].mxu1 %vm534_vm0, %v16453_v53  ;;  %v17598_v53 = vld [vmem:[#allocation29_spill] sm:$0xff] }
 0x8db   : > { %12418 = vmatpush3.bf16.msra.mxu1 %v12415_v23  ;;  %12022 = vmatprep.mubr.msk.f32.mxu1 %vm534_vm0, %v16457_v20  ;;  %v17599_v23 = vld [vmem:[#allocation30_spill] sm:$0xff] }
 0x8dc   : > { %12420 = vmatprep.subr.bf16.mxu1 %v12419_v38 }
 0x8de   : > { %12023 = vmatmul.mubr.msk.f32.gmra.mrb[36].mxu1 %vm534_vm0, %v17594_v55 }
 0x8df   : > { %12025 = vmatprep.mubr.msk.f32.mxu1 %vm534_vm0, %v17595_v5  ;;  %12422 = vmatpush3.bf16.msra.mxu1 %v12419_v38  ;;  %v17602_v38 = vld [vmem:[#allocation33_spill] sm:$0xff]  ;;  %v17603_v5 = vld [vmem:[#allocation34_spill] sm:$0xff] }
 0x8e0   : > { %12424 = vmatprep.subr.bf16.mxu1 %v12423_v29 }
 0x8e2   : > { %12026 = vmatmul.mubr.msk.f32.gmra.mrb[38].mxu1 %vm534_vm0, %v17596_v50  ;;  %v17604_v50 = vld [vmem:[#allocation35_spill] sm:$0xff] }
 0x8e3   : > { %12028 = vmatprep.mubr.msk.f32.mxu1 %vm534_vm0, %v17597_v21  ;;  %v17605_v21 = vld [vmem:[#allocation36_spill] sm:$0xff] }
 0x8e6   : > { %12029 = vmatmul.mubr.msk.f32.gmra.mrb[40].mxu1 %vm534_vm0, %v17598_v53  ;;  %v17606_v53 = vld [vmem:[#allocation37_spill] sm:$0xff] }
 0x8e7   : > { %12031 = vmatprep.mubr.msk.f32.mxu1 %vm534_vm0, %v17599_v23  ;;  %v17607_v23 = vld [vmem:[#allocation38_spill] sm:$0xff] }
 0x8ea   : > { %12032 = vmatmul.mubr.msk.f32.gmra.mrb[42].mxu1 %vm534_vm0, %v17600_v7  ;;  %v17608_v7 = vld [vmem:[#allocation39_spill] sm:$0xff] }
 0x8eb   : > { %12034 = vmatprep.mubr.msk.f32.mxu1 %vm534_vm0, %v17601_v33  ;;  %v17609_v33 = vld [vmem:[#allocation40_spill] sm:$0xff] }
 0x8ee   : > { %12035 = vmatmul.mubr.msk.f32.gmra.mrb[44].mxu1 %vm534_vm0, %v17602_v38  ;;  %v17610_v38 = vld [vmem:[#allocation41_spill] sm:$0xff] }
 0x8ef   : > { %12037 = vmatprep.mubr.msk.f32.mxu1 %vm534_vm0, %v17603_v5  ;;  %v17611_v5 = vld [vmem:[#allocation42_spill] sm:$0xff] }
 0x8f2   : > { %12038 = vmatmul.mubr.msk.f32.gmra.mrb[14].mxu1 %vm534_vm0, %v17604_v50  ;;  %v17612_v50 = vld [vmem:[#allocation43_spill] sm:$0xff] }
 0x8f3   : > { %12040 = vmatprep.mubr.msk.f32.mxu1 %vm534_vm0, %v17605_v21  ;;  %v17613_v21 = vld [vmem:[#allocation11_spill] sm:$0xff] }
 0x8f6   : > { %12041 = vmatmul.mubr.msk.f32.gmra.mrb[16].mxu1 %vm534_vm0, %v17606_v53  ;;  %v17614_v53 = vld [vmem:[#allocation12_spill] sm:$0xff] }
 0x8f7   : > { %12043 = vmatprep.mubr.msk.f32.mxu1 %vm534_vm0, %v17607_v23  ;;  %v17615_v23 = vld [vmem:[#allocation10_spill] sm:$0xff] }
 0x8fa   : > { %12044 = vmatmul.mubr.msk.f32.gmra.mrb[18].mxu1 %vm534_vm0, %v17608_v7  ;;  %v17616_v7 = vld [vmem:[#allocation13_spill] sm:$0xff] }
 0x8fb   : > { %12046 = vmatprep.mubr.msk.f32.mxu1 %vm534_vm0, %v17609_v33  ;;  %v17617_v33 = vld [vmem:[#allocation14_spill] sm:$0xff] }
 0x8fe   : > { %12047 = vmatmul.mubr.msk.f32.gmra.mrb[20].mxu1 %vm534_vm0, %v17610_v38  ;;  %v17618_v38 = vld [vmem:[#allocation15_spill] sm:$0xff] }
 0x8ff   : > { %12049 = vmatprep.mubr.msk.f32.mxu1 %vm534_vm0, %v17611_v5  ;;  %v17619_v5 = vld [vmem:[#allocation16_spill] sm:$0xff] }
 0x902   : > { %12050 = vmatmul.mubr.msk.f32.gmra.mrb[22].mxu1 %vm534_vm0, %v17612_v50  ;;  %v17620_v50 = vld [vmem:[#allocation44_spill] sm:$0xff] }
 0x903   : > { %12052 = vmatprep.mubr.msk.f32.mxu1 %vm534_vm0, %v17613_v21  ;;  %v16827_v21 = vld [vmem:[#allocation3 + $0x182] sm:$0xff] }
 0x904   : > { %17621 = vst [vmem:[#allocation25_spill] sm:$0xff] %v16827_v21 }
 0x906   : > { %12053 = vmatmul.mubr.msk.f32.gmra.mrb[24].mxu1 %vm534_vm0, %v17614_v53 }
 0x907   : > { %12055 = vmatprep.mubr.msk.f32.mxu1 %vm534_vm0, %v17615_v23  ;;  %v16831_v23 = vld [vmem:[#allocation3 + $0x18a] sm:$0xff] }
 0x908   : > { %17622 = vst [vmem:[#allocation12_spill] sm:$0xff] %v16831_v23 }
 0x90a   : > { %12056 = vmatmul.mubr.msk.f32.gmra.mrb[26].mxu1 %vm534_vm0, %v17616_v7 }
 0x90b   : > { %12058 = vmatprep.mubr.msk.f32.mxu1 %vm534_vm0, %v17617_v33  ;;  %v10346_v33 = vld [vmem:[%s17252_s11 + $0xf0] sm:$0xff] }
 0x90e   : > { %12059 = vmatmul.mubr.msk.f32.gmra.mrb[28].mxu1 %vm534_vm0, %v17618_v38  ;;  %v10347_v38 = vld [vmem:[%s17252_s11 + $0xf8] sm:$0xff] }
 0x90f   : > { %12061 = vmatprep.mubr.msk.f32.mxu1 %vm534_vm0, %v17619_v5  ;;  %v10381_v5 = vld [vmem:[%s17252_s11 + $0x108] sm:$0xff] }
 0x912   : > { %12062 = vmatmul.mubr.msk.f32.gmra.mrb[30].mxu1 %vm534_vm0, %v17620_v50  ;;  %v12427_v50 = vpack.c.bf16 %v10347_v38, %v10346_v33  ;;  %v17660_v38 = vld [vmem:[#allocation47_spill] sm:$0xff] }
 0x913   : > { %12064 = vmatprep.mubr.msk.f32.mxu1 %vm534_vm0, %v16827_v21  ;;  %v10380_v21 = vld [vmem:[%s17252_s11 + $0x100] sm:$0xff] }
 0x916   : > { %12065 = vmatmul.mubr.msk.f32.gmra.mrb[32].mxu1 %vm534_vm0, %v16831_v23  ;;  %v12431_v23 = vpack.c.bf16 %v10381_v5, %v10380_v21 }
 0x917   : > { %12075 = vmatprep.mubr.msk.f32.mxu1 %vm534_vm0, %v16119_v57  ;;  %v8465_v57 = vld [vmem:[#allocation3 + $0x198] sm:$0xff] }
 0x91a   : > { %12076 = vmatmul.mubr.msk.f32.vlgmr.msra.gmra.mrb[34].mxu1 %vm534_vm0, %v16132_v34  ;;  %v8466_v34 = vld [vmem:[#allocation3 + $0x1a0] sm:$0xff] }
 0x91b   : > { %12426 = vmatpush3.bf16.msra.mxu1 %v12423_v29  ;;  %12078 = vmatprep.mubr.msk.f32.mxu1 %vm534_vm0, %v16139_v10  ;;  %v10382_v10 = vld [vmem:[%s17252_s11 + $0x110] sm:$0xff]  ;;  %v17659_v29 = vld [vmem:[#allocation46_spill] sm:$0xff] }
 0x91c   : > { %12428 = vmatprep.subr.bf16.mxu1 %v12427_v50 }
 0x91e   : > { %12079 = vmatmul.mubr.msk.f32.gmra.mrb[36].mxu1 %vm534_vm0, %v16156_v12  ;;  %v10383_v12 = vld [vmem:[%s17252_s11 + $0x118] sm:$0xff] }
 0x91f   : > { %12081 = vmatprep.mubr.msk.f32.mxu1 %vm534_vm0, %v16164_v63  ;;  %12430 = vmatpush3.bf16.msra.mxu1 %v12427_v50  ;;  %v17623_v63 = vld [vmem:[#allocation18_spill] sm:$0xff] }
 0x920   : > { %12432 = vmatprep.subr.bf16.mxu1 %v12431_v23  ;;  %v13328_v50 = vld [vmem:[%s13746_s29] sm:$0xff] }
 0x922   : > { %12082 = vmatmul.mubr.msk.f32.gmra.mrb[38].mxu1 %vm534_vm0, %v16191_v25  ;;  %v17626_v25 = vld [vmem:[#allocation21_spill] sm:$0xff] }
 0x923   : > { %12084 = vmatprep.mubr.msk.f32.mxu1 %vm534_vm0, %v16197_v40  ;;  %v17627_v40 = vld [vmem:[#allocation22_spill] sm:$0xff] }
 0x926   : > { %12085 = vmatmul.mubr.msk.f32.gmra.mrb[40].mxu1 %vm534_vm0, %v16217_v3  ;;  %v17629_v3 = vld [vmem:[#allocation55_spill] sm:$0xff] }
 0x927   : > { %12087 = vmatprep.mubr.msk.f32.mxu1 %vm534_vm0, %v16160_v14  ;;  %v12435_v14 = vpack.c.bf16 %v10383_v12, %v10382_v10  ;;  %v17661_v12 = vld [vmem:[#allocation48_spill] sm:$0xff] }
 0x92a   : > { %12088 = vmatmul.mubr.msk.f32.gmra.mrb[42].mxu1 %vm534_vm0, %v16170_v56  ;;  %v17624_v56 = vld [vmem:[#allocation19_spill] sm:$0xff] }
 0x92b   : > { %12090 = vmatprep.mubr.msk.f32.mxu1 %vm534_vm0, %v16184_v51  ;;  %v17625_v51 = vld [vmem:[#allocation20_spill] sm:$0xff] }
 0x92e   : > { %12091 = vmatmul.mubr.msk.f32.gmra.mrb[44].mxu1 %vm534_vm0, %v16203_v30  ;;  %v17628_v30 = vld [vmem:[#allocation17_spill] sm:$0xff] }
 0x92f   : > { %12093 = vmatprep.mubr.msk.f32.mxu1 %vm534_vm0, %v16211_v60  ;;  %v8855_v60 = vld [vmem:[#allocation3 + $0x199] sm:$0xff] }
 0x932   : > { %12094 = vmatmul.mubr.msk.f32.gmra.mrb[14].mxu1 %vm534_vm0, %v16226_v31  ;;  %v8856_v31 = vld [vmem:[#allocation3 + $0x1a1] sm:$0xff] }
 0x933   : > { %12096 = vmatprep.mubr.msk.f32.mxu1 %vm534_vm0, %v16232_v36  ;;  %v17630_v36 = vld [vmem:[#allocation26_spill] sm:$0xff] }
 0x936   : > { %12097 = vmatmul.mubr.msk.f32.gmra.mrb[16].mxu1 %vm534_vm0, %v16241_v41  ;;  %v17631_v41 = vld [vmem:[#allocation27_spill] sm:$0xff] }
 0x937   : > { %12099 = vmatprep.mubr.msk.f32.mxu1 %vm534_vm0, %v16246_v62  ;;  %v17632_v62 = vld [vmem:[#allocation28_spill] sm:$0xff] }
 0x93a   : > { %12100 = vmatmul.mubr.msk.f32.gmra.mrb[18].mxu1 %vm534_vm0, %v16250_v32  ;;  %v17633_v32 = vld [vmem:[#allocation29_spill] sm:$0xff] }
 0x93b   : > { %12102 = vmatprep.mubr.msk.f32.mxu1 %vm534_vm0, %v16254_v24  ;;  %v17634_v24 = vld [vmem:[#allocation30_spill] sm:$0xff] }
 0x93e   : > { %12103 = vmatmul.mubr.msk.f32.gmra.mrb[20].mxu1 %vm534_vm0, %v16258_v54  ;;  %v17635_v54 = vld [vmem:[#allocation31_spill] sm:$0xff] }
 0x93f   : > { %12105 = vmatprep.mubr.msk.f32.mxu1 %vm534_vm0, %v16262_v39  ;;  %v17636_v39 = vld [vmem:[#allocation32_spill] sm:$0xff] }
 0x942   : > { %12106 = vmatmul.mubr.msk.f32.gmra.mrb[22].mxu1 %vm534_vm0, %v16266_v47  ;;  %v17637_v47 = vld [vmem:[#allocation33_spill] sm:$0xff] }
 0x943   : > { %12108 = vmatprep.mubr.msk.f32.mxu1 %vm534_vm0, %v16270_v26  ;;  %v17638_v26 = vld [vmem:[#allocation34_spill] sm:$0xff] }
 0x946   : > { %12109 = vmatmul.mubr.msk.f32.gmra.mrb[24].mxu1 %vm534_vm0, %v16274_v28  ;;  %v17639_v28 = vld [vmem:[#allocation35_spill] sm:$0xff] }
 0x947   : > { %12111 = vmatprep.mubr.msk.f32.mxu1 %vm534_vm0, %v16278_v1  ;;  %v17640_v1 = vld [vmem:[#allocation36_spill] sm:$0xff] }
 0x94a   : > { %12112 = vmatmul.mubr.msk.f32.gmra.mrb[26].mxu1 %vm534_vm0, %v16282_v44  ;;  %v17641_v44 = vld [vmem:[#allocation37_spill] sm:$0xff] }
 0x94b   : > { %12114 = vmatprep.mubr.msk.f32.mxu1 %vm534_vm0, %v16286_v48  ;;  %v17642_v48 = vld [vmem:[#allocation38_spill] sm:$0xff] }
 0x94e   : > { %12115 = vmatmul.mubr.msk.f32.gmra.mrb[28].mxu1 %vm534_vm0, %v16290_v42  ;;  %v17643_v42 = vld [vmem:[#allocation39_spill] sm:$0xff] }
 0x94f   : > { %12117 = vmatprep.mubr.msk.f32.mxu1 %vm534_vm0, %v16667_v46 }
 0x952   : > { %12118 = vmatmul.mubr.msk.f32.gmra.mrb[30].mxu1 %vm534_vm0, %v16671_v15  ;;  %v17658_v15 = vld [vmem:[#allocation45_spill] sm:$0xff] }
 0x953   : > { %12120 = vmatprep.mubr.msk.f32.mxu1 %vm534_vm0, %v8465_v57 }
 0x956   : > { %12121 = vmatmul.mubr.msk.f32.gmra.mrb[32].mxu1 %vm534_vm0, %v8466_v34  ;;  %v13329_v34 = vld [vmem:[%s13746_s29 + $0x18] sm:$0xff] }
 0x957   : > { %12131 = vmatprep.mubr.msk.f32.mxu1 %vm534_vm0, %v16319_v27  ;;  %v17644_v27 = vld [vmem:[#allocation40_spill] sm:$0xff] }
 0x95a   : > { %12132 = vmatmul.mubr.msk.f32.vlgmr.msra.gmra.mrb[34].mxu1 %vm534_vm0, %v16324_v9  ;;  %v17645_v9 = vld [vmem:[#allocation41_spill] sm:$0xff] }
 0x95b   : > { %12434 = vmatpush3.bf16.msra.mxu1 %v12431_v23  ;;  %12134 = vmatprep.mubr.msk.f32.mxu1 %vm534_vm0, %v16328_v13  ;;  %v17646_v13 = vld [vmem:[#allocation42_spill] sm:$0xff] }
 0x95c   : > { %12436 = vmatprep.subr.bf16.mxu1 %v12435_v14 }
 0x95e   : > { %12135 = vmatmul.mubr.msk.f32.gmra.mrb[36].mxu1 %vm534_vm0, %v16332_v17  ;;  %v17647_v17 = vld [vmem:[#allocation43_spill] sm:$0xff] }
 0x95f   : > { %12137 = vmatprep.mubr.msk.f32.mxu1 %vm534_vm0, %v16336_v4  ;;  %12438 = vmatpush3.bf16.msra.mxu1 %v12435_v14  ;;  %v17648_v4 = vld [vmem:[#allocation11_spill] sm:$0xff] }
 0x962   : > { %12138 = vmatmul.mubr.msk.f32.gmra.mrb[38].mxu1 %vm534_vm0, %v16340_v35  ;;  %v17649_v35 = vld [vmem:[#allocation10_spill] sm:$0xff] }
 0x963   : > { %12140 = vmatprep.mubr.msk.f32.mxu1 %vm534_vm0, %v16344_v45  ;;  %v17650_v45 = vld [vmem:[#allocation14_spill] sm:$0xff] }
 0x966   : > { %12141 = vmatmul.mubr.msk.f32.gmra.mrb[40].mxu1 %vm534_vm0, %v16348_v43  ;;  %v17651_v43 = vld [vmem:[#allocation15_spill] sm:$0xff] }
 0x967   : > { %12143 = vmatprep.mubr.msk.f32.mxu1 %vm534_vm0, %v16352_v22  ;;  %v17652_v22 = vld [vmem:[#allocation16_spill] sm:$0xff] }
 0x96a   : > { %12144 = vmatmul.mubr.msk.f32.gmra.mrb[42].mxu1 %vm534_vm0, %v16356_v37  ;;  %v17653_v37 = vld [vmem:[#allocation44_spill] sm:$0xff] }
 0x96b   : > { %12146 = vmatprep.mubr.msk.f32.mxu1 %vm534_vm0, %v16360_v18  ;;  %v17654_v18 = vld [vmem:[#allocation25_spill] sm:$0xff] }
 0x96e   : > { %12147 = vmatmul.mubr.msk.f32.gmra.mrb[44].mxu1 %vm534_vm0, %v16364_v0  ;;  %v9245_v0 = vld [vmem:[#allocation3 + $0x19a] sm:$0xff] }
 0x96f   : > { %12149 = vmatprep.mubr.msk.f32.mxu1 %vm534_vm0, %v16368_v6  ;;  %v17655_v6 = vld [vmem:[#allocation12_spill] sm:$0xff] }
 0x972   : > { %12150 = vmatmul.mubr.msk.f32.gmra.mrb[14].mxu1 %vm534_vm0, %v16372_v61  ;;  %v9246_v61 = vld [vmem:[#allocation3 + $0x1a2] sm:$0xff] }
 0x973   : > { %12152 = vmatprep.mubr.msk.f32.mxu1 %vm534_vm0, %v16376_v59  ;;  %v17042_v59 = vld [vmem:[%s17253_s12] ss:$0 sm:$0xff] }
 0x974   : > { %v6455_v46 = vadd.f32 %v17658_v15, %v17042_v59  ;;  %v6454_v5 = vadd.f32 %v17042_v59, %v17659_v29  ;;  %v6457_v57 = vadd.f32 %v17660_v38, %v17042_v59  ;;  %v6456_v14 = vadd.f32 %v17042_v59, %v17661_v12 }
 0x976   : > { %12153 = vmatmul.mubr.msk.f32.gmra.mrb[16].mxu1 %vm534_vm0, %v16380_v58  ;;  %v17656_v58 = vld [vmem:[#allocation23_spill] sm:$0xff] }
 0x977   : > { %12155 = vmatprep.mubr.msk.f32.mxu1 %vm534_vm0, %v16384_v19  ;;  %v6453_v19 = vadd.f32 %v17656_v58, %v17042_v59 }
 0x97a   : > { %12156 = vmatmul.mubr.msk.f32.gmra.mrb[18].mxu1 %vm534_vm0, %v16388_v16  ;;  %v17657_v16 = vld [vmem:[#allocation24_spill] sm:$0xff] }
 0x97b   : > { %12158 = vmatprep.mubr.msk.f32.mxu1 %vm534_vm0, %v16392_v2  ;;  %v6452_v2 = vadd.f32 %v17042_v59, %v17657_v16 }
 0x97e   : > { %12159 = vmatmul.mubr.msk.f32.gmra.mrb[20].mxu1 %vm534_vm0, %v16396_v11 }
 0x97f   : > { %12161 = vmatprep.mubr.msk.f32.mxu1 %vm534_vm0, %v16400_v8 }
 0x982   : > { %12162 = vmatmul.mubr.msk.f32.gmra.mrb[22].mxu1 %vm534_vm0, %v16404_v52 }
 0x983   : > { %12164 = vmatprep.mubr.msk.f32.mxu1 %vm534_vm0, %v17586_v49  ;;  %v13327_v49 = vld [vmem:[%s13746_s29 + $0x8] sm:$0xff] }
 0x986   : > { %12165 = vmatmul.mubr.msk.f32.gmra.mrb[24].mxu1 %vm534_vm0, %v17623_v63  ;;  %v13330_v63 = vld [vmem:[%s13746_s29 + $0x10] sm:$0xff] }
 0x987   : > { %12167 = vmatprep.mubr.msk.f32.mxu1 %vm534_vm0, %v17624_v56 }
 0x98a   : > { %12168 = vmatmul.mubr.msk.f32.gmra.mrb[26].mxu1 %vm534_vm0, %v17625_v51 }
 0x98b   : > { %12170 = vmatprep.mubr.msk.f32.mxu1 %vm534_vm0, %v17626_v25 }
 0x98e   : > { %12171 = vmatmul.mubr.msk.f32.gmra.mrb[28].mxu1 %vm534_vm0, %v17627_v40 }
 0x98f   : > { %12173 = vmatprep.mubr.msk.f32.mxu1 %vm534_vm0, %v17628_v30 }
 0x992   : > { %12174 = vmatmul.mubr.msk.f32.gmra.mrb[30].mxu1 %vm534_vm0, %v17629_v3 }
 0x993   : > { %12176 = vmatprep.mubr.msk.f32.mxu1 %vm534_vm0, %v8855_v60  ;;  %v17662_v60 = vld [vmem:[#allocation49_spill] sm:$0xff] }
 0x994   : > { %v6459_v3 = vadd.f32 %v17662_v60, %v17042_v59 }
 0x996   : > { %12177 = vmatmul.mubr.msk.f32.gmra.mrb[32].mxu1 %vm534_vm0, %v8856_v31  ;;  %v13331_v31 = vld [vmem:[%s13746_s29 + $0x28] sm:$0xff] }
 0x997   : > { %12187 = vmatprep.mubr.msk.f32.mxu1 %vm534_vm0, %v16457_v20 }
 0x99a   : > { %12188 = vmatmul.mubr.msk.f32.vlgmr.msra.gmra.mrb[34].mxu1 %vm534_vm0, %v17594_v55 }
 0x99b   : > { %12190 = vmatprep.mubr.msk.f32.mxu1 %vm534_vm0, %v17630_v36 }
 0x99e   : > { %12191 = vmatmul.mubr.msk.f32.gmra.mrb[36].mxu1 %vm534_vm0, %v17631_v41  ;;  %v17663_v41 = vld [vmem:[#allocation50_spill] sm:$0xff] }
 0x99f   : > { %12193 = vmatprep.mubr.msk.f32.mxu1 %vm534_vm0, %v17632_v62  ;;  %v6458_v62 = vadd.f32 %v17042_v59, %v17663_v41 }
 0x9a2   : > { %12194 = vmatmul.mubr.msk.f32.gmra.mrb[38].mxu1 %vm534_vm0, %v17633_v32  ;;  %v13332_v32 = vld [vmem:[%s13746_s29 + $0x20] sm:$0xff] }
 0x9a3   : > { %12196 = vmatprep.mubr.msk.f32.mxu1 %vm534_vm0, %v17634_v24 }
 0x9a6   : > { %12197 = vmatmul.mubr.msk.f32.gmra.mrb[40].mxu1 %vm534_vm0, %v17635_v54 }
 0x9a7   : > { %12199 = vmatprep.mubr.msk.f32.mxu1 %vm534_vm0, %v17636_v39 }
 0x9aa   : > { %12200 = vmatmul.mubr.msk.f32.gmra.mrb[42].mxu1 %vm534_vm0, %v17637_v47 }
 0x9ab   : > { %12202 = vmatprep.mubr.msk.f32.mxu1 %vm534_vm0, %v17638_v26 }
 0x9ae   : > { %12203 = vmatmul.mubr.msk.f32.gmra.mrb[44].mxu1 %vm534_vm0, %v17639_v28  ;;  %v17664_v28 = vld [vmem:[#allocation51_spill] sm:$0xff] }
 0x9af   : > { %12205 = vmatprep.mubr.msk.f32.mxu1 %vm534_vm0, %v17640_v1  ;;  %v6461_v1 = vadd.f32 %v17664_v28, %v17042_v59 }
 0x9b2   : > { %12206 = vmatmul.mubr.msk.f32.gmra.mrb[14].mxu1 %vm534_vm0, %v17641_v44  ;;  %v13333_v44 = vld [vmem:[%s13746_s29 + $0x38] sm:$0xff] }
 0x9b3   : > { %12208 = vmatprep.mubr.msk.f32.mxu1 %vm534_vm0, %v17642_v48 }
 0x9b6   : > { %12209 = vmatmul.mubr.msk.f32.gmra.mrb[16].mxu1 %vm534_vm0, %v17643_v42  ;;  %v17665_v42 = vld [vmem:[#allocation52_spill] sm:$0xff] }
 0x9b7   : > { %12211 = vmatprep.mubr.msk.f32.mxu1 %vm534_vm0, %v17644_v27  ;;  %v6460_v27 = vadd.f32 %v17042_v59, %v17665_v42 }
 0x9ba   : > { %12212 = vmatmul.mubr.msk.f32.gmra.mrb[18].mxu1 %vm534_vm0, %v17645_v9  ;;  %v13334_v9 = vld [vmem:[%s13746_s29 + $0x30] sm:$0xff] }
 0x9bb   : > { %12214 = vmatprep.mubr.msk.f32.mxu1 %vm534_vm0, %v17646_v13 }
 0x9be   : > { %12215 = vmatmul.mubr.msk.f32.gmra.mrb[20].mxu1 %vm534_vm0, %v17647_v17 }
 0x9bf   : > { %12217 = vmatprep.mubr.msk.f32.mxu1 %vm534_vm0, %v17648_v4 }
 0x9c2   : > { %12218 = vmatmul.mubr.msk.f32.gmra.mrb[22].mxu1 %vm534_vm0, %v17614_v53 }
 0x9c3   : > { %12220 = vmatprep.mubr.msk.f32.mxu1 %vm534_vm0, %v17649_v35 }
 0x9c6   : > { %12221 = vmatmul.mubr.msk.f32.gmra.mrb[24].mxu1 %vm534_vm0, %v17616_v7 }
 0x9c7   : > { %12223 = vmatprep.mubr.msk.f32.mxu1 %vm534_vm0, %v17650_v45 }
 0x9ca   : > { %12224 = vmatmul.mubr.msk.f32.gmra.mrb[26].mxu1 %vm534_vm0, %v17651_v43  ;;  %v17666_v43 = vld [vmem:[#allocation53_spill] sm:$0xff] }
 0x9cb   : > { %12226 = vmatprep.mubr.msk.f32.mxu1 %vm534_vm0, %v17652_v22  ;;  %v6463_v22 = vadd.f32 %v17666_v43, %v17042_v59 }
 0x9ce   : > { %12227 = vmatmul.mubr.msk.f32.gmra.mrb[28].mxu1 %vm534_vm0, %v17653_v37  ;;  %v13335_v37 = vld [vmem:[%s13746_s29 + $0x48] sm:$0xff] }
 0x9cf   : > { %12229 = vmatprep.mubr.msk.f32.mxu1 %vm534_vm0, %v17654_v18 }
 0x9d2   : > { %12230 = vmatmul.mubr.msk.f32.gmra.mrb[30].mxu1 %vm534_vm0, %v17655_v6 }
 0x9d3   : > { %12232 = vmatprep.mubr.msk.f32.mxu1 %vm534_vm0, %v9245_v0  ;;  %v17667_v0 = vld [vmem:[#allocation54_spill] sm:$0xff] }
 0x9d4   : > { %v6462_v6 = vadd.f32 %v17042_v59, %v17667_v0 }
 0x9d6   : > { %12233 = vmatmul.mubr.msk.f32.gmra.mrb[32].mxu1 %vm534_vm0, %v9246_v61  ;;  %v13336_v61 = vld [vmem:[%s13746_s29 + $0x40] sm:$0xff] }
 0xa6d   : > { %v12189_v11 = vpop.f32.mrb[34].mxu1 }
 0xa6e   : > { %v12476_v8 = vadd.f32 %v12189_v11, %v6453_v19  ;;  %v9414_v52 = vpop.f32.mrb[35].mxu1 }
 0xa6f   : > { %v12478_v20 = vadd.f32 %v9414_v52, %v6452_v2 }
 0xa70   : > { %v9606_v55 = vadd.f32 %v13327_v49, %v12476_v8  ;;  %v13337_v8 = vld [vmem:[%s13746_s29 + $0x58] sm:$0xff] }
 0xa71   : > { %v9605_v21 = vadd.f32 %v13328_v50, %v12478_v20  ;;  %v12192_v53 = vpop.f32.mrb[36].mxu1  ;;  %v13338_v20 = vld [vmem:[%s13746_s29 + $0x50] sm:$0xff] }
 0xa72   : > { %9638 = vst.msk [vmem:[%s17057_s4 + $0x8] sm:$0xff] %vm534_vm0, %v9606_v55  ;;  %v12480_v23 = vadd.f32 %v12192_v53, %v6455_v46  ;;  %v9424_v7 = vpop.f32.mrb[37].mxu1 }
 0xa73   : > { %9637 = vst.msk [vmem:[%s17057_s4] sm:$0xff] %vm534_vm0, %v9605_v21  ;;  %v12482_v33 = vadd.f32 %v9424_v7, %v6454_v5  ;;  %v13339_v5 = vld [vmem:[%s13746_s29 + $0x68] sm:$0xff]  ;;  %v13340_v21 = vld [vmem:[%s13746_s29 + $0x60] sm:$0xff] }
 0xa74   : > { %v9608_v10 = vadd.f32 %v13329_v34, %v12480_v23 }
 0xa75   : > { %v9607_v56 = vadd.f32 %v13330_v63, %v12482_v33  ;;  %v12195_v51 = vpop.f32.mrb[38].mxu1 }
 0xa76   : > { %9640 = vst.msk [vmem:[%s17057_s4 + $0x18] sm:$0xff] %vm534_vm0, %v9608_v10  ;;  %v12484_v25 = vadd.f32 %v12195_v51, %v6457_v57  ;;  %v9434_v40 = vpop.f32.mrb[39].mxu1  ;;  %v13341_v57 = vld [vmem:[%s13746_s29 + $0x78] sm:$0xff]  ;;  %v13342_v10 = vld [vmem:[%s13746_s29 + $0x70] sm:$0xff] }
 0xa77   : > { %9639 = vst.msk [vmem:[%s17057_s4 + $0x10] sm:$0xff] %vm534_vm0, %v9607_v56  ;;  %v12486_v30 = vadd.f32 %v9434_v40, %v6456_v14 }
 0xa78   : > { %v9610_v36 = vadd.f32 %v13331_v31, %v12484_v25  ;;  %v13343_v25 = vld [vmem:[%s13746_s29 + $0x88] sm:$0xff] }
 0xa79   : > { %v9609_v24 = vadd.f32 %v13332_v32, %v12486_v30  ;;  %v12198_v54 = vpop.f32.mrb[40].mxu1  ;;  %v13344_v30 = vld [vmem:[%s13746_s29 + $0x80] sm:$0xff] }
 0xa7a   : > { %9642 = vst.msk [vmem:[%s17057_s4 + $0x28] sm:$0xff] %vm534_vm0, %v9610_v36  ;;  %v12488_v39 = vadd.f32 %v12198_v54, %v6459_v3  ;;  %v9444_v47 = vpop.f32.mrb[41].mxu1 }
 0xa7b   : > { %9641 = vst.msk [vmem:[%s17057_s4 + $0x20] sm:$0xff] %vm534_vm0, %v9609_v24  ;;  %v12490_v26 = vadd.f32 %v9444_v47, %v6458_v62  ;;  %v13345_v62 = vld [vmem:[%s13746_s29 + $0x98] sm:$0xff]  ;;  %v13346_v24 = vld [vmem:[%s13746_s29 + $0x90] sm:$0xff] }
 0xa7c   : > { %v9612_v48 = vadd.f32 %v13333_v44, %v12488_v39 }
 0xa7d   : > { %v9611_v13 = vadd.f32 %v13334_v9, %v12490_v26  ;;  %v12201_v17 = vpop.f32.mrb[42].mxu1 }
 0xa7e   : > { %9644 = vst.msk [vmem:[%s17057_s4 + $0x38] sm:$0xff] %vm534_vm0, %v9612_v48  ;;  %v12492_v4 = vadd.f32 %v12201_v17, %v6461_v1  ;;  %v9454_v35 = vpop.f32.mrb[43].mxu1  ;;  %v13347_v1 = vld [vmem:[%s13746_s29 + $0xa8] sm:$0xff]  ;;  %v13348_v48 = vld [vmem:[%s13746_s29 + $0xa0] sm:$0xff] }
 0xa7f   : > { %9643 = vst.msk [vmem:[%s17057_s4 + $0x30] sm:$0xff] %vm534_vm0, %v9611_v13  ;;  %v12494_v45 = vadd.f32 %v9454_v35, %v6460_v27 }
 0xa80   : > { %v9614_v18 = vadd.f32 %v13335_v37, %v12492_v4  ;;  %v13349_v4 = vld [vmem:[%s13746_s29 + $0xb8] sm:$0xff] }
 0xa81   : > { %v9613_v58 = vadd.f32 %v13336_v61, %v12494_v45  ;;  %v12204_v19 = vpop.f32.mrb[44].mxu1  ;;  %v13350_v45 = vld [vmem:[%s13746_s29 + $0xb0] sm:$0xff] }
 0xa82   : > { %9646 = vst.msk [vmem:[%s17057_s4 + $0x48] sm:$0xff] %vm534_vm0, %v9614_v18  ;;  %v12496_v16 = vadd.f32 %v12204_v19, %v6463_v22  ;;  %v9464_v2 = vpop.f32.mrb[45].mxu1 }
 0xa83   : > { %9645 = vst.msk [vmem:[%s17057_s4 + $0x40] sm:$0xff] %vm534_vm0, %v9613_v58  ;;  %v12498_v11 = vadd.f32 %v9464_v2, %v6462_v6  ;;  %v13351_v6 = vld [vmem:[%s13746_s29 + $0xc8] sm:$0xff]  ;;  %v13352_v58 = vld [vmem:[%s13746_s29 + $0xc0] sm:$0xff] }
 0xa84   : > { %v9616_v52 = vadd.f32 %v13337_v8, %v12496_v16 }
 0xa85   : > { %v9615_v15 = vadd.f32 %v13338_v20, %v12498_v11  ;;  %v12207_v46 = vpop.f32.mrb[14].mxu1 }
 0xa86   : > { %9648 = vst.msk [vmem:[%s17057_s4 + $0x58] sm:$0xff] %vm534_vm0, %v9616_v52  ;;  %v12499_v49 = vadd.f32 %v12207_v46, %v17042_v59  ;;  %v9474_v55 = vpop.f32.mrb[15].mxu1  ;;  %v13353_v52 = vld [vmem:[%s13746_s29 + $0xd8] sm:$0xff] }
 0xa87   : > { %9647 = vst.msk [vmem:[%s17057_s4 + $0x50] sm:$0xff] %vm534_vm0, %v9615_v15  ;;  %v12500_v29 = vadd.f32 %v17042_v59, %v9474_v55  ;;  %v13354_v15 = vld [vmem:[%s13746_s29 + $0xd0] sm:$0xff] }
 0xa88   : > { %v9618_v50 = vadd.f32 %v13339_v5, %v12499_v49 }
 0xa89   : > { %v9617_v53 = vadd.f32 %v13340_v21, %v12500_v29  ;;  %v12210_v23 = vpop.f32.mrb[16].mxu1 }
 0xa8a   : > { %9650 = vst.msk [vmem:[%s17057_s4 + $0x68] sm:$0xff] %vm534_vm0, %v9618_v50  ;;  %v12501_v7 = vadd.f32 %v12210_v23, %v17042_v59  ;;  %v9484_v33 = vpop.f32.mrb[17].mxu1  ;;  %v13355_v50 = vld [vmem:[%s13746_s29 + $0xe8] sm:$0xff] }
 0xa8b   : > { %9649 = vst.msk [vmem:[%s17057_s4 + $0x60] sm:$0xff] %vm534_vm0, %v9617_v53  ;;  %v12502_v38 = vadd.f32 %v17042_v59, %v9484_v33  ;;  %v13356_v53 = vld [vmem:[%s13746_s29 + $0xe0] sm:$0xff] }
 0xa8c   : > { %v9620_v34 = vadd.f32 %v13341_v57, %v12501_v7 }
 0xa8d   : > { %v9619_v12 = vadd.f32 %v13342_v10, %v12502_v38  ;;  %v12213_v14 = vpop.f32.mrb[18].mxu1 }
 0xa8e   : > { %9652 = vst.msk [vmem:[%s17057_s4 + $0x78] sm:$0xff] %vm534_vm0, %v9620_v34  ;;  %v12503_v63 = vadd.f32 %v12213_v14, %v17042_v59  ;;  %v9494_v56 = vpop.f32.mrb[19].mxu1  ;;  %v13357_v34 = vld [vmem:[%s13746_s29 + $0xf8] sm:$0xff] }
 0xa8f   : > { %9651 = vst.msk [vmem:[%s17057_s4 + $0x70] sm:$0xff] %vm534_vm0, %v9619_v12  ;;  %v12504_v51 = vadd.f32 %v17042_v59, %v9494_v56  ;;  %v13358_v12 = vld [vmem:[%s13746_s29 + $0xf0] sm:$0xff] }
 0xa90   : > { %v9622_v40 = vadd.f32 %v13343_v25, %v12503_v63 }
 0xa91   : > { %v9621_v60 = vadd.f32 %v13344_v30, %v12504_v51  ;;  %v12216_v3 = vpop.f32.mrb[20].mxu1 }
 0xa92   : > { %9654 = vst.msk [vmem:[%s17057_s4 + $0x88] sm:$0xff] %vm534_vm0, %v9622_v40  ;;  %v12505_v31 = vadd.f32 %v12216_v3, %v17042_v59  ;;  %v9504_v36 = vpop.f32.mrb[21].mxu1 }
 0xa93   : > { %9653 = vst.msk [vmem:[%s17057_s4 + $0x80] sm:$0xff] %vm534_vm0, %v9621_v60  ;;  %v12506_v41 = vadd.f32 %v17042_v59, %v9504_v36 }
 0xa94   : > { %v9624_v32 = vadd.f32 %v13345_v62, %v12505_v31 }
 0xa95   : > { %v9623_v54 = vadd.f32 %v13346_v24, %v12506_v41  ;;  %v12219_v39 = vpop.f32.mrb[22].mxu1 }
 0xa96   : > { %9656 = vst.msk [vmem:[%s17057_s4 + $0x98] sm:$0xff] %vm534_vm0, %v9624_v32  ;;  %v12507_v47 = vadd.f32 %v12219_v39, %v17042_v59  ;;  %v9514_v26 = vpop.f32.mrb[23].mxu1 }
 0xa97   : > { %9655 = vst.msk [vmem:[%s17057_s4 + $0x90] sm:$0xff] %vm534_vm0, %v9623_v54  ;;  %v12508_v28 = vadd.f32 %v17042_v59, %v9514_v26 }
 0xa98   : > { %v9626_v44 = vadd.f32 %v13347_v1, %v12507_v47 }
 0xa99   : > { %v9625_v42 = vadd.f32 %v13348_v48, %v12508_v28  ;;  %v12222_v27 = vpop.f32.mrb[24].mxu1 }
 0xa9a   : > { %9658 = vst.msk [vmem:[%s17057_s4 + $0xa8] sm:$0xff] %vm534_vm0, %v9626_v44  ;;  %v12509_v9 = vadd.f32 %v12222_v27, %v17042_v59  ;;  %v9524_v13 = vpop.f32.mrb[25].mxu1 }
 0xa9b   : > { %9657 = vst.msk [vmem:[%s17057_s4 + $0xa0] sm:$0xff] %vm534_vm0, %v9625_v42  ;;  %v12510_v17 = vadd.f32 %v17042_v59, %v9524_v13 }
 0xa9c   : > { %v9628_v35 = vadd.f32 %v13349_v4, %v12509_v9 }
 0xa9d   : > { %v9627_v43 = vadd.f32 %v13350_v45, %v12510_v17  ;;  %v12225_v22 = vpop.f32.mrb[26].mxu1 }
 0xa9e   : > { %9660 = vst.msk [vmem:[%s17057_s4 + $0xb8] sm:$0xff] %vm534_vm0, %v9628_v35  ;;  %v12511_v37 = vadd.f32 %v12225_v22, %v17042_v59  ;;  %v9534_v18 = vpop.f32.mrb[27].mxu1 }
 0xa9f   : > { %9659 = vst.msk [vmem:[%s17057_s4 + $0xb0] sm:$0xff] %vm534_vm0, %v9627_v43  ;;  %v12512_v0 = vadd.f32 %v17042_v59, %v9534_v18 }
 0xaa0   : > { %v9630_v61 = vadd.f32 %v13351_v6, %v12511_v37 }
 0xaa1   : > { %v9629_v19 = vadd.f32 %v13352_v58, %v12512_v0  ;;  %v12228_v16 = vpop.f32.mrb[28].mxu1 }
 0xaa2   : > { %9662 = vst.msk [vmem:[%s17057_s4 + $0xc8] sm:$0xff] %vm534_vm0, %v9630_v61  ;;  %v12513_v2 = vadd.f32 %v12228_v16, %v17042_v59  ;;  %v9544_v11 = vpop.f32.mrb[29].mxu1 }
 0xaa3   : > { %9661 = vst.msk [vmem:[%s17057_s4 + $0xc0] sm:$0xff] %vm534_vm0, %v9629_v19  ;;  %v12514_v8 = vadd.f32 %v17042_v59, %v9544_v11 }
 0xaa4   : > { %v9632_v20 = vadd.f32 %v13353_v52, %v12513_v2 }
 0xaa5   : > { %v9631_v46 = vadd.f32 %v13354_v15, %v12514_v8  ;;  %v12231_v49 = vpop.f32.mrb[30].mxu1 }
 0xaa6   : > { %9664 = vst.msk [vmem:[%s17057_s4 + $0xd8] sm:$0xff] %vm534_vm0, %v9632_v20  ;;  %v12515_v55 = vadd.f32 %v12231_v49, %v17042_v59  ;;  %v9554_v29 = vpop.f32.mrb[31].mxu1 }
 0xaa7   : > { %9663 = vst.msk [vmem:[%s17057_s4 + $0xd0] sm:$0xff] %vm534_vm0, %v9631_v46  ;;  %v12516_v5 = vadd.f32 %v17042_v59, %v9554_v29 }
 0xaa8   : > { %v9634_v21 = vadd.f32 %v13355_v50, %v12515_v55 }
 0xaa9   : > { %v9633_v23 = vadd.f32 %v13356_v53, %v12516_v5  ;;  %v12234_v7 = vpop.f32.mrb[32].mxu1 }
 0xaaa   : > { %9666 = vst.msk [vmem:[%s17057_s4 + $0xe8] sm:$0xff] %vm534_vm0, %v9634_v21  ;;  %v12517_v33 = vadd.f32 %v12234_v7, %v17042_v59  ;;  %v9564_v38 = vpop.f32.mrb[33].mxu1 }
 0xaab   : > { %9665 = vst.msk [vmem:[%s17057_s4 + $0xe0] sm:$0xff] %vm534_vm0, %v9633_v23  ;;  %v12518_v57 = vadd.f32 %v17042_v59, %v9564_v38 }
 0xaac   : > { %v9636_v10 = vadd.f32 %v13357_v34, %v12517_v33 }
 0xaad   : > { %v9635_v14 = vadd.f32 %v13358_v12, %v12518_v57 }
 0xaae   : > { %9668 = vst.msk [vmem:[%s17057_s4 + $0xf8] sm:$0xff] %vm534_vm0, %v9636_v10 }
 0xaaf   : > { %9667 = vst.msk [vmem:[%s17057_s4 + $0xf0] sm:$0xff] %vm534_vm0, %v9635_v14 }
 0xab0   : > { %13372 = shalt.err (!%p13369_p3)
}
 0xab1   : > { %s13373_s29 = scalar_lea.hbm %s17189_s26, 4096  ;;  %s13377_s19 = scalar_lea.hbm %s17257_s16, 8192 }
 0xab2   : > { %p13374_p4 = scmp.ne.s32.totalorder %s17189_s26, %s13373_s29  ;;  %p13378_p9 = scmp.lt.u32.totalorder %s17189_s26, %s17257_s16 }
 0xab3   : > { %p13379_p10 = scmp.lt.u32.totalorder %s13377_s19, %s13373_s29  ;;  %p13381_p12 = scmp.lt.u32.totalorder %s13373_s29, %s17189_s26 }
 0xab4   : > { %p13375_p7 = pnand %p13374_p4, %p13552_p5 }
 0xab5   : > { %p13380_p11 = por %p13379_p10, %p13378_p9 }
 0xab6   : > { %p13376_p8 = pneg %p13375_p7 }
 0xab7   : > { %p13382_p13 = por %p13381_p12, %p13380_p11 }
 0xab9   : > { %p13383_p0 = pnand %p13382_p13, %p13376_p8 }
 0xabb   : > { %13386 = shalt.err (!%p13383_p0)
}
 0xabc   : > { %s13427_s30 = smov 128   ;;  %s13428_s3 = smov 8  }
 0xabd   : > { %13019 = dma.vmem_to_hbm [thread:$0]  (%p13552_p5), %s17191_s27, 4096, %s17189_s26, %s17200_s25, %s13427_s30, %s13427_s30, %s13428_s3  }
 0xabe PF: > { %p13025_p1 = scmp.ge.s32.totalorder %s13421_s24, 2  ;;  %s9698_s23 = sand.u32 1, %s13409_s21  }
 0xabf   : > { %s9699_s29 = scalar_lea.sflag [#allocation5], %s9698_s23 }
 0xac0   : > { %p13022_p2 = pnand %p13025_p1, %p13556_p6 }
 0xac2   : > { %13404 = dma.done.wait (!%p13022_p2), %s9699_s29, 4096  }
 0xac3   : > { %13406 = vsyncadd (!%p13022_p2), %s9699_s29, 4294963200  ;;  %s17668_s24 = sld [smem:[#allocation8_spill]]  ;;  %s17669_s18 = sld [smem:[#allocation7_spill]] }
 0xac4   : > { %s17670_s23 = sld [smem:[#allocation9_spill]]  ;;  %s17671_s21 = smov %s13413_s22 }
 0xac9   : > { %p26_p3 = scmp.ge.s32.totalorder %s17668_s24, 4   ;;  %s17672_s22 = smov %s17669_s18 }
 0xacb   :  { %28 = sbr.rel (!%p26_p3) target bundleno = 7 (0x7), region = 142 }
 0xad2   :  { %9704 = vsyncpa [#allocation5], 1 }
 0xad3   :  { %9706 = vsyncpa [#allocation5 + $0x1], 1 }

</bundles_post_ra>
